<compile_context>
chip_gen: v7x
topology: tpu7x:2x2x1
jax: 0.10.0
libtpu: 0.0.40
codegen_flags: <defaults>
</compile_context>

<pallas_src>
import math

import jax
import jax.numpy as jnp
from jax.experimental import pallas as pl
from jax.experimental.pallas import tpu as pltpu

B, N, D, H = 2, 8, 32, 4          # batch, num_nodes, hidden_dim, n_head
DH = D // H                       # per-head dim
R = B * N * N                     # flattened (batch, node_i, node_j) rows
EPS = 1e-5                        # torch LayerNorm default

# Batch tiling: one grid step processes BATCH_CHUNK batch elements.  At B=2 we
# keep everything in one step (grid of 1, zero per-step overhead); on v7x / for
# larger B, lower BATCH_CHUNK so the "parallel" grid axis splits across cores.
BATCH_CHUNK = B
assert B % BATCH_CHUNK == 0
NUM_CHUNKS = B // BATCH_CHUNK
RC = BATCH_CHUNK * N * N          # rows per grid step


def _layer_norm(x, g, b):
    mu = jnp.mean(x, axis=-1, keepdims=True)
    var = jnp.mean(jnp.square(x - mu), axis=-1, keepdims=True)
    return (x - mu) * jax.lax.rsqrt(var + EPS) * g + b


def block_kernel(x_ref, bias_ref, ln1_g_ref, ln1_b_ref, w_in_ref, w_out_ref,
                 ln2_g_ref, ln2_b_ref, w1_ref, b1_ref, w2_ref, b2_ref, o_ref):
    """Block forward for one batch chunk (BATCH_CHUNK*N*N edge rows)."""
    x = x_ref[...]                                   # (RC, D), rows (b, p, q)
    xn = _layer_norm(x, ln1_g_ref[...], ln1_b_ref[...])

    # ----- SelfAttention -----
    # Single fused QKV projection; 1/sqrt(DH) is folded into the Q columns.
    proj = jnp.dot(xn, w_in_ref[...], preferred_element_type=jnp.float32)
    q_nat = proj[:, :D]                              # projection of edge (p, q)
    k = proj[:, D:2 * D]                             # keys stay in natural row order
    v = proj[:, 2 * D:]

    # Output row (b, p, q) needs the query of edge (q, p): permute Q rows once
    # ((b,p,q) <- (b,q,p)); with that, attention results land directly in
    # output row order and K/V need no permutation (the bias picks the keys).
    q = jnp.swapaxes(q_nat.reshape(BATCH_CHUNK, N, N, D), 1, 2).reshape(RC, D)

    # Per head: one dense (RC, RC) logits tile.  bias_ref holds -inf wherever
    # the key column belongs to a different group/batch or is masked, so the
    # softmax over the full row equals the reference softmax over its 8 keys.
    ao_heads = []
    for h in range(H):
        lo, hi = h * DH, (h + 1) * DH
        s = jnp.einsum('md,sd->ms', q[:, lo:hi], k[:, lo:hi],
                       preferred_element_type=jnp.float32)       # (RC, RC)
        s = s + bias_ref[...]
        # NOTE: a fully-masked row yields NaN, matching the reference behaviour.
        m = jnp.max(s, axis=-1, keepdims=True)
        e = jnp.exp(s - m)
        p = e / jnp.sum(e, axis=-1, keepdims=True)
        ao_heads.append(jnp.dot(p, v[:, lo:hi],
                                preferred_element_type=jnp.float32))  # (RC, DH)

    ao = jnp.concatenate(ao_heads, axis=-1)          # (RC, D), already output order
    attn = jnp.dot(ao, w_out_ref[...], preferred_element_type=jnp.float32)

    x1 = x + attn                                    # residual 1

    # ----- FeedForward -----
    xn2 = _layer_norm(x1, ln2_g_ref[...], ln2_b_ref[...])
    hh = jnp.dot(xn2, w1_ref[...], preferred_element_type=jnp.float32) + b1_ref[...]
    hh = jnp.maximum(hh, 0.0)
    ff = jnp.dot(hh, w2_ref[...], preferred_element_type=jnp.float32) + b2_ref[...]

    o_ref[...] = x1 + ff                             # residual 2


def make_params(key):
    ks = jax.random.split(key, 10)
    init = lambda k, shape, s=0.05: (s * jax.random.normal(k, shape)).astype(jnp.float32)
    return {
        'ln1_g': (1.0 + init(ks[0], (1, D))),
        'ln1_b': init(ks[1], (1, D)),
        'w_in':  init(ks[2], (D, 3 * D)),     # input_projection (no bias)
        'w_out': init(ks[3], (D, D)),         # output_projection (no bias)
        'ln2_g': (1.0 + init(ks[4], (1, D))),
        'ln2_b': init(ks[5], (1, D)),
        'w1':    init(ks[6], (D, 4 * D)),
        'b1':    init(ks[7], (1, 4 * D)),
        'w2':    init(ks[8], (4 * D, D)),
        'b2':    init(ks[9], (1, D)),
    }


def prepare(params, attention_mask):
    """One-time prep (hoisted out of the per-call path): fold the attention
    scale into the Q weights and build the combined (RC, RC) additive bias."""
    scale = 1.0 / math.sqrt(DH)
    w_in = params['w_in']
    w_in_scaled = jnp.concatenate([w_in[:, :D] * scale, w_in[:, D:]], axis=-1)

    # Reference sdpa's bool path applies attn_mask[0] (batch 0) to every batch
    # element -- reproduced exactly, which also makes the bias chunk-invariant.
    eye = jnp.eye(N, dtype=bool)
    mask0 = jnp.asarray(attention_mask)[0] & ~eye          # [m, s]: mask & (m != s)
    nn = jnp.arange(N)
    bb = jnp.arange(BATCH_CHUNK)
    same_b = bb[:, None] == bb[None, :]                    # [b, b']
    s_ne_a = nn[:, None] != nn[None, :]                    # [a, s]: s != a
    col_in_group = nn[:, None] == nn[None, :]              # [a, j]: key col (i, j) has j == a
    # Row (b, p1=m, p2=a) x column (b', i=s, j): valid iff same batch, the key
    # edge's second node equals the group node a, and the reference mask allows
    # (m, s) with m != s and a != s.
    valid = (same_b[:, None, None, :, None, None]
             & mask0[None, :, None, None, :, None]
             & s_ne_a[None, None, :, None, :, None]
             & col_in_group[None, None, :, None, None, :])
    bias = jnp.where(valid, 0.0, -jnp.inf).astype(jnp.float32).reshape(RC, RC)

    prepped = dict(params)
    prepped['w_in'] = w_in_scaled
    prepped['bias'] = bias
    return prepped


@jax.jit
def block_forward(x, prep):
    x_flat = x.reshape(R, D)                   # free reshape, no extra launch
    const = lambda i: (0, 0)
    out = pl.pallas_call(
        block_kernel,
        out_shape=jax.ShapeDtypeStruct((R, D), jnp.float32),
        grid=(NUM_CHUNKS,),
        in_specs=[
            pl.BlockSpec((RC, D), lambda i: (i, 0)),       # x
            pl.BlockSpec((RC, RC), const),                 # combined attention bias
            pl.BlockSpec((1, D), const),                   # ln1_g
            pl.BlockSpec((1, D), const),                   # ln1_b
            pl.BlockSpec((D, 3 * D), const),               # w_in (scale folded)
            pl.BlockSpec((D, D), const),                   # w_out
            pl.BlockSpec((1, D), const),                   # ln2_g
            pl.BlockSpec((1, D), const),                   # ln2_b
            pl.BlockSpec((D, 4 * D), const),               # w1
            pl.BlockSpec((1, 4 * D), const),               # b1
            pl.BlockSpec((4 * D, D), const),               # w2
            pl.BlockSpec((1, D), const),                   # b2
        ],
        out_specs=pl.BlockSpec((RC, D), lambda i: (i, 0)),
        compiler_params=pltpu.CompilerParams(
            dimension_semantics=("parallel",)),
    )(x_flat, prep['bias'], prep['ln1_g'], prep['ln1_b'], prep['w_in'],
      prep['w_out'], prep['ln2_g'], prep['ln2_b'], prep['w1'], prep['b1'],
      prep['w2'], prep['b2'])
    return out.reshape(B, N, N, D)


def block_reference(x, attention_mask, params):
    # Pure-JAX faithful translation of the PyTorch forward (eval mode).
    xn = _layer_norm(x, params['ln1_g'], params['ln1_b'])
    proj = xn @ params['w_in']
    qc, kc, vc = jnp.split(proj, 3, axis=-1)
    query = qc.reshape(B, N, N, H, DH).transpose(0, 3, 1, 2, 4)
    key = kc.reshape(B, N, N, H, DH).transpose(0, 3, 2, 1, 4)
    value = vc.reshape(B, N, N, H, DH).transpose(0, 3, 2, 1, 4)
    eye = jnp.eye(N, dtype=bool)
    mask_nodiag = jnp.where(eye[None], False, attention_mask)
    attn_mask = (jnp.broadcast_to(mask_nodiag[:, None], (B, N, N, N))
                 & jnp.broadcast_to((~eye)[None, :, None, :], (B, N, N, N)))
    bias = jnp.where(attn_mask[0], 0.0, -jnp.inf)           # bool path uses [0]
    scale = 1.0 / math.sqrt(DH)
    logits = jnp.einsum('bhijc,bhikc->bhijk', query, key) * scale + bias
    p = jax.nn.softmax(logits, axis=-1)
    ao = jnp.einsum('bhijk,bhikc->bhijc', p, value)
    ao = ao.transpose(0, 2, 3, 1, 4)          # permute(0, 2, 3, 1, 4)
    ao = ao.transpose(0, 2, 1, 3, 4)          # .transpose(1, 2)
    ao = ao.reshape(B, N, N, D)
    x1 = x + ao @ params['w_out']
    xn2 = _layer_norm(x1, params['ln2_g'], params['ln2_b'])
    hh = jax.nn.relu(xn2 @ params['w1'] + params['b1'])
    return x1 + hh @ params['w2'] + params['b2']


if __name__ == "__main__":
    key = jax.random.PRNGKey(0)
    kx, km, kp = jax.random.split(key, 3)
    x = jax.random.normal(kx, (B, N, N, D), dtype=jnp.float32)
    mask = jax.random.uniform(km, (B, N, N)) > 0.15          # bool attention mask
    mask = mask.at[:, :, :3].set(True)   # ensure every attention row has a valid key
    params = make_params(kp)

    prep = prepare(params, mask)         # one-time prep, outside the hot path
    out = block_forward(x, prep)
    out = jax.block_until_ready(out)

    ref = block_reference(x, mask, params)
    assert out.shape == (B, N, N, D)
    err = float(jnp.max(jnp.abs(out - ref)))
    assert jnp.allclose(out, ref, atol=2e-4, rtol=2e-4), err
    print("KERNEL_OK")
</pallas_src>

<mosaic_0001>
module attributes {stable_mosaic.version = 11 : i64} {
  func.func @block_kernel(%arg0: i32, %arg1: memref<128x32xf32, #tpu.memory_space<vmem>>, %arg2: memref<128x128xf32, #tpu.memory_space<vmem>>, %arg3: memref<1x32xf32, #tpu.memory_space<vmem>>, %arg4: memref<1x32xf32, #tpu.memory_space<vmem>>, %arg5: memref<32x96xf32, #tpu.memory_space<vmem>>, %arg6: memref<32x32xf32, #tpu.memory_space<vmem>>, %arg7: memref<1x32xf32, #tpu.memory_space<vmem>>, %arg8: memref<1x32xf32, #tpu.memory_space<vmem>>, %arg9: memref<32x128xf32, #tpu.memory_space<vmem>>, %arg10: memref<1x128xf32, #tpu.memory_space<vmem>>, %arg11: memref<128x32xf32, #tpu.memory_space<vmem>>, %arg12: memref<1x32xf32, #tpu.memory_space<vmem>>, %arg13: memref<128x32xf32, #tpu.memory_space<vmem>>) attributes {dimension_semantics = [#tpu.dimension_semantics<parallel>], iteration_bounds = array<i64: 1>, scalar_prefetch = 0 : i64, scratch_operands = 0 : i64, tpu.core_type = #tpu.core_type<tc>, window_params = [{transform_indices = @transform_0, window_bounds = array<i64: 128, 32>}, {pipeline_mode = #tpu.pipeline_mode<synchronous>, transform_indices = @transform_1, window_bounds = array<i64: 128, 128>}, {pipeline_mode = #tpu.pipeline_mode<synchronous>, transform_indices = @transform_2, window_bounds = array<i64: 1, 32>}, {pipeline_mode = #tpu.pipeline_mode<synchronous>, transform_indices = @transform_3, window_bounds = array<i64: 1, 32>}, {pipeline_mode = #tpu.pipeline_mode<synchronous>, transform_indices = @transform_4, window_bounds = array<i64: 32, 96>}, {pipeline_mode = #tpu.pipeline_mode<synchronous>, transform_indices = @transform_5, window_bounds = array<i64: 32, 32>}, {pipeline_mode = #tpu.pipeline_mode<synchronous>, transform_indices = @transform_6, window_bounds = array<i64: 1, 32>}, {pipeline_mode = #tpu.pipeline_mode<synchronous>, transform_indices = @transform_7, window_bounds = array<i64: 1, 32>}, {pipeline_mode = #tpu.pipeline_mode<synchronous>, transform_indices = @transform_8, window_bounds = array<i64: 32, 128>}, {pipeline_mode = #tpu.pipeline_mode<synchronous>, transform_indices = @transform_9, window_bounds = array<i64: 1, 128>}, {pipeline_mode = #tpu.pipeline_mode<synchronous>, transform_indices = @transform_10, window_bounds = array<i64: 128, 32>}, {pipeline_mode = #tpu.pipeline_mode<synchronous>, transform_indices = @transform_11, window_bounds = array<i64: 1, 32>}, {transform_indices = @transform_12, window_bounds = array<i64: 128, 32>}]} {
    %c0 = arith.constant 0 : index
    %c0_0 = arith.constant 0 : index
    %0 = vector.load %arg1[%c0, %c0_0] : memref<128x32xf32, #tpu.memory_space<vmem>>, vector<128x32xf32>
    %c0_1 = arith.constant 0 : index
    %c0_2 = arith.constant 0 : index
    %1 = vector.load %arg3[%c0_1, %c0_2] : memref<1x32xf32, #tpu.memory_space<vmem>>, vector<1x32xf32>
    %c0_3 = arith.constant 0 : index
    %c0_4 = arith.constant 0 : index
    %2 = vector.load %arg4[%c0_3, %c0_4] : memref<1x32xf32, #tpu.memory_space<vmem>>, vector<1x32xf32>
    %cst = arith.constant dense<0.000000e+00> : vector<128xf32>
    %3 = vector.multi_reduction <add>, %0, %cst [1] : vector<128x32xf32> to vector<128xf32>
    %4 = vector.shape_cast %3 : vector<128xf32> to vector<128x1xf32>
    %cst_5 = arith.constant 3.200000e+01 : f32
    %5 = vector.broadcast %cst_5 : f32 to vector<128x1xf32>
    %6 = arith.divf %4, %5 : vector<128x1xf32>
    %7 = vector.broadcast %6 : vector<128x1xf32> to vector<128x32xf32>
    %8 = arith.subf %0, %7 : vector<128x32xf32>
    %9 = arith.mulf %8, %8 : vector<128x32xf32>
    %cst_6 = arith.constant dense<0.000000e+00> : vector<128xf32>
    %10 = vector.multi_reduction <add>, %9, %cst_6 [1] : vector<128x32xf32> to vector<128xf32>
    %11 = vector.shape_cast %10 : vector<128xf32> to vector<128x1xf32>
    %cst_7 = arith.constant 3.200000e+01 : f32
    %12 = vector.broadcast %cst_7 : f32 to vector<128x1xf32>
    %13 = arith.divf %11, %12 : vector<128x1xf32>
    %14 = vector.broadcast %6 : vector<128x1xf32> to vector<128x32xf32>
    %15 = arith.subf %0, %14 : vector<128x32xf32>
    %cst_8 = arith.constant 9.99999974E-6 : f32
    %16 = vector.broadcast %cst_8 : f32 to vector<128x1xf32>
    %17 = arith.addf %13, %16 : vector<128x1xf32>
    %18 = math.rsqrt %17 : vector<128x1xf32>
    %19 = vector.broadcast %18 : vector<128x1xf32> to vector<128x32xf32>
    %20 = arith.mulf %15, %19 : vector<128x32xf32>
    %21 = vector.broadcast %1 : vector<1x32xf32> to vector<128x32xf32>
    %22 = arith.mulf %20, %21 : vector<128x32xf32>
    %23 = vector.broadcast %2 : vector<1x32xf32> to vector<128x32xf32>
    %24 = arith.addf %22, %23 : vector<128x32xf32>
    %c0_9 = arith.constant 0 : index
    %c0_10 = arith.constant 0 : index
    %25 = vector.load %arg5[%c0_9, %c0_10] : memref<32x96xf32, #tpu.memory_space<vmem>>, vector<32x96xf32>
    %cst_11 = arith.constant dense<0.000000e+00> : vector<128x96xf32>
    %26 = tpu.matmul %24, %25, %cst_11 {dimension_numbers = #tpu.dot_dimension_numbers<[1], [0], [0], [1], [0, 0, 1, 1], [], []>} : vector<128x32xf32>, vector<32x96xf32>, vector<128x96xf32> -> vector<128x96xf32>
    %27 = vector.extract_strided_slice %26 {offsets = [0, 0], sizes = [128, 32], strides = [1, 1]} : vector<128x96xf32> to vector<128x32xf32>
    %28 = vector.extract_strided_slice %26 {offsets = [0, 32], sizes = [128, 32], strides = [1, 1]} : vector<128x96xf32> to vector<128x32xf32>
    %29 = vector.extract_strided_slice %26 {offsets = [0, 64], sizes = [128, 32], strides = [1, 1]} : vector<128x96xf32> to vector<128x32xf32>
    %30 = vector.shape_cast %27 : vector<128x32xf32> to vector<2x8x8x32xf32>
    %31 = tpu.transpose %30, [0, 2, 1, 3] : vector<2x8x8x32xf32> -> vector<2x8x8x32xf32>
    %32 = vector.shape_cast %31 : vector<2x8x8x32xf32> to vector<128x32xf32>
    %33 = vector.extract_strided_slice %32 {offsets = [0, 0], sizes = [128, 8], strides = [1, 1]} : vector<128x32xf32> to vector<128x8xf32>
    %34 = vector.extract_strided_slice %28 {offsets = [0, 0], sizes = [128, 8], strides = [1, 1]} : vector<128x32xf32> to vector<128x8xf32>
    "tpu.trace_start"() <{level = 10 : i32, message = "md,sd->ms"}> : () -> ()
    %cst_12 = arith.constant dense<0.000000e+00> : vector<128x128xf32>
    %35 = tpu.matmul %33, %34, %cst_12 {dimension_numbers = #tpu.dot_dimension_numbers<[1], [1], [0], [0], [0, 0, 1, 0], [], []>} : vector<128x8xf32>, vector<128x8xf32>, vector<128x128xf32> -> vector<128x128xf32>
    "tpu.trace_stop"() : () -> ()
    %c0_13 = arith.constant 0 : index
    %c0_14 = arith.constant 0 : index
    %36 = vector.load %arg2[%c0_13, %c0_14] : memref<128x128xf32, #tpu.memory_space<vmem>>, vector<128x128xf32>
    %37 = arith.addf %35, %36 : vector<128x128xf32>
    %cst_15 = arith.constant dense<0xFF800000> : vector<128xf32>
    %38 = vector.multi_reduction <maximumf>, %37, %cst_15 [1] : vector<128x128xf32> to vector<128xf32>
    %39 = vector.shape_cast %38 : vector<128xf32> to vector<128x1xf32>
    %40 = vector.broadcast %39 : vector<128x1xf32> to vector<128x128xf32>
    %41 = arith.subf %37, %40 : vector<128x128xf32>
    %42 = math.exp %41 : vector<128x128xf32>
    %cst_16 = arith.constant dense<0.000000e+00> : vector<128xf32>
    %43 = vector.multi_reduction <add>, %42, %cst_16 [1] : vector<128x128xf32> to vector<128xf32>
    %44 = vector.shape_cast %43 : vector<128xf32> to vector<128x1xf32>
    %45 = vector.broadcast %44 : vector<128x1xf32> to vector<128x128xf32>
    %46 = arith.divf %42, %45 : vector<128x128xf32>
    %47 = vector.extract_strided_slice %29 {offsets = [0, 0], sizes = [128, 8], strides = [1, 1]} : vector<128x32xf32> to vector<128x8xf32>
    %cst_17 = arith.constant dense<0.000000e+00> : vector<128x8xf32>
    %48 = tpu.matmul %46, %47, %cst_17 {dimension_numbers = #tpu.dot_dimension_numbers<[1], [0], [0], [1], [0, 0, 1, 1], [], []>} : vector<128x128xf32>, vector<128x8xf32>, vector<128x8xf32> -> vector<128x8xf32>
    %49 = vector.extract_strided_slice %32 {offsets = [0, 8], sizes = [128, 8], strides = [1, 1]} : vector<128x32xf32> to vector<128x8xf32>
    %50 = vector.extract_strided_slice %28 {offsets = [0, 8], sizes = [128, 8], strides = [1, 1]} : vector<128x32xf32> to vector<128x8xf32>
    "tpu.trace_start"() <{level = 10 : i32, message = "md,sd->ms"}> : () -> ()
    %cst_18 = arith.constant dense<0.000000e+00> : vector<128x128xf32>
    %51 = tpu.matmul %49, %50, %cst_18 {dimension_numbers = #tpu.dot_dimension_numbers<[1], [1], [0], [0], [0, 0, 1, 0], [], []>} : vector<128x8xf32>, vector<128x8xf32>, vector<128x128xf32> -> vector<128x128xf32>
    "tpu.trace_stop"() : () -> ()
    %c0_19 = arith.constant 0 : index
    %c0_20 = arith.constant 0 : index
    %52 = vector.load %arg2[%c0_19, %c0_20] : memref<128x128xf32, #tpu.memory_space<vmem>>, vector<128x128xf32>
    %53 = arith.addf %51, %52 : vector<128x128xf32>
    %cst_21 = arith.constant dense<0xFF800000> : vector<128xf32>
    %54 = vector.multi_reduction <maximumf>, %53, %cst_21 [1] : vector<128x128xf32> to vector<128xf32>
    %55 = vector.shape_cast %54 : vector<128xf32> to vector<128x1xf32>
    %56 = vector.broadcast %55 : vector<128x1xf32> to vector<128x128xf32>
    %57 = arith.subf %53, %56 : vector<128x128xf32>
    %58 = math.exp %57 : vector<128x128xf32>
    %cst_22 = arith.constant dense<0.000000e+00> : vector<128xf32>
    %59 = vector.multi_reduction <add>, %58, %cst_22 [1] : vector<128x128xf32> to vector<128xf32>
    %60 = vector.shape_cast %59 : vector<128xf32> to vector<128x1xf32>
    %61 = vector.broadcast %60 : vector<128x1xf32> to vector<128x128xf32>
    %62 = arith.divf %58, %61 : vector<128x128xf32>
    %63 = vector.extract_strided_slice %29 {offsets = [0, 8], sizes = [128, 8], strides = [1, 1]} : vector<128x32xf32> to vector<128x8xf32>
    %cst_23 = arith.constant dense<0.000000e+00> : vector<128x8xf32>
    %64 = tpu.matmul %62, %63, %cst_23 {dimension_numbers = #tpu.dot_dimension_numbers<[1], [0], [0], [1], [0, 0, 1, 1], [], []>} : vector<128x128xf32>, vector<128x8xf32>, vector<128x8xf32> -> vector<128x8xf32>
    %65 = vector.extract_strided_slice %32 {offsets = [0, 16], sizes = [128, 8], strides = [1, 1]} : vector<128x32xf32> to vector<128x8xf32>
    %66 = vector.extract_strided_slice %28 {offsets = [0, 16], sizes = [128, 8], strides = [1, 1]} : vector<128x32xf32> to vector<128x8xf32>
    "tpu.trace_start"() <{level = 10 : i32, message = "md,sd->ms"}> : () -> ()
    %cst_24 = arith.constant dense<0.000000e+00> : vector<128x128xf32>
    %67 = tpu.matmul %65, %66, %cst_24 {dimension_numbers = #tpu.dot_dimension_numbers<[1], [1], [0], [0], [0, 0, 1, 0], [], []>} : vector<128x8xf32>, vector<128x8xf32>, vector<128x128xf32> -> vector<128x128xf32>
    "tpu.trace_stop"() : () -> ()
    %c0_25 = arith.constant 0 : index
    %c0_26 = arith.constant 0 : index
    %68 = vector.load %arg2[%c0_25, %c0_26] : memref<128x128xf32, #tpu.memory_space<vmem>>, vector<128x128xf32>
    %69 = arith.addf %67, %68 : vector<128x128xf32>
    %cst_27 = arith.constant dense<0xFF800000> : vector<128xf32>
    %70 = vector.multi_reduction <maximumf>, %69, %cst_27 [1] : vector<128x128xf32> to vector<128xf32>
    %71 = vector.shape_cast %70 : vector<128xf32> to vector<128x1xf32>
    %72 = vector.broadcast %71 : vector<128x1xf32> to vector<128x128xf32>
    %73 = arith.subf %69, %72 : vector<128x128xf32>
    %74 = math.exp %73 : vector<128x128xf32>
    %cst_28 = arith.constant dense<0.000000e+00> : vector<128xf32>
    %75 = vector.multi_reduction <add>, %74, %cst_28 [1] : vector<128x128xf32> to vector<128xf32>
    %76 = vector.shape_cast %75 : vector<128xf32> to vector<128x1xf32>
    %77 = vector.broadcast %76 : vector<128x1xf32> to vector<128x128xf32>
    %78 = arith.divf %74, %77 : vector<128x128xf32>
    %79 = vector.extract_strided_slice %29 {offsets = [0, 16], sizes = [128, 8], strides = [1, 1]} : vector<128x32xf32> to vector<128x8xf32>
    %cst_29 = arith.constant dense<0.000000e+00> : vector<128x8xf32>
    %80 = tpu.matmul %78, %79, %cst_29 {dimension_numbers = #tpu.dot_dimension_numbers<[1], [0], [0], [1], [0, 0, 1, 1], [], []>} : vector<128x128xf32>, vector<128x8xf32>, vector<128x8xf32> -> vector<128x8xf32>
    %81 = vector.extract_strided_slice %32 {offsets = [0, 24], sizes = [128, 8], strides = [1, 1]} : vector<128x32xf32> to vector<128x8xf32>
    %82 = vector.extract_strided_slice %28 {offsets = [0, 24], sizes = [128, 8], strides = [1, 1]} : vector<128x32xf32> to vector<128x8xf32>
    "tpu.trace_start"() <{level = 10 : i32, message = "md,sd->ms"}> : () -> ()
    %cst_30 = arith.constant dense<0.000000e+00> : vector<128x128xf32>
    %83 = tpu.matmul %81, %82, %cst_30 {dimension_numbers = #tpu.dot_dimension_numbers<[1], [1], [0], [0], [0, 0, 1, 0], [], []>} : vector<128x8xf32>, vector<128x8xf32>, vector<128x128xf32> -> vector<128x128xf32>
    "tpu.trace_stop"() : () -> ()
    %c0_31 = arith.constant 0 : index
    %c0_32 = arith.constant 0 : index
    %84 = vector.load %arg2[%c0_31, %c0_32] : memref<128x128xf32, #tpu.memory_space<vmem>>, vector<128x128xf32>
    %85 = arith.addf %83, %84 : vector<128x128xf32>
    %cst_33 = arith.constant dense<0xFF800000> : vector<128xf32>
    %86 = vector.multi_reduction <maximumf>, %85, %cst_33 [1] : vector<128x128xf32> to vector<128xf32>
    %87 = vector.shape_cast %86 : vector<128xf32> to vector<128x1xf32>
    %88 = vector.broadcast %87 : vector<128x1xf32> to vector<128x128xf32>
    %89 = arith.subf %85, %88 : vector<128x128xf32>
    %90 = math.exp %89 : vector<128x128xf32>
    %cst_34 = arith.constant dense<0.000000e+00> : vector<128xf32>
    %91 = vector.multi_reduction <add>, %90, %cst_34 [1] : vector<128x128xf32> to vector<128xf32>
    %92 = vector.shape_cast %91 : vector<128xf32> to vector<128x1xf32>
    %93 = vector.broadcast %92 : vector<128x1xf32> to vector<128x128xf32>
    %94 = arith.divf %90, %93 : vector<128x128xf32>
    %95 = vector.extract_strided_slice %29 {offsets = [0, 24], sizes = [128, 8], strides = [1, 1]} : vector<128x32xf32> to vector<128x8xf32>
    %cst_35 = arith.constant dense<0.000000e+00> : vector<128x8xf32>
    %96 = tpu.matmul %94, %95, %cst_35 {dimension_numbers = #tpu.dot_dimension_numbers<[1], [0], [0], [1], [0, 0, 1, 1], [], []>} : vector<128x128xf32>, vector<128x8xf32>, vector<128x8xf32> -> vector<128x8xf32>
    %97 = tpu.concatenate %48, %64, %80, %96 in 1 : vector<128x8xf32>, vector<128x8xf32>, vector<128x8xf32>, vector<128x8xf32> -> vector<128x32xf32>
    %c0_36 = arith.constant 0 : index
    %c0_37 = arith.constant 0 : index
    %98 = vector.load %arg6[%c0_36, %c0_37] : memref<32x32xf32, #tpu.memory_space<vmem>>, vector<32x32xf32>
    %cst_38 = arith.constant dense<0.000000e+00> : vector<128x32xf32>
    %99 = tpu.matmul %97, %98, %cst_38 {dimension_numbers = #tpu.dot_dimension_numbers<[1], [0], [0], [1], [0, 0, 1, 1], [], []>} : vector<128x32xf32>, vector<32x32xf32>, vector<128x32xf32> -> vector<128x32xf32>
    %100 = arith.addf %0, %99 : vector<128x32xf32>
    %c0_39 = arith.constant 0 : index
    %c0_40 = arith.constant 0 : index
    %101 = vector.load %arg7[%c0_39, %c0_40] : memref<1x32xf32, #tpu.memory_space<vmem>>, vector<1x32xf32>
    %c0_41 = arith.constant 0 : index
    %c0_42 = arith.constant 0 : index
    %102 = vector.load %arg8[%c0_41, %c0_42] : memref<1x32xf32, #tpu.memory_space<vmem>>, vector<1x32xf32>
    %cst_43 = arith.constant dense<0.000000e+00> : vector<128xf32>
    %103 = vector.multi_reduction <add>, %100, %cst_43 [1] : vector<128x32xf32> to vector<128xf32>
    %104 = vector.shape_cast %103 : vector<128xf32> to vector<128x1xf32>
    %cst_44 = arith.constant 3.200000e+01 : f32
    %105 = vector.broadcast %cst_44 : f32 to vector<128x1xf32>
    %106 = arith.divf %104, %105 : vector<128x1xf32>
    %107 = vector.broadcast %106 : vector<128x1xf32> to vector<128x32xf32>
    %108 = arith.subf %100, %107 : vector<128x32xf32>
    %109 = arith.mulf %108, %108 : vector<128x32xf32>
    %cst_45 = arith.constant dense<0.000000e+00> : vector<128xf32>
    %110 = vector.multi_reduction <add>, %109, %cst_45 [1] : vector<128x32xf32> to vector<128xf32>
    %111 = vector.shape_cast %110 : vector<128xf32> to vector<128x1xf32>
    %cst_46 = arith.constant 3.200000e+01 : f32
    %112 = vector.broadcast %cst_46 : f32 to vector<128x1xf32>
    %113 = arith.divf %111, %112 : vector<128x1xf32>
    %114 = vector.broadcast %106 : vector<128x1xf32> to vector<128x32xf32>
    %115 = arith.subf %100, %114 : vector<128x32xf32>
    %cst_47 = arith.constant 9.99999974E-6 : f32
    %116 = vector.broadcast %cst_47 : f32 to vector<128x1xf32>
    %117 = arith.addf %113, %116 : vector<128x1xf32>
    %118 = math.rsqrt %117 : vector<128x1xf32>
    %119 = vector.broadcast %118 : vector<128x1xf32> to vector<128x32xf32>
    %120 = arith.mulf %115, %119 : vector<128x32xf32>
    %121 = vector.broadcast %101 : vector<1x32xf32> to vector<128x32xf32>
    %122 = arith.mulf %120, %121 : vector<128x32xf32>
    %123 = vector.broadcast %102 : vector<1x32xf32> to vector<128x32xf32>
    %124 = arith.addf %122, %123 : vector<128x32xf32>
    %c0_48 = arith.constant 0 : index
    %c0_49 = arith.constant 0 : index
    %125 = vector.load %arg9[%c0_48, %c0_49] : memref<32x128xf32, #tpu.memory_space<vmem>>, vector<32x128xf32>
    %cst_50 = arith.constant dense<0.000000e+00> : vector<128x128xf32>
    %126 = tpu.matmul %124, %125, %cst_50 {dimension_numbers = #tpu.dot_dimension_numbers<[1], [0], [0], [1], [0, 0, 1, 1], [], []>} : vector<128x32xf32>, vector<32x128xf32>, vector<128x128xf32> -> vector<128x128xf32>
    %c0_51 = arith.constant 0 : index
    %c0_52 = arith.constant 0 : index
    %127 = vector.load %arg10[%c0_51, %c0_52] : memref<1x128xf32, #tpu.memory_space<vmem>>, vector<1x128xf32>
    %128 = vector.broadcast %127 : vector<1x128xf32> to vector<128x128xf32>
    %129 = arith.addf %126, %128 : vector<128x128xf32>
    %cst_53 = arith.constant 0.000000e+00 : f32
    %130 = vector.broadcast %cst_53 : f32 to vector<128x128xf32>
    %131 = arith.maximumf %129, %130 : vector<128x128xf32>
    %c0_54 = arith.constant 0 : index
    %c0_55 = arith.constant 0 : index
    %132 = vector.load %arg11[%c0_54, %c0_55] : memref<128x32xf32, #tpu.memory_space<vmem>>, vector<128x32xf32>
    %cst_56 = arith.constant dense<0.000000e+00> : vector<128x32xf32>
    %133 = tpu.matmul %131, %132, %cst_56 {dimension_numbers = #tpu.dot_dimension_numbers<[1], [0], [0], [1], [0, 0, 1, 1], [], []>} : vector<128x128xf32>, vector<128x32xf32>, vector<128x32xf32> -> vector<128x32xf32>
    %c0_57 = arith.constant 0 : index
    %c0_58 = arith.constant 0 : index
    %134 = vector.load %arg12[%c0_57, %c0_58] : memref<1x32xf32, #tpu.memory_space<vmem>>, vector<1x32xf32>
    %135 = vector.broadcast %134 : vector<1x32xf32> to vector<128x32xf32>
    %136 = arith.addf %133, %135 : vector<128x32xf32>
    %137 = arith.addf %100, %136 : vector<128x32xf32>
    %c0_59 = arith.constant 0 : index
    %c0_60 = arith.constant 0 : index
    %138 = vector.load %arg13[%c0_59, %c0_60] : memref<128x32xf32, #tpu.memory_space<vmem>>, vector<128x32xf32>
    tpu.vector_store %arg13[%c0_59, %c0_60], %137 {strides = array<i32>} : memref<128x32xf32, #tpu.memory_space<vmem>>, vector<128x32xf32>,
    return
  }
  func.func @transform_0(%arg0: i32) -> (i32, i32) {
    %c0_i32 = arith.constant 0 : i32
    %c0_i32_0 = arith.constant 0 : i32
    return %arg0, %c0_i32 : i32, i32
  }
  func.func @transform_1(%arg0: i32) -> (i32, i32) {
    %c0_i32 = arith.constant 0 : i32
    %c0_i32_0 = arith.constant 0 : i32
    %c0_i32_1 = arith.constant 0 : i32
    return %c0_i32, %c0_i32_0 : i32, i32
  }
  func.func @transform_2(%arg0: i32) -> (i32, i32) {
    %c0_i32 = arith.constant 0 : i32
    %c0_i32_0 = arith.constant 0 : i32
    %c0_i32_1 = arith.constant 0 : i32
    return %c0_i32, %c0_i32_0 : i32, i32
  }
  func.func @transform_3(%arg0: i32) -> (i32, i32) {
    %c0_i32 = arith.constant 0 : i32
    %c0_i32_0 = arith.constant 0 : i32
    %c0_i32_1 = arith.constant 0 : i32
    return %c0_i32, %c0_i32_0 : i32, i32
  }
  func.func @transform_4(%arg0: i32) -> (i32, i32) {
    %c0_i32 = arith.constant 0 : i32
    %c0_i32_0 = arith.constant 0 : i32
    %c0_i32_1 = arith.constant 0 : i32
    return %c0_i32, %c0_i32_0 : i32, i32
  }
  func.func @transform_5(%arg0: i32) -> (i32, i32) {
    %c0_i32 = arith.constant 0 : i32
    %c0_i32_0 = arith.constant 0 : i32
    %c0_i32_1 = arith.constant 0 : i32
    return %c0_i32, %c0_i32_0 : i32, i32
  }
  func.func @transform_6(%arg0: i32) -> (i32, i32) {
    %c0_i32 = arith.constant 0 : i32
    %c0_i32_0 = arith.constant 0 : i32
    %c0_i32_1 = arith.constant 0 : i32
    return %c0_i32, %c0_i32_0 : i32, i32
  }
  func.func @transform_7(%arg0: i32) -> (i32, i32) {
    %c0_i32 = arith.constant 0 : i32
    %c0_i32_0 = arith.constant 0 : i32
    %c0_i32_1 = arith.constant 0 : i32
    return %c0_i32, %c0_i32_0 : i32, i32
  }
  func.func @transform_8(%arg0: i32) -> (i32, i32) {
    %c0_i32 = arith.constant 0 : i32
    %c0_i32_0 = arith.constant 0 : i32
    %c0_i32_1 = arith.constant 0 : i32
    return %c0_i32, %c0_i32_0 : i32, i32
  }
  func.func @transform_9(%arg0: i32) -> (i32, i32) {
    %c0_i32 = arith.constant 0 : i32
    %c0_i32_0 = arith.constant 0 : i32
    %c0_i32_1 = arith.constant 0 : i32
    return %c0_i32, %c0_i32_0 : i32, i32
  }
  func.func @transform_10(%arg0: i32) -> (i32, i32) {
    %c0_i32 = arith.constant 0 : i32
    %c0_i32_0 = arith.constant 0 : i32
    %c0_i32_1 = arith.constant 0 : i32
    return %c0_i32, %c0_i32_0 : i32, i32
  }
  func.func @transform_11(%arg0: i32) -> (i32, i32) {
    %c0_i32 = arith.constant 0 : i32
    %c0_i32_0 = arith.constant 0 : i32
    %c0_i32_1 = arith.constant 0 : i32
    return %c0_i32, %c0_i32_0 : i32, i32
  }
  func.func @transform_12(%arg0: i32) -> (i32, i32) {
    %c0_i32 = arith.constant 0 : i32
    %c0_i32_0 = arith.constant 0 : i32
    return %arg0, %c0_i32 : i32, i32
  }
}

</mosaic_0001>

<bundles_post_ra>
// kernel: block_forward.1
= control target key start
LH: loop header
LB: loop body
LE: loop exit
PB: predicated region body
PF: predicated region fallthrough
CT: control target
= control target key end

     0   :  { %17 = vsyncpa [#allocation3], 0  ;;  %s9029_s0 = inlined_call_operand.vmem [shape: f32[128,32], index: 0, kind: input, shape index: {}]   ;;  %s9030_s1 = inlined_call_operand.hbm [shape: f32[128,128], index: 1, kind: input, shape index: {}]   ;;  %s9031_s2 = inlined_call_operand.vmem [shape: f32[1,32], index: 2, kind: input, shape index: {}]   ;;  %s9032_s3 = inlined_call_operand.vmem [shape: f32[1,32], index: 3, kind: input, shape index: {}]   ;;  %s9033_s4 = inlined_call_operand.vmem [shape: f32[32,96], index: 4, kind: input, shape index: {}]   ;;  %s9034_s5 = inlined_call_operand.hbm [shape: f32[32,32], index: 5, kind: input, shape index: {}]   ;;  %s9035_s6 = inlined_call_operand.vmem [shape: f32[1,32], index: 6, kind: input, shape index: {}]   ;;  %s9036_s7 = inlined_call_operand.vmem [shape: f32[1,32], index: 7, kind: input, shape index: {}]   ;;  %s9037_s8 = inlined_call_operand.hbm [shape: f32[32,128], index: 8, kind: input, shape index: {}]   ;;  %s9038_s9 = inlined_call_operand.vmem [shape: f32[1,128], index: 9, kind: input, shape index: {}]   ;;  %s9039_s10 = inlined_call_operand.vmem [shape: f32[128,32], index: 10, kind: input, shape index: {}]   ;;  %s9040_s11 = inlined_call_operand.hbm [shape: f32[1,32], index: 11, kind: input, shape index: {}]   ;;  %s9041_s12 = inlined_call_operand.hbm [shape: f32[128,32], index: 12, kind: output, shape index: {}]  }
   0x1   :  { %18 = vsyncpa [#allocation6], 0 }
   0x2   :  { %19 = vsyncpa [#allocation9], 0 }
   0x3   :  { %20 = vsyncpa [#allocation4], 0  ;;  %s6807_s21 = smov [#allocation5]   ;;  %s6808_s23 = smov [#allocation2]  }
   0x4   :  { %s46_s22 = sshll.u32 %s6807_s21, 4  ;;  %s28_s24 = sshll.u32 %s6808_s23, 4  ;;  %s47_s22 = int_to_ptr.vmem [resolvable:$true] %s46_s22  ;;  %s6894_s24 = int_to_ptr.vmem [resolvable:$true] %s28_s24 }
   0x5   :  { %s6689_s27 = scalar_lea.hbm %s9034_s5, 512 }
   0x6   :  { %p6690_p0 = scmp.ne.s32.totalorder %s9034_s5, %s6689_s27  ;;  %p6693_p1 = scmp.lt.u32.totalorder %s6689_s27, %s9034_s5 }
   0x8   :  { %p6695_p2 = pnand %p6693_p1, %p6690_p0 }
   0xa   :  { %6698 = shalt.err (!%p6695_p2)
}
   0xb   :  { %s6699_s14 = scalar_lea.vmem %s47_s22, 512  ;;  %p6704_p4 = scmp.lt.s32.totalorder %s47_s22, %s47_s22 }
   0xc   :  { %p6700_p3 = scmp.ne.s32.totalorder %s47_s22, %s6699_s14  ;;  %p6705_p5 = scmp.lt.s32.totalorder %s6699_s14, %s6699_s14 }
   0xe   :  { %p6706_p6 = por %p6705_p5, %p6704_p4 }
  0x10   :  { %p6707_p7 = pnand %p6706_p6, %p6700_p3 }
  0x12   :  { %6710 = shalt.err (!%p6707_p7)
}
  0x13   :  { %s6809_s15 = smov 128   ;;  %s6810_s16 = smov 8  }
  0x14   :  { %52 = dma.hbm_to_vmem [thread:$0]  %s9034_s5, 512, %s47_s22, [#allocation6], %s6809_s15, %s6809_s15, %s6810_s16  }
  0x15   :  { %s6711_s21 = scalar_lea.hbm %s9030_s1, 2048 }
  0x16   :  { %p6712_p8 = scmp.ne.s32.totalorder %s9030_s1, %s6711_s21  ;;  %p6715_p9 = scmp.lt.u32.totalorder %s6711_s21, %s9030_s1 }
  0x18   :  { %p6717_p10 = pnand %p6715_p9, %p6712_p8 }
  0x1a   :  { %6720 = shalt.err (!%p6717_p10)
}
  0x1b   :  { %s6721_s28 = scalar_lea.vmem %s6894_s24, 2048  ;;  %p6726_p12 = scmp.lt.s32.totalorder %s6894_s24, %s6894_s24 }
  0x1c   :  { %p6722_p11 = scmp.ne.s32.totalorder %s6894_s24, %s6721_s28  ;;  %p6727_p13 = scmp.lt.s32.totalorder %s6721_s28, %s6721_s28 }
  0x1e   :  { %p6728_p0 = por %p6727_p13, %p6726_p12 }
  0x20   :  { %p6729_p1 = pnand %p6728_p0, %p6722_p11 }
  0x22   :  { %6732 = shalt.err (!%p6729_p1)
}
  0x23   :  { %34 = dma.hbm_to_vmem [thread:$0]  %s9030_s1, 2048, %s6894_s24, [#allocation3], %s6809_s15, %s6809_s15, %s6810_s16  }
  0x24   :  { %s6811_s29 = smov [#allocation7]   ;;  %s6812_s13 = smov [#allocation8]  }
  0x25   :  { %s62_s30 = sshll.u32 %s6811_s29, 4  ;;  %s79_s14 = sshll.u32 %s6812_s13, 4  ;;  %s63_s30 = int_to_ptr.vmem [resolvable:$true] %s62_s30  ;;  %s80_s14 = int_to_ptr.vmem [resolvable:$true] %s79_s14 }
  0x26   :  { %s6733_s19 = scalar_lea.hbm %s9037_s8, 512 }
  0x27   :  { %p6734_p2 = scmp.ne.s32.totalorder %s9037_s8, %s6733_s19  ;;  %p6737_p3 = scmp.lt.u32.totalorder %s6733_s19, %s9037_s8 }
  0x29   :  { %p6739_p4 = pnand %p6737_p3, %p6734_p2 }
  0x2b   :  { %6742 = shalt.err (!%p6739_p4)
}
  0x2c   :  { %s6743_s1 = scalar_lea.vmem %s63_s30, 512  ;;  %p6748_p6 = scmp.lt.s32.totalorder %s63_s30, %s63_s30 }
  0x2d   :  { %p6744_p5 = scmp.ne.s32.totalorder %s63_s30, %s6743_s1  ;;  %p6749_p7 = scmp.lt.s32.totalorder %s6743_s1, %s6743_s1 }
  0x2f   :  { %p6750_p8 = por %p6749_p7, %p6748_p6 }
  0x31   :  { %p6751_p9 = pnand %p6750_p8, %p6744_p5 }
  0x33   :  { %6754 = shalt.err (!%p6751_p9)
}
  0x34   :  { %68 = dma.hbm_to_vmem [thread:$0]  %s9037_s8, 512, %s63_s30, [#allocation6], %s6809_s15, %s6809_s15, %s6810_s16  }
  0x35   :  { %s6755_s5 = scalar_lea.hbm %s9040_s11, 16 }
  0x36   :  { %p6756_p10 = scmp.ne.s32.totalorder %s9040_s11, %s6755_s5  ;;  %p6759_p11 = scmp.lt.u32.totalorder %s6755_s5, %s9040_s11 }
  0x38   :  { %p6761_p12 = pnand %p6759_p11, %p6756_p10 }
  0x3a   :  { %6764 = shalt.err (!%p6761_p12)
}
  0x3b   :  { %s6765_s18 = scalar_lea.vmem %s80_s14, 16  ;;  %s6769_s19 = scalar_lea.vmem %s80_s14, 32 }
  0x3c   :  { %p6766_p13 = scmp.ne.s32.totalorder %s80_s14, %s6765_s18  ;;  %p6770_p0 = scmp.lt.s32.totalorder %s80_s14, %s80_s14 }
  0x3d   :  { %p6771_p1 = scmp.lt.s32.totalorder %s6769_s19, %s6765_s18 }
  0x3f   :  { %p6772_p2 = por %p6771_p1, %p6770_p0 }
  0x41   :  { %p6773_p3 = pnand %p6772_p2, %p6766_p13 }
  0x43   :  { %6776 = shalt.err (!%p6773_p3)
}
  0x44   :  { %82 = dma.hbm_to_vmem [thread:$0]  %s9040_s11, 16, %s80_s14, [#allocation9]  }
  0x45   :  { %6799 = dma.done.wait [#allocation3], 2048  }
  0x46   :  { %6800 = vsyncadd [#allocation3], 4294965248 }
  0x47   :  { %6801 = dma.done.wait [#allocation6], 1024  }
  0x48   :  { %6802 = vsyncadd [#allocation6], 4294966272 }
  0x49   :  { %6803 = dma.done.wait [#allocation9], 16  }
  0x4a   :  { %6804 = vsyncadd [#allocation9], 4294967280  ;;  %vm113_vm0 = vcmask 261120   ;;  %v95_v0 = vld [vmem:[%s9029_s0] sm:$0xff]  ;;  %v97_v1 = vld [vmem:[%s9029_s0 + $0x10] sm:$0xff]  ;;  %vm900_vm1 = vcmask 64512  }
  0x4b   :  { %v96_v2 = vld [vmem:[%s9029_s0 + $0x8] sm:$0xff]  ;;  %v114_v3 = vsel %vm113_vm0, %v95_v0, 0.0  ;;  %v120_v4 = vsel %vm113_vm0, %v97_v1, 0.0  ;;  %v98_v5 = vld [vmem:[%s9029_s0 + $0x18] sm:$0xff]  ;;  %v99_v8 = vld [vmem:[%s9029_s0 + $0x20] sm:$0xff]  ;;  %s6817_s25 = smov 88  }
  0x4c   :  { %115 = vadd.xlane.f32.xlu0 %v114_v3  ;;  %121 = vadd.xlane.f32.xlu1 %v120_v4  ;;  %v117_v6 = vsel %vm113_vm0, %v96_v2, 0.0  ;;  %v123_v7 = vsel %vm113_vm0, %v98_v5, 0.0  ;;  %v100_v9 = vld [vmem:[%s9029_s0 + $0x28] sm:$0xff]  ;;  %v126_v10 = vsel %vm113_vm0, %v99_v8, 0.0  ;;  %v6985_v12 = vld [vmem:[%s9029_s0 + $0x30] sm:$0xff]  ;;  %v6990_v13 = vld [vmem:[%s9029_s0 + $0x38] sm:$0xff] }
  0x4d   :  { %v129_v11 = vsel %vm113_vm0, %v100_v9, 0.0  ;;  %v132_v14 = vsel %vm113_vm0, %v6985_v12, 0.0  ;;  %v135_v15 = vsel %vm113_vm0, %v6990_v13, 0.0  ;;  %v6999_v16 = vld [vmem:[%s9029_s0 + $0x40] sm:$0xff]  ;;  %v7004_v17 = vld [vmem:[%s9029_s0 + $0x48] sm:$0xff]  ;;  %v7013_v20 = vld [vmem:[%s9029_s0 + $0x50] sm:$0xff] }
  0x4e   :  { %v138_v18 = vsel %vm113_vm0, %v6999_v16, 0.0  ;;  %v141_v19 = vsel %vm113_vm0, %v7004_v17, 0.0  ;;  %v7018_v21 = vld [vmem:[%s9029_s0 + $0x58] sm:$0xff]  ;;  %v144_v22 = vsel %vm113_vm0, %v7013_v20, 0.0  ;;  %v7027_v24 = vld [vmem:[%s9029_s0 + $0x60] sm:$0xff]  ;;  %v7032_v25 = vld [vmem:[%s9029_s0 + $0x68] sm:$0xff] }
  0x4f   :  { %v147_v23 = vsel %vm113_vm0, %v7018_v21, 0.0  ;;  %v150_v26 = vsel %vm113_vm0, %v7027_v24, 0.0  ;;  %v153_v27 = vsel %vm113_vm0, %v7032_v25, 0.0  ;;  %v7041_v28 = vld [vmem:[%s9029_s0 + $0x70] sm:$0xff]  ;;  %v7046_v29 = vld [vmem:[%s9029_s0 + $0x78] sm:$0xff]  ;;  %vm7354_vm2 = vmpackc.low %vm900_vm1, %vm900_vm1  ;;  %s6818_s1 = smov 120  }
  0x50   :  { %118 = vadd.xlane.f32.xlu0 %v117_v6  ;;  %124 = vadd.xlane.f32.xlu1 %v123_v7  ;;  %v156_v30 = vsel %vm113_vm0, %v7041_v28, 0.0  ;;  %v159_v31 = vsel %vm113_vm0, %v7046_v29, 0.0  ;;  %s6819_s24 = smov 56   ;;  %s6820_s11 = smov 80   ;;  %vm3549_vm3 = vcmask 130048   ;;  %vm3566_vm4 = vcmask 195584  }
  0x51   :  { %s6821_s14 = smov 112   ;;  %s6822_s26 = smov 48  }
  0x52   :  { %s6823_s27 = smov 72   ;;  %s6824_s28 = smov 104  }
  0x53   :  { %s6825_s5 = smov 40   ;;  %s6826_s22 = smov 16  }
  0x54   :  { %127 = vadd.xlane.f32.xlu0 %v126_v10  ;;  %130 = vadd.xlane.f32.xlu1 %v129_v11  ;;  %s6827_s29 = smov 24  }
  0x58   :  { %133 = vadd.xlane.f32.xlu0 %v132_v14  ;;  %136 = vadd.xlane.f32.xlu1 %v135_v15 }
  0x5c   :  { %139 = vadd.xlane.f32.xlu0 %v138_v18  ;;  %142 = vadd.xlane.f32.xlu1 %v141_v19 }
  0x60   :  { %145 = vadd.xlane.f32.xlu0 %v144_v22  ;;  %148 = vadd.xlane.f32.xlu1 %v147_v23 }
  0x64   :  { %151 = vadd.xlane.f32.xlu0 %v150_v26  ;;  %154 = vadd.xlane.f32.xlu1 %v153_v27 }
  0x68   :  { %157 = vadd.xlane.f32.xlu0 %v156_v30  ;;  %160 = vadd.xlane.f32.xlu1 %v159_v31 }
  0xd9   :  { %v116_v32 = vpop.xlane.xlu0 %115  ;;  %v122_v33 = vpop.xlane.xlu1 %121 }
  0xda   :  { %v163_v34 = vmul.f32 0.03125, %v116_v32  ;;  %v165_v35 = vmul.f32 0.03125, %v122_v33 }
  0xdc   :  { %v7052_v36 = vsub.f32 %v95_v0, %v163_v34  ;;  %v7054_v37 = vsub.f32 %v97_v1, %v165_v35 }
  0xdd   :  { %v119_v38 = vpop.xlane.xlu0 %118  ;;  %v125_v39 = vpop.xlane.xlu1 %124 }
  0xde   :  { %v164_v40 = vmul.f32 0.03125, %v119_v38  ;;  %v166_v41 = vmul.f32 0.03125, %v125_v39  ;;  %v195_v42 = vmul.f32 %v7052_v36, %v7052_v36  ;;  %v197_v43 = vmul.f32 %v7054_v37, %v7054_v37 }
  0xe0   :  { %v7060_v44 = vsub.f32 %v96_v2, %v164_v40  ;;  %v7062_v45 = vsub.f32 %v98_v5, %v166_v41  ;;  %v211_v46 = vsel %vm113_vm0, %v195_v42, 0.0  ;;  %v217_v49 = vsel %vm113_vm0, %v197_v43, 0.0 }
  0xe1   :  { %212 = vadd.xlane.f32.xlu0 %v211_v46  ;;  %v128_v47 = vpop.xlane.xlu0 %127  ;;  %v131_v48 = vpop.xlane.xlu1 %130 }
  0xe2   :  { %v167_v50 = vmul.f32 0.03125, %v128_v47  ;;  %v168_v51 = vmul.f32 0.03125, %v131_v48  ;;  %v196_v52 = vmul.f32 %v7060_v44, %v7060_v44  ;;  %v198_v53 = vmul.f32 %v7062_v45, %v7062_v45 }
  0xe4   :  { %v7070_v54 = vsub.f32 %v99_v8, %v167_v50  ;;  %v7072_v55 = vsub.f32 %v100_v9, %v168_v51  ;;  %v214_v56 = vsel %vm113_vm0, %v196_v52, 0.0  ;;  %v220_v59 = vsel %vm113_vm0, %v198_v53, 0.0  ;;  %v368_v53 = vld [vmem:[%s9033_s4 + $0x8] sm:$0xff] }
  0xe5   :  { %218 = vadd.xlane.f32.xlu0 %v217_v49  ;;  %215 = vadd.xlane.f32.xlu1 %v214_v56  ;;  %v134_v57 = vpop.xlane.xlu0 %133  ;;  %v137_v58 = vpop.xlane.xlu1 %136 }
  0xe6   :  { %v169_v60 = vmul.f32 0.03125, %v134_v57  ;;  %v170_v61 = vmul.f32 0.03125, %v137_v58  ;;  %v199_v62 = vmul.f32 %v7070_v54, %v7070_v54  ;;  %v200_v63 = vmul.f32 %v7072_v55, %v7072_v55  ;;  %v369_v57 = vld [vmem:[%s9033_s4 + $0x10] sm:$0xff]  ;;  %v370_v58 = vld [vmem:[%s9033_s4 + $0x18] sm:$0xff] }
  0xe8   :  { %v7081_v0 = vsub.f32 %v6985_v12, %v169_v60  ;;  %v7084_v1 = vsub.f32 %v6990_v13, %v170_v61  ;;  %v223_v2 = vsel %vm113_vm0, %v199_v62, 0.0  ;;  %v226_v5 = vsel %vm113_vm0, %v200_v63, 0.0 }
  0xe9   :  { %221 = vadd.xlane.f32.xlu1 %v220_v59  ;;  %224 = vadd.xlane.f32.xlu0 %v223_v2  ;;  %v140_v3 = vpop.xlane.xlu0 %139  ;;  %v143_v4 = vpop.xlane.xlu1 %142  ;;  %v5623_v59 = vpack.c.bf16 %v370_v58, %v369_v57 }
  0xea   :  { %v171_v6 = vmul.f32 0.03125, %v140_v3  ;;  %v172_v7 = vmul.f32 0.03125, %v143_v4  ;;  %v201_v8 = vmul.f32 %v7081_v0, %v7081_v0  ;;  %v202_v9 = vmul.f32 %v7084_v1, %v7084_v1 }
  0xec   :  { %v7093_v10 = vsub.f32 %v6999_v16, %v171_v6  ;;  %v7096_v11 = vsub.f32 %v7004_v17, %v172_v7  ;;  %v229_v12 = vsel %vm113_vm0, %v201_v8, 0.0  ;;  %v232_v15 = vsel %vm113_vm0, %v202_v9, 0.0 }
  0xed   :  { %227 = vadd.xlane.f32.xlu1 %v226_v5  ;;  %230 = vadd.xlane.f32.xlu0 %v229_v12  ;;  %v146_v13 = vpop.xlane.xlu0 %145  ;;  %v149_v14 = vpop.xlane.xlu1 %148 }
  0xee   :  { %v173_v18 = vmul.f32 0.03125, %v146_v13  ;;  %v174_v19 = vmul.f32 0.03125, %v149_v14  ;;  %v203_v22 = vmul.f32 %v7093_v10, %v7093_v10  ;;  %v204_v16 = vmul.f32 %v7096_v11, %v7096_v11 }
  0xf0   :  { %v7105_v23 = vsub.f32 %v7013_v20, %v173_v18  ;;  %v7108_v17 = vsub.f32 %v7018_v21, %v174_v19  ;;  %v235_v26 = vsel %vm113_vm0, %v203_v22, 0.0  ;;  %v238_v31 = vsel %vm113_vm0, %v204_v16, 0.0 }
  0xf1   :  { %233 = vadd.xlane.f32.xlu1 %v232_v15  ;;  %236 = vadd.xlane.f32.xlu0 %v235_v26  ;;  %v152_v27 = vpop.xlane.xlu0 %151  ;;  %v155_v30 = vpop.xlane.xlu1 %154 }
  0xf2   :  { %v175_v32 = vmul.f32 0.03125, %v152_v27  ;;  %v176_v33 = vmul.f32 0.03125, %v155_v30  ;;  %v205_v34 = vmul.f32 %v7105_v23, %v7105_v23  ;;  %v206_v20 = vmul.f32 %v7108_v17, %v7108_v17  ;;  %v7157_v30 = vld [vmem:[%s9031_s2] ss:$0 sm:$0xff]  ;;  %s6815_s2 = smov 96  }
  0xf4   :  { %v7117_v35 = vsub.f32 %v7027_v24, %v175_v32  ;;  %v7120_v21 = vsub.f32 %v7032_v25, %v176_v33  ;;  %v241_v38 = vsel %vm113_vm0, %v205_v34, 0.0  ;;  %v244_v41 = vsel %vm113_vm0, %v206_v20, 0.0 }
  0xf5   :  { %239 = vadd.xlane.f32.xlu1 %v238_v31  ;;  %242 = vadd.xlane.f32.xlu0 %v241_v38  ;;  %v158_v39 = vpop.xlane.xlu0 %157  ;;  %v161_v40 = vpop.xlane.xlu1 %160  ;;  %v7163_v38 = vld [vmem:[%s9032_s3] ss:$0 sm:$0xff]  ;;  %s6816_s3 = smov 64  }
  0xf6   :  { %v177_v42 = vmul.f32 0.03125, %v158_v39  ;;  %v178_v43 = vmul.f32 0.03125, %v161_v40  ;;  %v207_v46 = vmul.f32 %v7117_v35, %v7117_v35  ;;  %v208_v24 = vmul.f32 %v7120_v21, %v7120_v21 }
  0xf8   :  { %v7129_v47 = vsub.f32 %v7041_v28, %v177_v42  ;;  %v7132_v25 = vsub.f32 %v7046_v29, %v178_v43  ;;  %v247_v48 = vsel %vm113_vm0, %v207_v46, 0.0  ;;  %v250_v49 = vsel %vm113_vm0, %v208_v24, 0.0  ;;  %v367_v29 = vld [vmem:[%s9033_s4] sm:$0xff] }
  0xf9   :  { %245 = vadd.xlane.f32.xlu1 %v244_v41  ;;  %248 = vadd.xlane.f32.xlu0 %v247_v48  ;;  %v5619_v56 = vpack.c.bf16 %v368_v53, %v367_v29 }
  0xfa   :  { %v209_v50 = vmul.f32 %v7129_v47, %v7129_v47  ;;  %v210_v51 = vmul.f32 %v7132_v25, %v7132_v25 }
  0xfb   :  { %5620 = vmatprep.subr.bf16.mxu0 %v5619_v56 }
  0xfc   :  { %v253_v52 = vsel %vm113_vm0, %v209_v50, 0.0  ;;  %v256_v28 = vsel %vm113_vm0, %v210_v51, 0.0  ;;  %5622 = vmatpush3.bf16.msra.mxu0 %v5619_v56 }
  0xfd   :  { %251 = vadd.xlane.f32.xlu1 %v250_v49  ;;  %254 = vadd.xlane.f32.xlu0 %v253_v52 }
  0xfe   :  { %5624 = vmatprep.subr.bf16.mxu0 %v5623_v59 }
 0x100   :  { %5626 = vmatpush3.bf16.msra.mxu0 %v5623_v59 }
 0x101   :  { %257 = vadd.xlane.f32.xlu1 %v256_v28 }
 0x16e   :  { %v213_v60 = vpop.xlane.xlu0 %212 }
 0x16f   :  { %v259_v61 = vmul.f32 0.03125, %v213_v60 }
 0x171   :  { %v275_v62 = vadd.f32 1e-05, %v259_v61 }
 0x172   :  { %v216_v63 = vpop.xlane.xlu1 %215  ;;  %v219_v2 = vpop.xlane.xlu0 %218 }
 0x173   :  { %6353 = vrsqrt.f32 %v275_v62  ;;  %v260_v3 = vmul.f32 0.03125, %v216_v63  ;;  %v261_v4 = vmul.f32 0.03125, %v219_v2 }
 0x175   :  { %v276_v5 = vadd.f32 1e-05, %v260_v3  ;;  %v277_v6 = vadd.f32 1e-05, %v261_v4 }
 0x176   :  { %v222_v7 = vpop.xlane.xlu1 %221  ;;  %v225_v8 = vpop.xlane.xlu0 %224 }
 0x177   :  { %6355 = vrsqrt.f32 %v276_v5  ;;  %v262_v9 = vmul.f32 0.03125, %v222_v7  ;;  %v263_v12 = vmul.f32 0.03125, %v225_v8 }
 0x178   :  { %6357 = vrsqrt.f32 %v277_v6 }
 0x179   :  { %v278_v13 = vadd.f32 1e-05, %v262_v9  ;;  %v279_v14 = vadd.f32 1e-05, %v263_v12 }
 0x17a   :  { %v228_v15 = vpop.xlane.xlu1 %227  ;;  %v231_v18 = vpop.xlane.xlu0 %230 }
 0x17b   :  { %6359 = vrsqrt.f32 %v278_v13  ;;  %v264_v19 = vmul.f32 0.03125, %v228_v15  ;;  %v265_v22 = vmul.f32 0.03125, %v231_v18 }
 0x17c   :  { %6361 = vrsqrt.f32 %v279_v14 }
 0x17d   :  { %v6354_v16 = vpop.eup %6353  ;;  %v280_v26 = vadd.f32 1e-05, %v264_v19  ;;  %v281_v27 = vadd.f32 1e-05, %v265_v22 }
 0x17e   :  { %v234_v31 = vpop.xlane.xlu1 %233  ;;  %v237_v32 = vpop.xlane.xlu0 %236  ;;  %v307_v33 = vmul.f32 %v6354_v16, %v7052_v36 }
 0x17f   :  { %6363 = vrsqrt.f32 %v280_v26  ;;  %v266_v34 = vmul.f32 0.03125, %v234_v31  ;;  %v267_v20 = vmul.f32 0.03125, %v237_v32 }
 0x180   :  { %6365 = vrsqrt.f32 %v281_v27  ;;  %v329_v39 = vmul.f32 %v7157_v30, %v307_v33 }
 0x181   :  { %v6356_v40 = vpop.eup %6355  ;;  %v282_v41 = vadd.f32 1e-05, %v266_v34  ;;  %v283_v42 = vadd.f32 1e-05, %v267_v20 }
 0x182   :  { %v6358_v43 = vpop.eup %6357  ;;  %v240_v46 = vpop.xlane.xlu1 %239  ;;  %v351_v48 = vadd.f32 %v7163_v38, %v329_v39  ;;  %v308_v36 = vmul.f32 %v6356_v40, %v7060_v44 }
 0x183   :  { %v243_v24 = vpop.xlane.xlu0 %242  ;;  %6367 = vrsqrt.f32 %v282_v41  ;;  %v268_v49 = vmul.f32 0.03125, %v240_v46  ;;  %v309_v51 = vmul.f32 %v6358_v43, %v7054_v37 }
 0x184   :  { %v269_v50 = vmul.f32 0.03125, %v243_v24  ;;  %6369 = vrsqrt.f32 %v283_v42  ;;  %5027 = vmatprep.mubr.msk.f32.mxu0 %vm113_vm0, %v351_v48  ;;  %v330_v52 = vmul.f32 %v7157_v30, %v308_v36 }
 0x185   :  { %v6360_v28 = vpop.eup %6359  ;;  %v284_v29 = vadd.f32 1e-05, %v268_v49  ;;  %v331_v56 = vmul.f32 %v7157_v30, %v309_v51 }
 0x186   :  { %v285_v53 = vadd.f32 1e-05, %v269_v50  ;;  %v6362_v57 = vpop.eup %6361  ;;  %v246_v58 = vpop.xlane.xlu1 %245  ;;  %v352_v44 = vadd.f32 %v7163_v38, %v330_v52  ;;  %v310_v60 = vmul.f32 %v6360_v28, %v7062_v45 }
 0x187   :  { %v249_v59 = vpop.xlane.xlu0 %248  ;;  %6371 = vrsqrt.f32 %v284_v29  ;;  %v270_v61 = vmul.f32 0.03125, %v246_v58  ;;  %v353_v62 = vadd.f32 %v7163_v38, %v331_v56  ;;  %v311_v2 = vmul.f32 %v6362_v57, %v7070_v54 }
 0x188   :  { %v271_v37 = vmul.f32 0.03125, %v249_v59  ;;  %6373 = vrsqrt.f32 %v285_v53  ;;  %5028 = vmatmul.mubr.msk.f32.vlgmr.msra.gmra.mrb[0].mxu0 %vm113_vm0, %v352_v44  ;;  %v332_v63 = vmul.f32 %v7157_v30, %v310_v60 }
 0x189   :  { %v6364_v3 = vpop.eup %6363  ;;  %v286_v4 = vadd.f32 1e-05, %v270_v61  ;;  %5030 = vmatprep.mubr.msk.f32.mxu0 %vm113_vm0, %v353_v62  ;;  %v333_v9 = vmul.f32 %v7157_v30, %v311_v2  ;;  %v6813_v62 = vmov 1983009808   ;;  %v569_v2 = vlaneseq }
 0x18a   :  { %v287_v5 = vadd.f32 1e-05, %v271_v37  ;;  %v6366_v6 = vpop.eup %6365  ;;  %v252_v7 = vpop.xlane.xlu1 %251  ;;  %v354_v8 = vadd.f32 %v7163_v38, %v332_v63  ;;  %v312_v12 = vmul.f32 %v6364_v3, %v7072_v55  ;;  %v567_v63 = vunpack.c.l.s4 %v6813_v62 }
 0x18b   :  { %v255_v45 = vpop.xlane.xlu0 %254  ;;  %6375 = vrsqrt.f32 %v286_v4  ;;  %v272_v13 = vmul.f32 0.03125, %v252_v7  ;;  %v313_v15 = vmul.f32 %v6366_v6, %v7081_v0  ;;  %v355_v54 = vadd.f32 %v7163_v38, %v333_v9 }
 0x18c   :  { %v273_v14 = vmul.f32 0.03125, %v255_v45  ;;  %6377 = vrsqrt.f32 %v287_v5  ;;  %5031 = vmatmul.mubr.msk.f32.gmra.mrb[2].mxu0 %vm113_vm0, %v354_v8  ;;  %v334_v18 = vmul.f32 %v7157_v30, %v312_v12  ;;  %v568_v3 = vunpack.c.0.s8 %v567_v63 }
 0x18d   :  { %v6368_v19 = vpop.eup %6367  ;;  %v288_v22 = vadd.f32 1e-05, %v272_v13  ;;  %v335_v26 = vmul.f32 %v7157_v30, %v313_v15  ;;  %5033 = vmatprep.mubr.msk.f32.mxu0 %vm113_vm0, %v355_v54  ;;  %v570_v4 = vshrl.u32 %v569_v2, 7  ;;  %v6814_v5 = vmov 1934713408  }
 0x18e   :  { %v289_v16 = vadd.f32 1e-05, %v273_v14  ;;  %v6370_v27 = vpop.eup %6369  ;;  %v258_v55 = vpop.xlane.xlu1 %257  ;;  %v356_v31 = vadd.f32 %v7163_v38, %v334_v18  ;;  %v314_v0 = vmul.f32 %v6368_v19, %v7084_v1  ;;  %v631_v6 = vunpack.c.l.s4 %v6814_v5 }
 0x18f   :  { %6379 = vrsqrt.f32 %v288_v22  ;;  %v274_v32 = vmul.f32 0.03125, %v258_v55  ;;  %v357_v33 = vadd.f32 %v7163_v38, %v335_v26  ;;  %v315_v34 = vmul.f32 %v6370_v27, %v7093_v10 }
 0x190   :  { %6381 = vrsqrt.f32 %v289_v16  ;;  %5034 = vmatmul.mubr.msk.f32.gmra.mrb[4].mxu0 %vm113_vm0, %v356_v31  ;;  %v336_v20 = vmul.f32 %v7157_v30, %v314_v0  ;;  %v7228_v45 = vsub.s32 %v568_v3, %v570_v4  ;;  %v632_v8 = vunpack.c.0.s8 %v631_v6 }
 0x191   :  { %v6372_v39 = vpop.eup %6371  ;;  %v290_v40 = vadd.f32 1e-05, %v274_v32  ;;  %5036 = vmatprep.mubr.msk.f32.mxu0 %vm113_vm0, %v357_v33  ;;  %v337_v41 = vmul.f32 %v7157_v30, %v315_v34 }
 0x192   :  { %v6374_v42 = vpop.eup %6373  ;;  %v358_v1 = vadd.f32 %v7163_v38, %v336_v20  ;;  %v316_v43 = vmul.f32 %v6372_v39, %v7096_v11  ;;  %v7234_v13 = vsub.s32 %v632_v8, %v570_v4 }
 0x193   :  { %6383 = vrsqrt.f32 %v290_v40  ;;  %v359_v46 = vadd.f32 %v7163_v38, %v337_v41  ;;  %v317_v10 = vmul.f32 %v6374_v42, %v7105_v23 }
 0x194   :  { %5037 = vmatmul.mubr.msk.f32.gmra.mrb[6].mxu0 %vm113_vm0, %v358_v1  ;;  %v338_v24 = vmul.f32 %v7157_v30, %v316_v43 }
 0x195   :  { %v6376_v48 = vpop.eup %6375  ;;  %5039 = vmatprep.mubr.msk.f32.mxu0 %vm113_vm0, %v359_v46  ;;  %v339_v36 = vmul.f32 %v7157_v30, %v317_v10 }
 0x196   :  { %v6378_v49 = vpop.eup %6377  ;;  %v360_v50 = vadd.f32 %v7163_v38, %v338_v24  ;;  %v318_v51 = vmul.f32 %v6376_v48, %v7108_v17 }
 0x197   :  { %v361_v11 = vadd.f32 %v7163_v38, %v339_v36  ;;  %v319_v52 = vmul.f32 %v6378_v49, %v7117_v35 }
 0x198   :  { %5040 = vmatmul.mubr.msk.f32.gmra.mrb[8].mxu0 %vm113_vm0, %v360_v50  ;;  %v340_v23 = vmul.f32 %v7157_v30, %v318_v51 }
 0x199   :  { %v6380_v28 = vpop.eup %6379  ;;  %5042 = vmatprep.mubr.msk.f32.mxu0 %vm113_vm0, %v361_v11  ;;  %v341_v29 = vmul.f32 %v7157_v30, %v319_v52 }
 0x19a   :  { %v6382_v53 = vpop.eup %6381  ;;  %v362_v56 = vadd.f32 %v7163_v38, %v340_v23  ;;  %v320_v57 = vmul.f32 %v6380_v28, %v7120_v21 }
 0x19b   :  { %v363_v17 = vadd.f32 %v7163_v38, %v341_v29  ;;  %v321_v58 = vmul.f32 %v6382_v53, %v7129_v47 }
 0x19c   :  { %5043 = vmatmul.mubr.msk.f32.gmra.mrb[10].mxu0 %vm113_vm0, %v362_v56  ;;  %v342_v35 = vmul.f32 %v7157_v30, %v320_v57 }
 0x19d   :  { %v6384_v59 = vpop.eup %6383  ;;  %5045 = vmatprep.mubr.msk.f32.mxu0 %vm113_vm0, %v363_v17  ;;  %v343_v44 = vmul.f32 %v7157_v30, %v321_v58 }
 0x19e   :  { %v364_v60 = vadd.f32 %v7163_v38, %v342_v35  ;;  %v322_v61 = vmul.f32 %v6384_v59, %v7132_v25 }
 0x19f   :  { %v365_v37 = vadd.f32 %v7163_v38, %v343_v44 }
 0x1a0   :  { %5046 = vmatmul.mubr.msk.f32.gmra.mrb[12].mxu0 %vm113_vm0, %v364_v60  ;;  %v344_v21 = vmul.f32 %v7157_v30, %v322_v61 }
 0x1a1   :  { %5048 = vmatprep.mubr.msk.f32.mxu0 %vm113_vm0, %v365_v37 }
 0x1a2   :  { %v366_v47 = vadd.f32 %v7163_v38, %v344_v21 }
 0x1a4   :  { %5049 = vmatmul.mubr.msk.f32.gmra.mrb[14].mxu0 %vm113_vm0, %v366_v47 }
 0x25b   :  { %v5029_v25 = vpop.f32.mrb[0].mxu0 }
 0x25c   :  { %v485_v7 = vpop.f32.mrb[1].mxu0 }
 0x25d   :  { %v7230_v9 = vpack.i.bf16 %v5029_v25, %v485_v7 }
 0x25f   :  { %6034 = vrot.lane.b32.xlu0 %v7230_v9, %s6815_s2  ;;  %v5032_v30 = vpop.f32.mrb[2].mxu0 }
 0x260   :  { %v495_v38 = vpop.f32.mrb[3].mxu0  ;;  %v580_v12 = vcombine.low %v5029_v25, %v5032_v30  ;;  %v581_v14 = vcombine.high %v5029_v25, %v5032_v30 }
 0x261   :  { %v7236_v15 = vpack.i.bf16 %v5032_v30, %v495_v38  ;;  %v564_v54 = vcombine.low %v485_v7, %v495_v38  ;;  %v565_v19 = vcombine.high %v485_v7, %v495_v38 }
 0x262   :  { %v588_v18 = vrot.slane %v580_v12, %v7228_v45  ;;  %v595_v22 = vrot.slane %v581_v14, %v7228_v45 }
 0x263   :  { %6039 = vrot.lane.b32.xlu1 %v7236_v15, %s6815_s2  ;;  %v5035_v16 = vpop.f32.mrb[4].mxu0  ;;  %v572_v26 = vrot.slane %v564_v54, %v7228_v45  ;;  %v579_v55 = vrot.slane %v565_v19, %v7228_v45 }
 0x264   :  { %v505_v27 = vpop.f32.mrb[5].mxu0 }
 0x265   :  { %v7244_v31 = vpack.i.bf16 %v5035_v16, %v505_v27  ;;  %v628_v0 = vcombine.low %v572_v26, %v588_v18  ;;  %v629_v32 = vcombine.high %v572_v26, %v588_v18  ;;  %v644_v33 = vcombine.low %v579_v55, %v595_v22 }
 0x266   :  { %v645_v34 = vcombine.high %v579_v55, %v595_v22 }
 0x267   :  { %6044 = vrot.lane.b32.xlu1 %v7244_v31, %s6815_s2  ;;  %v5038_v20 = vpop.f32.mrb[6].mxu0  ;;  %v636_v39 = vrot.slane %v628_v0, %v7234_v13  ;;  %v643_v42 = vrot.slane %v629_v32, %v7234_v13  ;;  %v652_v43 = vrot.slane %v644_v33, %v7234_v13 }
 0x268   :  { %v515_v40 = vpop.f32.mrb[7].mxu0  ;;  %v612_v41 = vcombine.low %v5035_v16, %v5038_v20  ;;  %v613_v1 = vcombine.high %v5035_v16, %v5038_v20  ;;  %v659_v49 = vrot.slane %v645_v34, %v7234_v13 }
 0x269   :  { %v7251_v46 = vpack.i.bf16 %v5038_v20, %v515_v40  ;;  %v596_v10 = vcombine.low %v505_v27, %v515_v40  ;;  %v597_v24 = vcombine.high %v505_v27, %v515_v40 }
 0x26a   :  { %v620_v48 = vrot.slane %v612_v41, %v7228_v45  ;;  %v627_v36 = vrot.slane %v613_v1, %v7228_v45 }
 0x26b   :  { %6049 = vrot.lane.b32.xlu1 %v7251_v46, %s6815_s2  ;;  %v5041_v50 = vpop.f32.mrb[8].mxu0  ;;  %v604_v51 = vrot.slane %v596_v10, %v7228_v45  ;;  %v611_v11 = vrot.slane %v597_v24, %v7228_v45 }
 0x26c   :  { %v525_v52 = vpop.f32.mrb[9].mxu0 }
 0x26d   :  { %v7260_v23 = vpack.i.bf16 %v5041_v50, %v525_v52  ;;  %v660_v28 = vcombine.low %v604_v51, %v620_v48  ;;  %v661_v29 = vcombine.high %v604_v51, %v620_v48  ;;  %v676_v53 = vcombine.low %v611_v11, %v627_v36 }
 0x26e   :  { %v677_v56 = vcombine.high %v611_v11, %v627_v36 }
 0x26f   :  { %6054 = vrot.lane.b32.xlu0 %v7260_v23, %s6815_s2  ;;  %v5044_v57 = vpop.f32.mrb[10].mxu0  ;;  %v668_v17 = vrot.slane %v660_v28, %v7234_v13  ;;  %v675_v58 = vrot.slane %v661_v29, %v7234_v13  ;;  %v684_v59 = vrot.slane %v676_v53, %v7234_v13 }
 0x270   :  { %v535_v35 = vpop.f32.mrb[11].mxu0  ;;  %v691_v44 = vrot.slane %v677_v56, %v7234_v13  ;;  %v716_v60 = vcombine.low %v5041_v50, %v5044_v57  ;;  %v717_v61 = vcombine.high %v5041_v50, %v5044_v57 }
 0x271   :  { %v7268_v37 = vcombine.low %v636_v39, %v668_v17  ;;  %v7270_v21 = vpack.i.bf16 %v5044_v57, %v535_v35  ;;  %v7272_v47 = vcombine.high %v636_v39, %v668_v17  ;;  %v7274_v62 = vcombine.low %v643_v42, %v675_v58 }
 0x272   :  { %v7276_v63 = vcombine.high %v643_v42, %v675_v58  ;;  %v7278_v2 = vcombine.low %v652_v43, %v684_v59  ;;  %v7280_v3 = vcombine.high %v652_v43, %v684_v59  ;;  %v7286_v5 = vcombine.low %v659_v49, %v691_v44 }
 0x273   :  { %9069 = vst [vmem:[#allocation15_spill] sm:$0xff] %v7270_v21  ;;  %5083 = vmatprep.mubr.msk.f32.mxu1 %vm900_vm1, %v7268_v37  ;;  %6059 = vrot.lane.b32.xlu1 %v7270_v21, %s6815_s2  ;;  %v5047_v4 = vpop.f32.mrb[12].mxu0  ;;  %v7288_v6 = vcombine.high %v659_v49, %v691_v44  ;;  %v700_v25 = vcombine.low %v525_v52, %v535_v35 }
 0x274   :  { %v545_v7 = vpop.f32.mrb[13].mxu0  ;;  %v724_v8 = vrot.slane %v716_v60, %v7228_v45  ;;  %v701_v30 = vcombine.high %v525_v52, %v535_v35  ;;  %v731_v38 = vrot.slane %v717_v61, %v7228_v45 }
 0x275   :  { %v7292_v12 = vpack.i.bf16 %v5047_v4, %v545_v7  ;;  %v708_v14 = vrot.slane %v700_v25, %v7228_v45 }
 0x276   :  { %v715_v54 = vrot.slane %v701_v30, %v7228_v45 }
 0x277   :  { %6064 = vrot.lane.b32.xlu0 %v7292_v12, %s6815_s2  ;;  %v5050_v18 = vpop.f32.mrb[14].mxu0  ;;  %v764_v19 = vcombine.low %v708_v14, %v724_v8  ;;  %v765_v22 = vcombine.high %v708_v14, %v724_v8 }
 0x278   :  { %v555_v16 = vpop.f32.mrb[15].mxu0  ;;  %v748_v26 = vcombine.low %v5047_v4, %v5050_v18  ;;  %v749_v27 = vcombine.high %v5047_v4, %v5050_v18  ;;  %v780_v55 = vcombine.low %v715_v54, %v731_v38  ;;  %v781_v0 = vcombine.high %v715_v54, %v731_v38 }
 0x279   :  { %v7298_v32 = vpack.i.bf16 %v5050_v18, %v555_v16  ;;  %v732_v33 = vcombine.low %v545_v7, %v555_v16  ;;  %v772_v34 = vrot.slane %v764_v19, %v7234_v13  ;;  %v779_v39 = vrot.slane %v765_v22, %v7234_v13 }
 0x27a   :  { %v756_v20 = vrot.slane %v748_v26, %v7228_v45  ;;  %v733_v40 = vcombine.high %v545_v7, %v555_v16  ;;  %v763_v41 = vrot.slane %v749_v27, %v7228_v45  ;;  %v788_v1 = vrot.slane %v780_v55, %v7234_v13 }
 0x27b   :  { %6074 = vrot.lane.b32.xlu0 %v7230_v9, %s6816_s3  ;;  %6069 = vrot.lane.b32.xlu1 %v7298_v32, %s6815_s2  ;;  %v740_v42 = vrot.slane %v732_v33, %v7228_v45  ;;  %v795_v43 = vrot.slane %v781_v0, %v7234_v13 }
 0x27c   :  { %v747_v10 = vrot.slane %v733_v40, %v7228_v45 }
 0x27d   :  { %v796_v24 = vcombine.low %v740_v42, %v756_v20  ;;  %v797_v48 = vcombine.high %v740_v42, %v756_v20 }
 0x27e   :  { %v812_v36 = vcombine.low %v747_v10, %v763_v41  ;;  %v813_v49 = vcombine.high %v747_v10, %v763_v41 }
 0x27f   :  { %6089 = vrot.lane.b32.xlu0 %v7251_v46, %s6816_s3  ;;  %6079 = vrot.lane.b32.xlu1 %v7236_v15, %s6816_s3  ;;  %v804_v50 = vrot.slane %v796_v24, %v7234_v13  ;;  %v811_v51 = vrot.slane %v797_v48, %v7234_v13 }
 0x280   :  { %v820_v11 = vrot.slane %v812_v36, %v7234_v13  ;;  %v827_v52 = vrot.slane %v813_v49, %v7234_v13 }
 0x281   :  { %v7320_v28 = vcombine.low %v772_v34, %v804_v50  ;;  %v7322_v45 = vcombine.high %v772_v34, %v804_v50  ;;  %v7324_v29 = vcombine.low %v779_v39, %v811_v51  ;;  %v7326_v53 = vcombine.high %v779_v39, %v811_v51 }
 0x282   :  { %v7328_v56 = vcombine.low %v788_v1, %v820_v11  ;;  %v7330_v57 = vcombine.high %v788_v1, %v820_v11  ;;  %v7332_v17 = vcombine.low %v795_v43, %v827_v52  ;;  %v7334_v58 = vcombine.high %v795_v43, %v827_v52 }
 0x283   :  { %6094 = vrot.lane.b32.xlu0 %v7260_v23, %s6816_s3  ;;  %6084 = vrot.lane.b32.xlu1 %v7244_v31, %s6816_s3 }
 0x287   :  { %6109 = vrot.lane.b32.xlu0 %v7230_v9, %s6817_s25  ;;  %6099 = vrot.lane.b32.xlu1 %v7270_v21, %s6816_s3 }
 0x28b   :  { %6119 = vrot.lane.b32.xlu0 %v7244_v31, %s6817_s25  ;;  %6104 = vrot.lane.b32.xlu1 %v7292_v12, %s6816_s3 }
 0x28f   :  { %6114 = vrot.lane.b32.xlu1 %v7236_v15, %s6817_s25 }
 0x293   :  { %6124 = vrot.lane.b32.xlu1 %v7298_v32, %s6816_s3 }
 0x2d1   :  { %v6035_v13 = vpop.permute.xlu0 %6034 }
 0x2d2   :  { %v6037_v35 = vunpack.i.h.bf16 %v6035_v13  ;;  %v6036_v59 = vunpack.i.l.bf16 %v6035_v13 }
 0x2d4   :  { %v5627_v60 = vpack.c.bf16 %v6037_v35, %v6036_v59 }
 0x2d5   :  { %v6040_v61 = vpop.permute.xlu1 %6039 }
 0x2d6   :  { %v6042_v4 = vunpack.i.h.bf16 %v6040_v61  ;;  %v6041_v25 = vunpack.i.l.bf16 %v6040_v61  ;;  %5629 = vmatprep.subr.msk.bf16.mxu1 %vm7354_vm2, %v5627_v60 }
 0x2d7   :  { %5632 = vmatpush3.bf16.xpose.msk.msra.mxu1 %vm7354_vm2, %v5627_v60 }
 0x2d8   :  { %v5633_v7 = vpack.c.bf16 %v6042_v4, %v6041_v25 }
 0x2d9   :  { %v6045_v8 = vpop.permute.xlu1 %6044 }
 0x2da   :  { %v6047_v30 = vunpack.i.h.bf16 %v6045_v8  ;;  %v6046_v38 = vunpack.i.l.bf16 %v6045_v8  ;;  %5635 = vmatprep.subr.msk.bf16.mxu1 %vm7354_vm2, %v5633_v7 }
 0x2dc   :  { %v5639_v14 = vpack.c.bf16 %v6047_v30, %v6046_v38 }
 0x2dd   :  { %v6050_v54 = vpop.permute.xlu1 %6049 }
 0x2de   :  { %v6052_v18 = vunpack.i.h.bf16 %v6050_v54  ;;  %v6051_v19 = vunpack.i.l.bf16 %v6050_v54 }
 0x2df   :  { %5638 = vmatpush3.bf16.xpose.msk.msra.mxu1 %vm7354_vm2, %v5633_v7 }
 0x2e0   :  { %5641 = vmatprep.subr.msk.bf16.mxu1 %vm7354_vm2, %v5639_v14  ;;  %v5645_v16 = vpack.c.bf16 %v6052_v18, %v6051_v19 }
 0x2e1   :  { %v6055_v22 = vpop.permute.xlu0 %6054 }
 0x2e2   :  { %v6057_v55 = vunpack.i.h.bf16 %v6055_v22  ;;  %v6056_v0 = vunpack.i.l.bf16 %v6055_v22 }
 0x2e4   :  { %v5651_v20 = vpack.c.bf16 %v6057_v55, %v6056_v0 }
 0x2e5   :  { %v6060_v26 = vpop.permute.xlu1 %6059 }
 0x2e6   :  { %v6062_v42 = vunpack.i.h.bf16 %v6060_v26  ;;  %v6061_v1 = vunpack.i.l.bf16 %v6060_v26 }
 0x2e7   :  { %5644 = vmatpush3.bf16.xpose.msk.msra.mxu1 %vm7354_vm2, %v5639_v14 }
 0x2e8   :  { %5647 = vmatprep.subr.msk.bf16.mxu1 %vm7354_vm2, %v5645_v16  ;;  %v5657_v49 = vpack.c.bf16 %v6062_v42, %v6061_v1 }
 0x2e9   :  { %v6065_v27 = vpop.permute.xlu0 %6064 }
 0x2ea   :  { %v6067_v60 = vunpack.i.h.bf16 %v6065_v27  ;;  %v6066_v4 = vunpack.i.l.bf16 %v6065_v27 }
 0x2ec   :  { %v5663_v38 = vpack.c.bf16 %v6067_v60, %v6066_v4  ;;  %v7450_v4 = vld [vmem:[#allocation2 + $0x20] sm:$0xff] }
 0x2ed   :  { %v6070_v33 = vpop.permute.xlu1 %6069  ;;  %v6075_v34 = vpop.permute.xlu0 %6074  ;;  %9075 = vst [vmem:[#allocation19_spill] sm:$0xff] %v7450_v4 }
 0x2ee   :  { %v6077_v39 = vunpack.i.h.bf16 %v6075_v34  ;;  %v6076_v40 = vunpack.i.l.bf16 %v6075_v34  ;;  %v6072_v19 = vunpack.i.h.bf16 %v6070_v33 }
 0x2ef   :  { %5650 = vmatpush3.bf16.xpose.msk.msra.mxu1 %vm7354_vm2, %v5645_v16  ;;  %v6071_v16 = vunpack.i.l.bf16 %v6070_v33 }
 0x2f0   :  { %5653 = vmatprep.subr.msk.bf16.mxu1 %vm7354_vm2, %v5651_v20  ;;  %v5675_v41 = vpack.c.bf16 %v6077_v39, %v6076_v40 }
 0x2f1   :  { %v6080_v43 = vpop.permute.xlu1 %6079  ;;  %v6090_v10 = vpop.permute.xlu0 %6089  ;;  %v5669_v34 = vpack.c.bf16 %v6072_v19, %v6071_v16 }
 0x2f2   :  { %v6082_v24 = vunpack.i.h.bf16 %v6080_v43  ;;  %v6081_v48 = vunpack.i.l.bf16 %v6080_v43  ;;  %5676 = vmatprep.subr.bf16.mxu0 %v5675_v41  ;;  %v6092_v51 = vunpack.i.h.bf16 %v6090_v10  ;;  %v6091_v11 = vunpack.i.l.bf16 %v6090_v10  ;;  %v7427_v10 = vld [vmem:[#allocation2 + $0x8] sm:$0xff] }
 0x2f3   :  { %5678 = vmatpush3.bf16.msra.mxu0 %v5675_v41 }
 0x2f4   :  { %v5679_v36 = vpack.c.bf16 %v6082_v24, %v6081_v48  ;;  %v5687_v8 = vpack.c.bf16 %v6092_v51, %v6091_v11  ;;  %v7429_v24 = vld [vmem:[#allocation2] sm:$0xff]  ;;  %v7437_v51 = vld [vmem:[#allocation2 + $0x18] sm:$0xff] }
 0x2f5   :  { %v6085_v50 = vpop.permute.xlu1 %6084  ;;  %v6095_v35 = vpop.permute.xlu0 %6094  ;;  %9072 = vst [vmem:[#allocation16_spill] sm:$0xff] %v7429_v24  ;;  %9073 = vst [vmem:[#allocation17_spill] sm:$0xff] %v7437_v51 }
 0x2f6   :  { %v6087_v52 = vunpack.i.h.bf16 %v6085_v50  ;;  %v6086_v13 = vunpack.i.l.bf16 %v6085_v50  ;;  %5680 = vmatprep.subr.bf16.mxu0 %v5679_v36  ;;  %v6097_v25 = vunpack.i.h.bf16 %v6095_v35  ;;  %v6096_v7 = vunpack.i.l.bf16 %v6095_v35  ;;  %v7444_v35 = vld [vmem:[#allocation2 + $0x10] sm:$0xff] }
 0x2f7   :  { %5656 = vmatpush3.bf16.xpose.msk.msra.mxu1 %vm7354_vm2, %v5651_v20  ;;  %5682 = vmatpush3.bf16.msra.mxu0 %v5679_v36  ;;  %9074 = vst [vmem:[#allocation18_spill] sm:$0xff] %v7444_v35 }
 0x2f8   :  { %5659 = vmatprep.subr.msk.bf16.mxu1 %vm7354_vm2, %v5657_v49  ;;  %v5683_v59 = vpack.c.bf16 %v6087_v52, %v6086_v13  ;;  %v5691_v18 = vpack.c.bf16 %v6097_v25, %v6096_v7 }
 0x2f9   :  { %v6100_v61 = vpop.permute.xlu1 %6099  ;;  %v6110_v41 = vpop.permute.xlu0 %6109 }
 0x2fa   :  { %5684 = vmatprep.subr.bf16.mxu0 %v5683_v59  ;;  %v6102_v14 = vunpack.i.h.bf16 %v6100_v61  ;;  %v6101_v54 = vunpack.i.l.bf16 %v6100_v61  ;;  %v6112_v33 = vunpack.i.h.bf16 %v6110_v41  ;;  %v6111_v42 = vunpack.i.l.bf16 %v6110_v41 }
 0x2fb   :  { %5686 = vmatpush3.bf16.msra.mxu0 %v5683_v59 }
 0x2fc   :  { %5688 = vmatprep.subr.bf16.mxu0 %v5687_v8  ;;  %v5695_v55 = vpack.c.bf16 %v6102_v14, %v6101_v54  ;;  %v7390_v43 = vpack.c.bf16 %v6112_v33, %v6111_v42  ;;  %v7482_v33 = vld [vmem:[#allocation2 + $0x70] sm:$0xff] }
 0x2fd   :  { %v6105_v30 = vpop.permute.xlu1 %6104  ;;  %9080 = vst [vmem:[#allocation24_spill] sm:$0xff] %v7482_v33 }
 0x2fe   :  { %v6107_v26 = vunpack.i.h.bf16 %v6105_v30  ;;  %v6106_v27 = vunpack.i.l.bf16 %v6105_v30  ;;  %v7456_v30 = vld [vmem:[#allocation2 + $0x30] sm:$0xff] }
 0x2ff   :  { %5662 = vmatpush3.bf16.xpose.msk.msra.mxu1 %vm7354_vm2, %v5657_v49  ;;  %5690 = vmatpush3.bf16.msra.mxu0 %v5687_v8  ;;  %9076 = vst [vmem:[#allocation20_spill] sm:$0xff] %v7456_v30 }
 0x300   :  { %5665 = vmatprep.subr.msk.bf16.mxu1 %vm7354_vm2, %v5663_v38  ;;  %5692 = vmatprep.subr.bf16.mxu0 %v5691_v18  ;;  %v5699_v40 = vpack.c.bf16 %v6107_v26, %v6106_v27  ;;  %v7470_v27 = vld [vmem:[#allocation2 + $0x50] sm:$0xff] }
 0x301   :  { %v7384_v22 = vpop.permute.xlu1 %6114  ;;  %9078 = vst [vmem:[#allocation22_spill] sm:$0xff] %v7470_v27 }
 0x303   :  { %5694 = vmatpush3.bf16.msra.mxu0 %v5691_v18  ;;  %v7462_v18 = vld [vmem:[#allocation2 + $0x40] sm:$0xff] }
 0x304   :  { %5696 = vmatprep.subr.bf16.mxu0 %v5695_v55  ;;  %9077 = vst [vmem:[#allocation21_spill] sm:$0xff] %v7462_v18 }
 0x305   :  { %v6125_v0 = vpop.permute.xlu1 %6124 }
 0x306   :  { %v6127_v20 = vunpack.i.h.bf16 %v6125_v0  ;;  %v6126_v39 = vunpack.i.l.bf16 %v6125_v0 }
 0x307   :  { %5668 = vmatpush3.bf16.xpose.msk.msra.mxu1 %vm7354_vm2, %v5663_v38  ;;  %5698 = vmatpush3.bf16.msra.mxu0 %v5695_v55 }
 0x308   :  { %5671 = vmatprep.subr.msk.bf16.mxu1 %vm7354_vm2, %v5669_v34  ;;  %5700 = vmatprep.subr.bf16.mxu0 %v5699_v40  ;;  %v5703_v1 = vpack.c.bf16 %v6127_v20, %v6126_v39  ;;  %v7476_v20 = vld [vmem:[#allocation2 + $0x60] sm:$0xff] }
 0x309   :  { %9079 = vst [vmem:[#allocation23_spill] sm:$0xff] %v7476_v20 }
 0x30b   :  { %5702 = vmatpush3.bf16.msra.mxu0 %v5699_v40 }
 0x30c   :  { %5704 = vmatprep.subr.bf16.mxu0 %v5703_v1 }
 0x30f   :  { %5674 = vmatpush3.bf16.xpose.msk.msra.mxu1 %vm7354_vm2, %v5669_v34  ;;  %5706 = vmatpush3.bf16.msra.mxu0 %v5703_v1  ;;  %v7489_v1 = vld [vmem:[#allocation2 + $0x28] sm:$0xff] }
 0x310   :  { %5709 = vmatprep.subr.msk.bf16.mxu0 %vm7354_vm2, %v7390_v43  ;;  %9081 = vst [vmem:[#allocation25_spill] sm:$0xff] %v7489_v1 }
 0x316   :  { %5084 = vmatmul.mubr.msk.f32.vlgmr.msra.gmra.mrb[0].mxu1 %vm900_vm1, %v7272_v47 }
 0x317   :  { %5086 = vmatprep.mubr.msk.f32.mxu1 %vm900_vm1, %v7274_v62 }
 0x31a   :  { %5087 = vmatmul.mubr.msk.f32.gmra.mrb[2].mxu1 %vm900_vm1, %v7276_v63 }
 0x31b   :  { %5089 = vmatprep.mubr.msk.f32.mxu1 %vm900_vm1, %v7278_v2 }
 0x31e   :  { %5090 = vmatmul.mubr.msk.f32.gmra.mrb[4].mxu1 %vm900_vm1, %v7280_v3 }
 0x31f   :  { %5092 = vmatprep.mubr.msk.f32.mxu1 %vm900_vm1, %v7286_v5 }
 0x322   :  { %5093 = vmatmul.mubr.msk.f32.gmra.mrb[6].mxu1 %vm900_vm1, %v7288_v6 }
 0x323   :  { %5095 = vmatprep.mubr.msk.f32.mxu1 %vm900_vm1, %v7320_v28 }
 0x326   :  { %5096 = vmatmul.mubr.msk.f32.gmra.mrb[8].mxu1 %vm900_vm1, %v7322_v45 }
 0x327   :  { %5098 = vmatprep.mubr.msk.f32.mxu1 %vm900_vm1, %v7324_v29 }
 0x32a   :  { %5099 = vmatmul.mubr.msk.f32.gmra.mrb[10].mxu1 %vm900_vm1, %v7326_v53 }
 0x32b   :  { %5101 = vmatprep.mubr.msk.f32.mxu1 %vm900_vm1, %v7328_v56 }
 0x32e   :  { %5102 = vmatmul.mubr.msk.f32.gmra.mrb[12].mxu1 %vm900_vm1, %v7330_v57 }
 0x32f   :  { %5104 = vmatprep.mubr.msk.f32.mxu1 %vm900_vm1, %v7332_v17 }
 0x332   :  { %5105 = vmatmul.mubr.msk.f32.gmra.mrb[14].mxu1 %vm900_vm1, %v7334_v58 }
 0x3e9   :  { %v5085_v48 = vpop.f32.mrb[0].mxu1 }
 0x3ea   :  { %v7432_v36 = vadd.f32 %v5085_v48, %v7427_v10  ;;  %v1047_v49 = vpop.f32.mrb[1].mxu1 }
 0x3eb   :  { %v7435_v50 = vadd.f32 %v1047_v49, %v7429_v24  ;;  %v7492_v49 = vld [vmem:[#allocation2 + $0x38] sm:$0xff] }
 0x3ec   :  { %1128 = vmax.xlane.f32.xlu1 %v7432_v36  ;;  %9082 = vst [vmem:[#allocation26_spill] sm:$0xff] %v7492_v49 }
 0x3ed   :  { %v5088_v11 = vpop.f32.mrb[2].mxu1  ;;  %1126 = vmax.xlane.f32.xlu0 %v7435_v50 }
 0x3ee   :  { %v7442_v52 = vadd.f32 %v5088_v11, %v7437_v51  ;;  %v1057_v13 = vpop.f32.mrb[3].mxu1 }
 0x3ef   :  { %v7448_v61 = vadd.f32 %v1057_v13, %v7444_v35  ;;  %v7497_v13 = vld [vmem:[#allocation2 + $0x48] sm:$0xff] }
 0x3f0   :  { %9083 = vst [vmem:[#allocation27_spill] sm:$0xff] %v7497_v13 }
 0x3f1   :  { %v5091_v59 = vpop.f32.mrb[4].mxu1  ;;  %1132 = vmax.xlane.f32.xlu0 %v7442_v52 }
 0x3f2   :  { %v1067_v60 = vpop.f32.mrb[5].mxu1  ;;  %v1073_v48 = vadd.f32 %v5091_v59, %v7489_v1  ;;  %v7505_v59 = vld [vmem:[#allocation2 + $0x68] sm:$0xff] }
 0x3f3   :  { %v7454_v8 = vadd.f32 %v1067_v60, %v7450_v4  ;;  %9085 = vst [vmem:[#allocation29_spill] sm:$0xff] %v7505_v59 }
 0x3f5   :  { %v5094_v25 = vpop.f32.mrb[6].mxu1  ;;  %1130 = vmax.xlane.f32.xlu0 %v7448_v61 }
 0x3f6   :  { %v1077_v7 = vpop.f32.mrb[7].mxu1  ;;  %v1083_v11 = vadd.f32 %v5094_v25, %v7492_v49 }
 0x3f7   :  { %v7460_v54 = vadd.f32 %v1077_v7, %v7456_v30  ;;  %v7500_v7 = vld [vmem:[#allocation2 + $0x58] sm:$0xff] }
 0x3f8   :  { %9084 = vst [vmem:[#allocation28_spill] sm:$0xff] %v7500_v7 }
 0x3f9   :  { %v5097_v38 = vpop.f32.mrb[8].mxu1  ;;  %1134 = vmax.xlane.f32.xlu0 %v7454_v8 }
 0x3fa   :  { %v1087_v14 = vpop.f32.mrb[9].mxu1  ;;  %v1093_v60 = vadd.f32 %v5097_v38, %v7497_v13  ;;  %v7518_v38 = vpop.permute.xlu0 %6119 }
 0x3fb   :  { %v7468_v26 = vadd.f32 %v1087_v14, %v7462_v18 }
 0x3fd   :  { %6129 = vrot.lane.b32.xlu1 %v7251_v46, %s6817_s25  ;;  %v5100_v19 = vpop.f32.mrb[10].mxu1  ;;  %1138 = vmax.xlane.f32.xlu0 %v7460_v54 }
 0x3fe   :  { %v1097_v16 = vpop.f32.mrb[11].mxu1  ;;  %v7503_v14 = vadd.f32 %v5100_v19, %v7500_v7 }
 0x3ff   :  { %v7474_v34 = vadd.f32 %v1097_v16, %v7470_v27  ;;  %v7511_v16 = vld [vmem:[#allocation2 + $0x78] sm:$0xff] }
 0x400   :  { %9086 = vst [vmem:[#allocation30_spill] sm:$0xff] %v7511_v16 }
 0x401   :  { %v5103_v55 = vpop.f32.mrb[12].mxu1  ;;  %1142 = vmax.xlane.f32.xlu0 %v7468_v26 }
 0x402   :  { %v1107_v0 = vpop.f32.mrb[13].mxu1  ;;  %v7509_v25 = vadd.f32 %v5103_v55, %v7505_v59 }
 0x403   :  { %v7480_v41 = vadd.f32 %v1107_v0, %v7476_v20 }
 0x405   :  { %v5106_v39 = vpop.f32.mrb[14].mxu1  ;;  %1146 = vmax.xlane.f32.xlu0 %v7474_v34 }
 0x406   :  { %v1117_v40 = vpop.f32.mrb[15].mxu1  ;;  %v7515_v0 = vadd.f32 %v5106_v39, %v7511_v16 }
 0x407   :  { %v7486_v42 = vadd.f32 %v1117_v40, %v7482_v33 }
 0x409   :  { %1150 = vmax.xlane.f32.xlu0 %v7480_v41 }
 0x40d   :  { %1154 = vmax.xlane.f32.xlu0 %v7486_v42 }
 0x421   :  { %1136 = vmax.xlane.f32.xlu1 %v1073_v48 }
 0x423   :  { %6134 = vrot.lane.b32.xlu0 %v7260_v23, %s6817_s25 }
 0x425   :  { %1140 = vmax.xlane.f32.xlu1 %v1083_v11 }
 0x429   :  { %1144 = vmax.xlane.f32.xlu1 %v1093_v60 }
 0x42d   :  { %1148 = vmax.xlane.f32.xlu1 %v7503_v14 }
 0x431   :  { %1152 = vmax.xlane.f32.xlu1 %v7509_v25 }
 0x435   :  { %1156 = vmax.xlane.f32.xlu1 %v7515_v0 }
 0x479   :  { %v1129_v19 = vpop.xlane.xlu1 %1128 }
 0x47a   :  { %v1159_v40 = vsub.f32 %v7432_v36, %v1129_v19  ;;  %v1127_v7 = vpop.xlane.xlu0 %1126 }
 0x47b   :  { %v1158_v13 = vsub.f32 %v7435_v50, %v1127_v7 }
 0x47c   :  { %v1176_v49 = vmul.f32 1.442695, %v1159_v40 }
 0x47d   :  { %v1174_v55 = vmul.f32 1.442695, %v1158_v13 }
 0x47e   :  { %6385 = vpow2.f32 %v1176_v49  ;;  %v1133_v39 = vpop.xlane.xlu0 %1132  ;;  %v7532_v49 = vpop.permute.xlu1 %6129 }
 0x47f   :  { %6387 = vpow2.f32 %v1174_v55  ;;  %v1161_v19 = vsub.f32 %v7442_v52, %v1133_v39 }
 0x481   :  { %v1180_v20 = vmul.f32 1.442695, %v1161_v19 }
 0x482   :  { %v1131_v36 = vpop.xlane.xlu0 %1130 }
 0x483   :  { %v1160_v7 = vsub.f32 %v7448_v61, %v1131_v36 }
 0x485   :  { %v1178_v16 = vmul.f32 1.442695, %v1160_v7 }
 0x486   :  { %v1135_v50 = vpop.xlane.xlu0 %1134 }
 0x487   :  { %6389 = vpow2.f32 %v1178_v16  ;;  %v1162_v30 = vsub.f32 %v7454_v8, %v1135_v50 }
 0x488   :  { %v7522_v59 = vpop.eup %6385  ;;  %6391 = vpow2.f32 %v1180_v20 }
 0x489   :  { %v7524_v1 = vpop.eup %6387  ;;  %1208 = vadd.xlane.f32.xlu0 %v7522_v59  ;;  %v1182_v36 = vmul.f32 1.442695, %v1162_v30 }
 0x48a   :  { %1206 = vadd.xlane.f32.xlu1 %v7524_v1  ;;  %v1139_v13 = vpop.xlane.xlu0 %1138 }
 0x48b   :  { %v1164_v35 = vsub.f32 %v7460_v54, %v1139_v13 }
 0x48d   :  { %v1186_v39 = vmul.f32 1.442695, %v1164_v35 }
 0x48e   :  { %v1143_v40 = vpop.xlane.xlu0 %1142 }
 0x48f   :  { %v1166_v8 = vsub.f32 %v7468_v26, %v1143_v40 }
 0x491   :  { %v1190_v30 = vmul.f32 1.442695, %v1166_v8 }
 0x492   :  { %v1147_v51 = vpop.xlane.xlu0 %1146 }
 0x493   :  { %v1168_v52 = vsub.f32 %v7474_v34, %v1147_v51 }
 0x49b   :  { %6139 = vrot.lane.b32.xlu1 %v7270_v21, %s6817_s25 }
 0x49f   :  { %6144 = vrot.lane.b32.xlu0 %v7292_v12, %s6817_s25 }
 0x4ae   :  { %v1137_v55 = vpop.xlane.xlu1 %1136 }
 0x4af   :  { %v1163_v33 = vsub.f32 %v1073_v48, %v1137_v55 }
 0x4b1   :  { %v1184_v27 = vmul.f32 1.442695, %v1163_v33  ;;  %v1194_v33 = vmul.f32 1.442695, %v1168_v52 }
 0x4b2   :  { %v1141_v18 = vpop.xlane.xlu1 %1140 }
 0x4b3   :  { %v1165_v4 = vsub.f32 %v1083_v11, %v1141_v18  ;;  %6393 = vpow2.f32 %v1184_v27  ;;  %v1151_v18 = vpop.xlane.xlu0 %1150  ;;  %v7540_v11 = vpop.eup %6389 }
 0x4b4   :  { %v7542_v54 = vpop.eup %6391 }
 0x4b5   :  { %v1188_v24 = vmul.f32 1.442695, %v1165_v4 }
 0x4b6   :  { %v1145_v61 = vpop.xlane.xlu1 %1144 }
 0x4b7   :  { %6395 = vpow2.f32 %v1188_v24  ;;  %v1167_v48 = vsub.f32 %v1093_v60, %v1145_v61  ;;  %v1170_v24 = vsub.f32 %v7480_v41, %v1151_v18  ;;  %v1155_v13 = vpop.xlane.xlu0 %1154 }
 0x4b8   :  { %6397 = vpow2.f32 %v1182_v36 }
 0x4b9   :  { %6399 = vpow2.f32 %v1186_v39  ;;  %v1192_v20 = vmul.f32 1.442695, %v1167_v48  ;;  %v1198_v16 = vmul.f32 1.442695, %v1170_v24  ;;  %v6117_v24 = vunpack.i.h.bf16 %v7384_v22 }
 0x4ba   :  { %v1149_v7 = vpop.xlane.xlu1 %1148  ;;  %6401 = vpow2.f32 %v1194_v33 }
 0x4bb   :  { %6403 = vpow2.f32 %v1192_v20  ;;  %v1169_v26 = vsub.f32 %v7503_v14, %v1149_v7  ;;  %v1172_v14 = vsub.f32 %v7486_v42, %v1155_v13  ;;  %v6135_v33 = vpop.permute.xlu0 %6134 }
 0x4bd   :  { %v7548_v35 = vpop.eup %6393  ;;  %v1196_v41 = vmul.f32 1.442695, %v1169_v26 }
 0x4be   :  { %v1153_v4 = vpop.xlane.xlu1 %1152  ;;  %1210 = vadd.xlane.f32.xlu0 %v7540_v11 }
 0x4bf   :  { %v1171_v51 = vsub.f32 %v7509_v25, %v1153_v4  ;;  %1212 = vadd.xlane.f32.xlu1 %v7542_v54 }
 0x4c1   :  { %v7551_v27 = vpop.eup %6395  ;;  %v1200_v34 = vmul.f32 1.442695, %v1171_v51  ;;  %v6116_v51 = vunpack.i.l.bf16 %v7384_v22  ;;  %v6132_v22 = vunpack.i.h.bf16 %v7532_v49 }
 0x4c2   :  { %v1157_v60 = vpop.xlane.xlu1 %1156  ;;  %1216 = vadd.xlane.f32.xlu0 %v7548_v35  ;;  %v7556_v50 = vpop.eup %6397 }
 0x4c3   :  { %6405 = vpow2.f32 %v1200_v34  ;;  %1220 = vadd.xlane.f32.xlu1 %v7551_v27  ;;  %v1173_v25 = vsub.f32 %v7515_v0, %v1157_v60  ;;  %v7558_v19 = vpop.eup %6399  ;;  %v1202_v0 = vmul.f32 1.442695, %v1172_v14  ;;  %v5713_v34 = vpack.c.bf16 %v6117_v24, %v6116_v51 }
 0x4c4   :  { %6407 = vpow2.f32 %v1190_v30  ;;  %v7563_v55 = vpop.eup %6401  ;;  %v6122_v60 = vunpack.i.h.bf16 %v7518_v38 }
 0x4c5   :  { %6409 = vpow2.f32 %v1198_v16  ;;  %v1204_v40 = vmul.f32 1.442695, %v1173_v25  ;;  %v7565_v61 = vpop.eup %6403  ;;  %v6121_v16 = vunpack.i.l.bf16 %v7518_v38  ;;  %v6136_v38 = vunpack.i.l.bf16 %v6135_v33 }
 0x4c6   :  { %1214 = vadd.xlane.f32.xlu0 %v7556_v50  ;;  %6411 = vpow2.f32 %v1196_v41 }
 0x4c7   :  { %1218 = vadd.xlane.f32.xlu1 %v7558_v19  ;;  %6413 = vpow2.f32 %v1204_v40  ;;  %v5719_v41 = vpack.c.bf16 %v6122_v60, %v6121_v16 }
 0x4c8   :  { %6415 = vpow2.f32 %v1202_v0 }
 0x4ca   :  { %1226 = vadd.xlane.f32.xlu0 %v7563_v55 }
 0x4cb   :  { %1224 = vadd.xlane.f32.xlu1 %v7565_v61 }
 0x4cd   :  { %v7569_v36 = vpop.eup %6405 }
 0x4ce   :  { %v7571_v52 = vpop.eup %6407  ;;  %1232 = vadd.xlane.f32.xlu0 %v7569_v36 }
 0x4cf   :  { %1222 = vadd.xlane.f32.xlu1 %v7571_v52  ;;  %v7575_v42 = vpop.eup %6409 }
 0x4d0   :  { %v7577_v39 = vpop.eup %6411 }
 0x4d1   :  { %v7581_v48 = vpop.eup %6413 }
 0x4d2   :  { %1230 = vadd.xlane.f32.xlu0 %v7575_v42  ;;  %v7584_v7 = vpop.eup %6415 }
 0x4d3   :  { %1228 = vadd.xlane.f32.xlu1 %v7577_v39 }
 0x4d7   :  { %1236 = vadd.xlane.f32.xlu1 %v7581_v48 }
 0x4db   :  { %1234 = vadd.xlane.f32.xlu1 %v7584_v7 }
 0x4e8   :  { %6149 = vrot.lane.b32.xlu0 %v7298_v32, %s6817_s25 }
 0x4ec   :  { %1479 = vrot.lane.b32.xlu0 %v7268_v37, %s6818_s1  ;;  %1481 = vrot.lane.b32.xlu1 %v7272_v47, %s6818_s1 }
 0x4f0   :  { %1483 = vrot.lane.b32.xlu0 %v7274_v62, %s6818_s1  ;;  %1485 = vrot.lane.b32.xlu1 %v7276_v63, %s6818_s1 }
 0x4f4   :  { %1487 = vrot.lane.b32.xlu0 %v7278_v2, %s6818_s1  ;;  %1489 = vrot.lane.b32.xlu1 %v7280_v3, %s6818_s1 }
 0x4f8   :  { %1491 = vrot.lane.b32.xlu0 %v7286_v5, %s6818_s1  ;;  %1493 = vrot.lane.b32.xlu1 %v7288_v6, %s6818_s1 }
 0x4fc   :  { %1495 = vrot.lane.b32.xlu0 %v7320_v28, %s6818_s1  ;;  %1497 = vrot.lane.b32.xlu1 %v7322_v45, %s6818_s1 }
 0x500   :  { %1499 = vrot.lane.b32.xlu0 %v7324_v29, %s6818_s1  ;;  %1501 = vrot.lane.b32.xlu1 %v7326_v53, %s6818_s1 }
 0x504   :  { %1503 = vrot.lane.b32.xlu0 %v7328_v56, %s6818_s1  ;;  %1505 = vrot.lane.b32.xlu1 %v7330_v57, %s6818_s1 }
 0x508   :  { %1507 = vrot.lane.b32.xlu0 %v7332_v17, %s6818_s1  ;;  %1509 = vrot.lane.b32.xlu1 %v7334_v58, %s6818_s1 }
 0x50c   :  { %6154 = vrot.lane.b32.xlu0 %v7230_v9, %s6819_s24  ;;  %6159 = vrot.lane.b32.xlu1 %v7236_v15, %s6819_s24 }
 0x510   :  { %6169 = vrot.lane.b32.xlu0 %v7251_v46, %s6819_s24  ;;  %6164 = vrot.lane.b32.xlu1 %v7244_v31, %s6819_s24 }
 0x514   :  { %6174 = vrot.lane.b32.xlu0 %v7260_v23, %s6819_s24  ;;  %6179 = vrot.lane.b32.xlu1 %v7270_v21, %s6819_s24 }
 0x516   :  { %v1209_v8 = vpop.xlane.xlu0 %1208 }
 0x517   :  { %6417 = vrcp.f32 %v1209_v8  ;;  %v1207_v18 = vpop.xlane.xlu1 %1206 }
 0x518   :  { %6419 = vrcp.f32 %v1207_v18  ;;  %6194 = vrot.lane.b32.xlu0 %v7230_v9, %s6820_s11  ;;  %6184 = vrot.lane.b32.xlu1 %v7292_v12, %s6819_s24 }
 0x51a   :  { %v6145_v0 = vpop.permute.xlu0 %6144 }
 0x51b   :  { %v6140_v13 = vpop.permute.xlu1 %6139  ;;  %v6147_v8 = vunpack.i.h.bf16 %v6145_v0 }
 0x51c   :  { %6204 = vrot.lane.b32.xlu0 %v7244_v31, %s6820_s11  ;;  %6189 = vrot.lane.b32.xlu1 %v7298_v32, %s6819_s24  ;;  %v6142_v14 = vunpack.i.h.bf16 %v6140_v13  ;;  %v6141_v40 = vunpack.i.l.bf16 %v6140_v13 }
 0x520   :  { %6199 = vrot.lane.b32.xlu1 %v7236_v15, %s6820_s11 }
 0x521   :  { %v6418_v20 = vpop.eup %6417 }
 0x522   :  { %v6420_v4 = vpop.eup %6419  ;;  %v1241_v26 = vmul.f32 %v6418_v20, %v7522_v59 }
 0x523   :  { %v1239_v30 = vmul.f32 %v6420_v4, %v7524_v1  ;;  %v6131_v1 = vunpack.i.l.bf16 %v7532_v49  ;;  %v5737_v49 = vpack.c.bf16 %v6142_v14, %v6141_v40 }
 0x525   :  { %5139 = vmatprep.mubr.f32.mxu0 %v1239_v30  ;;  %v5725_v59 = vpack.c.bf16 %v6132_v22, %v6131_v1 }
 0x526   :  { %5140 = vmatmul.mubr.f32.vlgmr.msra.gmra.mrb[16].mxu0 %v1241_v26 }
 0x527   :  { %5712 = vmatpush3.bf16.xpose.msk.msra.mxu0 %vm7354_vm2, %v7390_v43  ;;  %v6137_v43 = vunpack.i.h.bf16 %v6135_v33  ;;  %v6146_v33 = vunpack.i.l.bf16 %v6145_v0 }
 0x528   :  { %5715 = vmatprep.subr.msk.bf16.mxu0 %vm7354_vm2, %v5713_v34 }
 0x529   :  { %v5731_v25 = vpack.c.bf16 %v6137_v43, %v6136_v38  ;;  %v5743_v4 = vpack.c.bf16 %v6147_v8, %v6146_v33 }
 0x52f   :  { %5718 = vmatpush3.bf16.xpose.msk.msra.mxu0 %vm7354_vm2, %v5713_v34 }
 0x530   :  { %5721 = vmatprep.subr.msk.bf16.mxu0 %vm7354_vm2, %v5719_v41 }
 0x537   :  { %5724 = vmatpush3.bf16.xpose.msk.msra.mxu0 %vm7354_vm2, %v5719_v41 }
 0x538   :  { %5727 = vmatprep.subr.msk.bf16.mxu0 %vm7354_vm2, %v5725_v59 }
 0x53f   :  { %5730 = vmatpush3.bf16.xpose.msk.msra.mxu0 %vm7354_vm2, %v5725_v59 }
 0x540   :  { %5733 = vmatprep.subr.msk.bf16.mxu0 %vm7354_vm2, %v5731_v25 }
 0x547   :  { %5736 = vmatpush3.bf16.xpose.msk.msra.mxu0 %vm7354_vm2, %v5731_v25 }
 0x548   :  { %5739 = vmatprep.subr.msk.bf16.mxu0 %vm7354_vm2, %v5737_v49 }
 0x54b   :  { %v1211_v18 = vpop.xlane.xlu0 %1210 }
 0x54c   :  { %6421 = vrcp.f32 %v1211_v18  ;;  %v1213_v20 = vpop.xlane.xlu1 %1212 }
 0x54d   :  { %6423 = vrcp.f32 %v1213_v20 }
 0x54f   :  { %5742 = vmatpush3.bf16.xpose.msk.msra.mxu0 %vm7354_vm2, %v5737_v49  ;;  %v1217_v24 = vpop.xlane.xlu0 %1216 }
 0x550   :  { %5745 = vmatprep.subr.msk.bf16.mxu0 %vm7354_vm2, %v5743_v4  ;;  %v1221_v51 = vpop.xlane.xlu1 %1220  ;;  %6425 = vrcp.f32 %v1217_v24 }
 0x553   :  { %v1215_v30 = vpop.xlane.xlu0 %1214 }
 0x554   :  { %6427 = vrcp.f32 %v1215_v30  ;;  %v1219_v26 = vpop.xlane.xlu1 %1218 }
 0x555   :  { %6429 = vrcp.f32 %v1219_v26 }
 0x556   :  { %v6422_v34 = vpop.eup %6421  ;;  %6431 = vrcp.f32 %v1221_v51 }
 0x557   :  { %v6424_v60 = vpop.eup %6423  ;;  %5748 = vmatpush3.bf16.xpose.msk.msra.mxu0 %vm7354_vm2, %v5743_v4  ;;  %v1227_v16 = vpop.xlane.xlu0 %1226  ;;  %v1243_v41 = vmul.f32 %v6422_v34, %v7540_v11 }
 0x558   :  { %v1225_v22 = vpop.xlane.xlu1 %1224  ;;  %v1245_v1 = vmul.f32 %v6424_v60, %v7542_v54  ;;  %6433 = vrcp.f32 %v1227_v16 }
 0x559   :  { %5142 = vmatprep.mubr.f32.mxu0 %v1243_v41  ;;  %6435 = vrcp.f32 %v1225_v22 }
 0x55a   :  { %5143 = vmatmul.mubr.f32.gmra.mrb[18].mxu0 %v1245_v1  ;;  %v6426_v38 = vpop.eup %6425 }
 0x55b   :  { %v1233_v59 = vpop.xlane.xlu0 %1232  ;;  %v1249_v11 = vmul.f32 %v6426_v38, %v7548_v35 }
 0x55c   :  { %v1223_v43 = vpop.xlane.xlu1 %1222 }
 0x55d   :  { %6437 = vrcp.f32 %v1223_v43 }
 0x55e   :  { %v6428_v25 = vpop.eup %6427 }
 0x55f   :  { %v6430_v13 = vpop.eup %6429  ;;  %v1231_v14 = vpop.xlane.xlu0 %1230  ;;  %v1247_v40 = vmul.f32 %v6428_v25, %v7556_v50 }
 0x560   :  { %6439 = vrcp.f32 %v1231_v14  ;;  %v1229_v49 = vpop.xlane.xlu1 %1228  ;;  %v1251_v0 = vmul.f32 %v6430_v13, %v7558_v19  ;;  %v6432_v54 = vpop.eup %6431 }
 0x561   :  { %6441 = vrcp.f32 %v1229_v49  ;;  %5145 = vmatprep.mubr.f32.mxu0 %v1247_v40  ;;  %v1253_v4 = vmul.f32 %v6432_v54, %v7551_v27 }
 0x562   :  { %5146 = vmatmul.mubr.f32.gmra.mrb[20].mxu0 %v1249_v11  ;;  %6443 = vrcp.f32 %v1233_v59  ;;  %v6434_v24 = vpop.eup %6433 }
 0x563   :  { %5148 = vmatprep.mubr.f32.mxu0 %v1251_v0  ;;  %v6150_v8 = vpop.permute.xlu0 %6149  ;;  %v6436_v50 = vpop.eup %6435  ;;  %v1259_v60 = vmul.f32 %v6434_v24, %v7563_v55 }
 0x564   :  { %v6152_v33 = vunpack.i.h.bf16 %v6150_v8  ;;  %v6151_v18 = vunpack.i.l.bf16 %v6150_v8  ;;  %v1237_v20 = vpop.xlane.xlu1 %1236  ;;  %v1257_v34 = vmul.f32 %v6436_v50, %v7565_v61 }
 0x565   :  { %6445 = vrcp.f32 %v1237_v20 }
 0x566   :  { %v5749_v51 = vpack.c.bf16 %v6152_v33, %v6151_v18  ;;  %5149 = vmatmul.mubr.f32.gmra.mrb[22].mxu0 %v1253_v4 }
 0x567   :  { %v6438_v30 = vpop.eup %6437  ;;  %v1480_v35 = vpop.permute.xlu0 %1479 }
 0x568   :  { %v1235_v19 = vpop.xlane.xlu1 %1234  ;;  %5751 = vmatprep.subr.msk.bf16.mxu0 %vm7354_vm2, %v5749_v51  ;;  %v1255_v26 = vmul.f32 %v6438_v30, %v7571_v52 }
 0x569   :  { %6447 = vrcp.f32 %v1235_v19  ;;  %5754 = vmatpush3.bf16.xpose.msk.msra.mxu0 %vm7354_vm2, %v5749_v51 }
 0x56a   :  { %v6440_v27 = vpop.eup %6439  ;;  %5151 = vmatprep.mubr.f32.mxu0 %v1255_v26 }
 0x56b   :  { %v6442_v16 = vpop.eup %6441  ;;  %5152 = vmatmul.mubr.f32.gmra.mrb[24].mxu0 %v1257_v34  ;;  %v1484_v41 = vpop.permute.xlu0 %1483  ;;  %v1263_v52 = vmul.f32 %v6440_v27, %v7575_v42 }
 0x56c   :  { %v1482_v22 = vpop.permute.xlu1 %1481  ;;  %5154 = vmatprep.mubr.f32.mxu0 %v1259_v60  ;;  %v1261_v1 = vmul.f32 %v6442_v16, %v7577_v39  ;;  %v6444_v59 = vpop.eup %6443 }
 0x56d   :  { %v1265_v61 = vmul.f32 %v6444_v59, %v7569_v36 }
 0x56f   :  { %5155 = vmatmul.mubr.f32.gmra.mrb[26].mxu0 %v1261_v1  ;;  %v1488_v43 = vpop.permute.xlu0 %1487  ;;  %v6446_v25 = vpop.eup %6445 }
 0x570   :  { %v1486_v38 = vpop.permute.xlu1 %1485  ;;  %5157 = vmatprep.mubr.f32.mxu0 %v1263_v52  ;;  %v1269_v49 = vmul.f32 %v6446_v25, %v7581_v48 }
 0x573   :  { %v6448_v13 = vpop.eup %6447  ;;  %5158 = vmatmul.mubr.f32.gmra.mrb[28].mxu0 %v1265_v61  ;;  %v1492_v55 = vpop.permute.xlu0 %1491 }
 0x574   :  { %v1490_v14 = vpop.permute.xlu1 %1489  ;;  %v1267_v40 = vmul.f32 %v6448_v13, %v7584_v7 }
 0x576   :  { %5160 = vmatprep.mubr.f32.mxu0 %v1267_v40 }
 0x577   :  { %5161 = vmatmul.mubr.f32.gmra.mrb[30].mxu0 %v1269_v49  ;;  %v1496_v39 = vpop.permute.xlu0 %1495 }
 0x578   :  { %v1494_v11 = vpop.permute.xlu1 %1493  ;;  %5195 = vmatprep.mubr.msk.f32.mxu0 %vm900_vm1, %v1480_v35 }
 0x57b   :  { %v1500_v42 = vpop.permute.xlu0 %1499  ;;  %5196 = vmatmul.mubr.msk.f32.vlgmr.msra.gmra.mrb[32].mxu0 %vm900_vm1, %v1482_v22 }
 0x57c   :  { %v1498_v0 = vpop.permute.xlu1 %1497  ;;  %5198 = vmatprep.mubr.msk.f32.mxu0 %vm900_vm1, %v1484_v41 }
 0x57f   :  { %v1504_v36 = vpop.permute.xlu0 %1503  ;;  %5199 = vmatmul.mubr.msk.f32.gmra.mrb[34].mxu0 %vm900_vm1, %v1486_v38 }
 0x580   :  { %v1502_v54 = vpop.permute.xlu1 %1501  ;;  %5201 = vmatprep.mubr.msk.f32.mxu0 %vm900_vm1, %v1488_v43 }
 0x583   :  { %v1508_v7 = vpop.permute.xlu0 %1507  ;;  %5202 = vmatmul.mubr.msk.f32.gmra.mrb[36].mxu0 %vm900_vm1, %v1490_v14 }
 0x584   :  { %v1506_v48 = vpop.permute.xlu1 %1505  ;;  %5204 = vmatprep.mubr.msk.f32.mxu0 %vm900_vm1, %v1492_v55 }
 0x587   :  { %v6155_v8 = vpop.permute.xlu0 %6154  ;;  %5205 = vmatmul.mubr.msk.f32.gmra.mrb[38].mxu0 %vm900_vm1, %v1494_v11 }
 0x588   :  { %v6157_v33 = vunpack.i.h.bf16 %v6155_v8  ;;  %v6156_v18 = vunpack.i.l.bf16 %v6155_v8  ;;  %v1510_v20 = vpop.permute.xlu1 %1509  ;;  %5207 = vmatprep.mubr.msk.f32.mxu0 %vm900_vm1, %v1496_v39 }
 0x58a   :  { %v5755_v4 = vpack.c.bf16 %v6157_v33, %v6156_v18 }
 0x58b   :  { %5208 = vmatmul.mubr.msk.f32.gmra.mrb[40].mxu0 %vm900_vm1, %v1498_v0  ;;  %v6170_v24 = vpop.permute.xlu0 %6169 }
 0x58c   :  { %v6160_v50 = vpop.permute.xlu1 %6159  ;;  %5210 = vmatprep.mubr.msk.f32.mxu0 %vm900_vm1, %v1500_v42  ;;  %5756 = vmatprep.subr.bf16.mxu1 %v5755_v4  ;;  %v6172_v26 = vunpack.i.h.bf16 %v6170_v24  ;;  %v6171_v34 = vunpack.i.l.bf16 %v6170_v24 }
 0x58d   :  { %v6162_v51 = vunpack.i.h.bf16 %v6160_v50  ;;  %v6161_v30 = vunpack.i.l.bf16 %v6160_v50  ;;  %5758 = vmatpush3.bf16.msra.mxu1 %v5755_v4 }
 0x58e   :  { %v5767_v52 = vpack.c.bf16 %v6172_v26, %v6171_v34 }
 0x58f   :  { %5211 = vmatmul.mubr.msk.f32.gmra.mrb[42].mxu0 %vm900_vm1, %v1502_v54  ;;  %v5759_v35 = vpack.c.bf16 %v6162_v51, %v6161_v30  ;;  %v6175_v16 = vpop.permute.xlu0 %6174 }
 0x590   :  { %v6165_v19 = vpop.permute.xlu1 %6164  ;;  %5213 = vmatprep.mubr.msk.f32.mxu0 %vm900_vm1, %v1504_v36  ;;  %v6177_v1 = vunpack.i.h.bf16 %v6175_v16  ;;  %v6176_v59 = vunpack.i.l.bf16 %v6175_v16 }
 0x591   :  { %v6167_v27 = vunpack.i.h.bf16 %v6165_v19  ;;  %v6166_v60 = vunpack.i.l.bf16 %v6165_v19  ;;  %5760 = vmatprep.subr.bf16.mxu1 %v5759_v35 }
 0x592   :  { %5762 = vmatpush3.bf16.msra.mxu1 %v5759_v35  ;;  %v5771_v25 = vpack.c.bf16 %v6177_v1, %v6176_v59  ;;  %v9103_v1 = vld [vmem:[#allocation16_spill] sm:$0xff] }
 0x593   :  { %5214 = vmatmul.mubr.msk.f32.gmra.mrb[44].mxu0 %vm900_vm1, %v1506_v48  ;;  %v5763_v41 = vpack.c.bf16 %v6167_v27, %v6166_v60  ;;  %v6195_v42 = vpop.permute.xlu0 %6194 }
 0x594   :  { %v6180_v22 = vpop.permute.xlu1 %6179  ;;  %5216 = vmatprep.mubr.msk.f32.mxu0 %vm900_vm1, %v1508_v7  ;;  %v6197_v0 = vunpack.i.h.bf16 %v6195_v42  ;;  %v6196_v36 = vunpack.i.l.bf16 %v6195_v42 }
 0x595   :  { %5764 = vmatprep.subr.bf16.mxu1 %v5763_v41  ;;  %v6182_v38 = vunpack.i.h.bf16 %v6180_v22  ;;  %v6181_v61 = vunpack.i.l.bf16 %v6180_v22 }
 0x596   :  { %5766 = vmatpush3.bf16.msra.mxu1 %v5763_v41  ;;  %v7688_v7 = vpack.c.bf16 %v6197_v0, %v6196_v36  ;;  %v9107_v0 = vld [vmem:[#allocation20_spill] sm:$0xff] }
 0x597   :  { %5217 = vmatmul.mubr.msk.f32.gmra.mrb[46].mxu0 %vm900_vm1, %v1510_v20  ;;  %5768 = vmatprep.subr.bf16.mxu1 %v5767_v52  ;;  %v5775_v14 = vpack.c.bf16 %v6182_v38, %v6181_v61 }
 0x598   :  { %v6185_v43 = vpop.permute.xlu1 %6184 }
 0x599   :  { %v6187_v13 = vunpack.i.h.bf16 %v6185_v43  ;;  %v6186_v55 = vunpack.i.l.bf16 %v6185_v43  ;;  %v9104_v43 = vld [vmem:[#allocation17_spill] sm:$0xff] }
 0x59a   :  { %5770 = vmatpush3.bf16.msra.mxu1 %v5767_v52 }
 0x59b   :  { %5772 = vmatprep.subr.bf16.mxu1 %v5771_v25  ;;  %v5779_v11 = vpack.c.bf16 %v6187_v13, %v6186_v55  ;;  %v9105_v55 = vld [vmem:[#allocation18_spill] sm:$0xff] }
 0x59c   :  { %v6190_v40 = vpop.permute.xlu1 %6189 }
 0x59d   :  { %v6192_v49 = vunpack.i.h.bf16 %v6190_v40  ;;  %v6191_v39 = vunpack.i.l.bf16 %v6190_v40 }
 0x59e   :  { %5774 = vmatpush3.bf16.msra.mxu1 %v5771_v25 }
 0x59f   :  { %5776 = vmatprep.subr.bf16.mxu1 %v5775_v14  ;;  %v5783_v54 = vpack.c.bf16 %v6192_v49, %v6191_v39  ;;  %v9106_v49 = vld [vmem:[#allocation19_spill] sm:$0xff] }
 0x5a2   :  { %5778 = vmatpush3.bf16.msra.mxu1 %v5775_v14 }
 0x5a3   :  { %5780 = vmatprep.subr.bf16.mxu1 %v5779_v11 }
 0x5a6   :  { %5782 = vmatpush3.bf16.msra.mxu1 %v5779_v11 }
 0x5a7   :  { %5784 = vmatprep.subr.bf16.mxu1 %v5783_v54 }
 0x5aa   :  { %5786 = vmatpush3.bf16.msra.mxu1 %v5783_v54 }
 0x5ab   :  { %5789 = vmatprep.subr.msk.bf16.mxu1 %vm7354_vm2, %v7688_v7 }
 0x5f9   :  { %v7693_v48 = vpop.f32.mrb[16].mxu0 }
 0x5fa   :  { %9087 = vst [vmem:[#allocation31_spill] sm:$0xff] %v7693_v48  ;;  %v7695_v8 = vpop.f32.mrb[17].mxu0 }
 0x5fb   :  { %9088 = vst [vmem:[#allocation32_spill] sm:$0xff] %v7695_v8 }
 0x62d   :  { %v7697_v33 = vpop.f32.mrb[18].mxu0 }
 0x62e   :  { %9089 = vst [vmem:[#allocation33_spill] sm:$0xff] %v7697_v33  ;;  %v7699_v18 = vpop.f32.mrb[19].mxu0 }
 0x62f   :  { %9090 = vst [vmem:[#allocation34_spill] sm:$0xff] %v7699_v18 }
 0x635   :  { %v7701_v20 = vpop.f32.mrb[20].mxu0 }
 0x636   :  { %9091 = vst [vmem:[#allocation35_spill] sm:$0xff] %v7701_v20  ;;  %v7703_v4 = vpop.f32.mrb[21].mxu0 }
 0x637   :  { %9092 = vst [vmem:[#allocation36_spill] sm:$0xff] %v7703_v4 }
 0x639   :  { %v7705_v24 = vpop.f32.mrb[22].mxu0 }
 0x63a   :  { %9093 = vst [vmem:[#allocation37_spill] sm:$0xff] %v7705_v24  ;;  %v7707_v50 = vpop.f32.mrb[23].mxu0 }
 0x63b   :  { %9094 = vst [vmem:[#allocation38_spill] sm:$0xff] %v7707_v50 }
 0x63e   :  { %v7709_v51 = vpop.f32.mrb[24].mxu0 }
 0x63f   :  { %9095 = vst [vmem:[#allocation39_spill] sm:$0xff] %v7709_v51  ;;  %v7711_v30 = vpop.f32.mrb[25].mxu0 }
 0x640   :  { %9096 = vst [vmem:[#allocation40_spill] sm:$0xff] %v7711_v30 }
 0x642   :  { %v7713_v35 = vpop.f32.mrb[26].mxu0 }
 0x643   :  { %9097 = vst [vmem:[#allocation41_spill] sm:$0xff] %v7713_v35  ;;  %v7715_v19 = vpop.f32.mrb[27].mxu0  ;;  %v9113_v35 = vld [vmem:[#allocation26_spill] sm:$0xff] }
 0x644   :  { %9098 = vst [vmem:[#allocation42_spill] sm:$0xff] %v7715_v19 }
 0x646   :  { %v7717_v26 = vpop.f32.mrb[28].mxu0 }
 0x647   :  { %9099 = vst [vmem:[#allocation43_spill] sm:$0xff] %v7717_v26  ;;  %v7719_v34 = vpop.f32.mrb[29].mxu0 }
 0x648   :  { %9100 = vst [vmem:[#allocation44_spill] sm:$0xff] %v7719_v34 }
 0x64a   :  { %v7721_v27 = vpop.f32.mrb[30].mxu0 }
 0x64b   :  { %9101 = vst [vmem:[#allocation45_spill] sm:$0xff] %v7721_v27  ;;  %v7723_v60 = vpop.f32.mrb[31].mxu0  ;;  %v9111_v27 = vld [vmem:[#allocation24_spill] sm:$0xff] }
 0x64c   :  { %9102 = vst [vmem:[#allocation46_spill] sm:$0xff] %v7723_v60 }
 0x64e   :  { %v5197_v16 = vpop.f32.mrb[32].mxu0 }
 0x64f   :  { %v1679_v41 = vadd.f32 %v5197_v16, %v7427_v10  ;;  %v1673_v22 = vpop.f32.mrb[33].mxu0 }
 0x650   :  { %v1674_v59 = vadd.f32 %v1673_v22, %v9103_v1  ;;  %v9108_v22 = vld [vmem:[#allocation21_spill] sm:$0xff] }
 0x651   :  { %1754 = vmax.xlane.f32.xlu1 %v1679_v41 }
 0x652   :  { %v5200_v52 = vpop.f32.mrb[34].mxu0  ;;  %1752 = vmax.xlane.f32.xlu0 %v1674_v59 }
 0x653   :  { %v7728_v38 = vadd.f32 %v5200_v52, %v9104_v43  ;;  %v1683_v61 = vpop.f32.mrb[35].mxu0 }
 0x654   :  { %v7732_v14 = vadd.f32 %v1683_v61, %v9105_v55  ;;  %v9109_v61 = vld [vmem:[#allocation22_spill] sm:$0xff] }
 0x656   :  { %v5203_v25 = vpop.f32.mrb[36].mxu0  ;;  %1758 = vmax.xlane.f32.xlu0 %v7728_v38 }
 0x657   :  { %v1693_v13 = vpop.f32.mrb[37].mxu0 }
 0x658   :  { %v7736_v39 = vadd.f32 %v1693_v13, %v9106_v49  ;;  %v9110_v49 = vld [vmem:[#allocation23_spill] sm:$0xff] }
 0x65a   :  { %v5206_v40 = vpop.f32.mrb[38].mxu0  ;;  %1756 = vmax.xlane.f32.xlu0 %v7732_v14 }
 0x65b   :  { %v1703_v10 = vpop.f32.mrb[39].mxu0 }
 0x65c   :  { %v7740_v36 = vadd.f32 %v1703_v10, %v9107_v0 }
 0x65e   :  { %v5209_v11 = vpop.f32.mrb[40].mxu0  ;;  %1760 = vmax.xlane.f32.xlu0 %v7736_v39 }
 0x65f   :  { %v1713_v42 = vpop.f32.mrb[41].mxu0 }
 0x660   :  { %v7746_v1 = vadd.f32 %v1713_v42, %v9108_v22  ;;  %v9112_v42 = vld [vmem:[#allocation25_spill] sm:$0xff] }
 0x661   :  { %v1699_v22 = vadd.f32 %v5203_v25, %v9112_v42  ;;  %v9117_v25 = vld [vmem:[#allocation30_spill] sm:$0xff] }
 0x662   :  { %6209 = vrot.lane.b32.xlu1 %v7251_v46, %s6820_s11  ;;  %v5212_v54 = vpop.f32.mrb[42].mxu0  ;;  %1764 = vmax.xlane.f32.xlu0 %v7740_v36 }
 0x663   :  { %v1723_v16 = vpop.f32.mrb[43].mxu0 }
 0x664   :  { %v7750_v13 = vadd.f32 %v1723_v16, %v9109_v61  ;;  %v1709_v16 = vadd.f32 %v5206_v40, %v9113_v35  ;;  %v9114_v61 = vld [vmem:[#allocation27_spill] sm:$0xff]  ;;  %v7778_v35 = vpop.permute.xlu1 %6199  ;;  %v7780_v40 = vpop.permute.xlu0 %6204 }
 0x665   :  { %v1719_v19 = vadd.f32 %v5209_v11, %v9114_v61 }
 0x666   :  { %v5215_v52 = vpop.f32.mrb[44].mxu0  ;;  %1768 = vmax.xlane.f32.xlu0 %v7746_v1 }
 0x667   :  { %v1733_v43 = vpop.f32.mrb[45].mxu0 }
 0x668   :  { %v7754_v0 = vadd.f32 %v1733_v43, %v9110_v49  ;;  %v9115_v43 = vld [vmem:[#allocation28_spill] sm:$0xff] }
 0x669   :  { %v7767_v49 = vadd.f32 %v5212_v54, %v9115_v43 }
 0x66a   :  { %v5218_v55 = vpop.f32.mrb[46].mxu0  ;;  %1772 = vmax.xlane.f32.xlu0 %v7750_v13 }
 0x66b   :  { %v1743_v10 = vpop.f32.mrb[47].mxu0  ;;  %v7775_v42 = vadd.f32 %v5218_v55, %v9117_v25 }
 0x66c   :  { %v7758_v26 = vadd.f32 %v1743_v10, %v9111_v27  ;;  %v9116_v27 = vld [vmem:[#allocation29_spill] sm:$0xff] }
 0x66d   :  { %v7771_v10 = vadd.f32 %v5215_v52, %v9116_v27 }
 0x66e   :  { %1776 = vmax.xlane.f32.xlu0 %v7754_v0 }
 0x672   :  { %1780 = vmax.xlane.f32.xlu0 %v7758_v26 }
 0x686   :  { %1762 = vmax.xlane.f32.xlu1 %v1699_v22 }
 0x688   :  { %6214 = vrot.lane.b32.xlu0 %v7260_v23, %s6820_s11 }
 0x68a   :  { %1766 = vmax.xlane.f32.xlu1 %v1709_v16 }
 0x68e   :  { %1770 = vmax.xlane.f32.xlu1 %v1719_v19 }
 0x692   :  { %1774 = vmax.xlane.f32.xlu1 %v7767_v49 }
 0x696   :  { %1778 = vmax.xlane.f32.xlu1 %v7771_v10 }
 0x69a   :  { %1782 = vmax.xlane.f32.xlu1 %v7775_v42 }
 0x6de   :  { %v1755_v11 = vpop.xlane.xlu1 %1754 }
 0x6df   :  { %v1785_v61 = vsub.f32 %v1679_v41, %v1755_v11  ;;  %v1753_v54 = vpop.xlane.xlu0 %1752 }
 0x6e0   :  { %v1784_v43 = vsub.f32 %v1674_v59, %v1753_v54 }
 0x6e1   :  { %v1802_v51 = vmul.f32 1.442695, %v1785_v61 }
 0x6e2   :  { %v1800_v30 = vmul.f32 1.442695, %v1784_v43 }
 0x6e3   :  { %6449 = vpow2.f32 %v1802_v51  ;;  %v1759_v55 = vpop.xlane.xlu0 %1758  ;;  %v7792_v51 = vpop.permute.xlu1 %6209 }
 0x6e4   :  { %6451 = vpow2.f32 %v1800_v30  ;;  %v1787_v11 = vsub.f32 %v7728_v38, %v1759_v55 }
 0x6e6   :  { %v1806_v50 = vmul.f32 1.442695, %v1787_v11 }
 0x6e7   :  { %v1757_v25 = vpop.xlane.xlu0 %1756 }
 0x6e8   :  { %v1786_v30 = vsub.f32 %v7732_v14, %v1757_v25 }
 0x6ea   :  { %v1804_v43 = vmul.f32 1.442695, %v1786_v30 }
 0x6eb   :  { %v1761_v41 = vpop.xlane.xlu0 %1760 }
 0x6ec   :  { %6453 = vpow2.f32 %v1804_v43  ;;  %v1788_v33 = vsub.f32 %v7736_v39, %v1761_v41 }
 0x6ed   :  { %v7782_v52 = vpop.eup %6449  ;;  %6455 = vpow2.f32 %v1806_v50 }
 0x6ee   :  { %v7784_v27 = vpop.eup %6451  ;;  %1834 = vadd.xlane.f32.xlu0 %v7782_v52  ;;  %v1808_v25 = vmul.f32 1.442695, %v1788_v33 }
 0x6ef   :  { %1832 = vadd.xlane.f32.xlu1 %v7784_v27  ;;  %v1765_v59 = vpop.xlane.xlu0 %1764 }
 0x6f0   :  { %v1790_v34 = vsub.f32 %v7740_v36, %v1765_v59 }
 0x6f2   :  { %v1812_v55 = vmul.f32 1.442695, %v1790_v34 }
 0x6f3   :  { %v1769_v61 = vpop.xlane.xlu0 %1768 }
 0x6f4   :  { %v1792_v39 = vsub.f32 %v7746_v1, %v1769_v61 }
 0x6f7   :  { %v1773_v18 = vpop.xlane.xlu0 %1772 }
 0x6f8   :  { %v1794_v38 = vsub.f32 %v7750_v13, %v1773_v18 }
 0x700   :  { %6219 = vrot.lane.b32.xlu1 %v7270_v21, %s6820_s11 }
 0x704   :  { %6224 = vrot.lane.b32.xlu0 %v7292_v12, %s6820_s11 }
 0x713   :  { %v1763_v54 = vpop.xlane.xlu1 %1762 }
 0x714   :  { %v1789_v24 = vsub.f32 %v1699_v22, %v1763_v54 }
 0x716   :  { %v1810_v20 = vmul.f32 1.442695, %v1789_v24  ;;  %v1820_v24 = vmul.f32 1.442695, %v1794_v38 }
 0x717   :  { %v1767_v4 = vpop.xlane.xlu1 %1766 }
 0x718   :  { %v1791_v60 = vsub.f32 %v1709_v16, %v1767_v4  ;;  %6457 = vpow2.f32 %v1810_v20  ;;  %v1777_v4 = vpop.xlane.xlu0 %1776  ;;  %v7800_v16 = vpop.eup %6453 }
 0x719   :  { %v7802_v36 = vpop.eup %6455 }
 0x71a   :  { %v1814_v48 = vmul.f32 1.442695, %v1791_v60 }
 0x71b   :  { %v1771_v14 = vpop.xlane.xlu1 %1770 }
 0x71c   :  { %6459 = vpow2.f32 %v1814_v48  ;;  %v1793_v22 = vsub.f32 %v1719_v19, %v1771_v14  ;;  %v1796_v48 = vsub.f32 %v7754_v0, %v1777_v4  ;;  %v1816_v19 = vmul.f32 1.442695, %v1792_v39  ;;  %v1781_v11 = vpop.xlane.xlu0 %1780 }
 0x71d   :  { %6461 = vpow2.f32 %v1808_v25 }
 0x71e   :  { %6463 = vpow2.f32 %v1812_v55  ;;  %v1818_v50 = vmul.f32 1.442695, %v1793_v22  ;;  %v1824_v41 = vmul.f32 1.442695, %v1796_v48  ;;  %v6202_v48 = vunpack.i.h.bf16 %v7778_v35 }
 0x71f   :  { %v1775_v30 = vpop.xlane.xlu1 %1774  ;;  %6465 = vpow2.f32 %v1820_v24 }
 0x720   :  { %6467 = vpow2.f32 %v1818_v50  ;;  %v1795_v34 = vsub.f32 %v7767_v49, %v1775_v30  ;;  %v1798_v49 = vsub.f32 %v7758_v26, %v1781_v11  ;;  %v6215_v24 = vpop.permute.xlu0 %6214 }
 0x722   :  { %v7808_v18 = vpop.eup %6457  ;;  %v1822_v0 = vmul.f32 1.442695, %v1795_v34 }
 0x723   :  { %v1779_v20 = vpop.xlane.xlu1 %1778  ;;  %1836 = vadd.xlane.f32.xlu0 %v7800_v16 }
 0x724   :  { %v1797_v33 = vsub.f32 %v7771_v10, %v1779_v20  ;;  %1838 = vadd.xlane.f32.xlu1 %v7802_v36 }
 0x726   :  { %v7811_v60 = vpop.eup %6459  ;;  %v1826_v1 = vmul.f32 1.442695, %v1797_v33  ;;  %v6201_v33 = vunpack.i.l.bf16 %v7778_v35  ;;  %v6206_v35 = vunpack.i.l.bf16 %v7780_v40 }
 0x727   :  { %v1783_v13 = vpop.xlane.xlu1 %1782  ;;  %1842 = vadd.xlane.f32.xlu0 %v7808_v18  ;;  %v7816_v59 = vpop.eup %6461 }
 0x728   :  { %6469 = vpow2.f32 %v1826_v1  ;;  %1846 = vadd.xlane.f32.xlu1 %v7811_v60  ;;  %v1799_v10 = vsub.f32 %v7775_v42, %v1783_v13  ;;  %v7818_v61 = vpop.eup %6463  ;;  %v1828_v42 = vmul.f32 1.442695, %v1798_v49  ;;  %v5793_v1 = vpack.c.bf16 %v6202_v48, %v6201_v33 }
 0x729   :  { %6471 = vpow2.f32 %v1816_v19  ;;  %v7823_v43 = vpop.eup %6465  ;;  %v6207_v13 = vunpack.i.h.bf16 %v7780_v40  ;;  %v6216_v40 = vunpack.i.l.bf16 %v6215_v24 }
 0x72a   :  { %6473 = vpow2.f32 %v1824_v41  ;;  %v1830_v54 = vmul.f32 1.442695, %v1799_v10  ;;  %v7825_v14 = vpop.eup %6467  ;;  %v6211_v41 = vunpack.i.l.bf16 %v7792_v51 }
 0x72b   :  { %1840 = vadd.xlane.f32.xlu0 %v7816_v59  ;;  %6475 = vpow2.f32 %v1822_v0 }
 0x72c   :  { %1844 = vadd.xlane.f32.xlu1 %v7818_v61  ;;  %6477 = vpow2.f32 %v1830_v54 }
 0x72d   :  { %6479 = vpow2.f32 %v1828_v42 }
 0x72f   :  { %1852 = vadd.xlane.f32.xlu0 %v7823_v43 }
 0x730   :  { %1850 = vadd.xlane.f32.xlu1 %v7825_v14 }
 0x732   :  { %v7829_v25 = vpop.eup %6469 }
 0x733   :  { %v7831_v38 = vpop.eup %6471  ;;  %1858 = vadd.xlane.f32.xlu0 %v7829_v25 }
 0x734   :  { %1848 = vadd.xlane.f32.xlu1 %v7831_v38  ;;  %v7835_v26 = vpop.eup %6473 }
 0x735   :  { %v7837_v55 = vpop.eup %6475 }
 0x736   :  { %v7841_v22 = vpop.eup %6477 }
 0x737   :  { %1856 = vadd.xlane.f32.xlu0 %v7835_v26  ;;  %v7844_v30 = vpop.eup %6479 }
 0x738   :  { %1854 = vadd.xlane.f32.xlu1 %v7837_v55 }
 0x73c   :  { %1862 = vadd.xlane.f32.xlu1 %v7841_v22 }
 0x740   :  { %1860 = vadd.xlane.f32.xlu1 %v7844_v30 }
 0x74d   :  { %6229 = vrot.lane.b32.xlu0 %v7298_v32, %s6820_s11 }
 0x751   :  { %2105 = vrot.lane.b32.xlu0 %v7268_v37, %s6821_s14  ;;  %2107 = vrot.lane.b32.xlu1 %v7272_v47, %s6821_s14 }
 0x755   :  { %2109 = vrot.lane.b32.xlu0 %v7274_v62, %s6821_s14  ;;  %2111 = vrot.lane.b32.xlu1 %v7276_v63, %s6821_s14 }
 0x759   :  { %2113 = vrot.lane.b32.xlu0 %v7278_v2, %s6821_s14  ;;  %2115 = vrot.lane.b32.xlu1 %v7280_v3, %s6821_s14 }
 0x75d   :  { %2117 = vrot.lane.b32.xlu0 %v7286_v5, %s6821_s14  ;;  %2119 = vrot.lane.b32.xlu1 %v7288_v6, %s6821_s14 }
 0x761   :  { %2121 = vrot.lane.b32.xlu0 %v7320_v28, %s6821_s14  ;;  %2123 = vrot.lane.b32.xlu1 %v7322_v45, %s6821_s14 }
 0x765   :  { %2125 = vrot.lane.b32.xlu0 %v7324_v29, %s6821_s14  ;;  %2127 = vrot.lane.b32.xlu1 %v7326_v53, %s6821_s14 }
 0x769   :  { %2129 = vrot.lane.b32.xlu0 %v7328_v56, %s6821_s14  ;;  %2131 = vrot.lane.b32.xlu1 %v7330_v57, %s6821_s14 }
 0x76d   :  { %2133 = vrot.lane.b32.xlu0 %v7332_v17, %s6821_s14  ;;  %2135 = vrot.lane.b32.xlu1 %v7334_v58, %s6821_s14 }
 0x771   :  { %6234 = vrot.lane.b32.xlu0 %v7230_v9, %s6822_s26  ;;  %6239 = vrot.lane.b32.xlu1 %v7236_v15, %s6822_s26 }
 0x775   :  { %6249 = vrot.lane.b32.xlu0 %v7251_v46, %s6822_s26  ;;  %6244 = vrot.lane.b32.xlu1 %v7244_v31, %s6822_s26 }
 0x779   :  { %6254 = vrot.lane.b32.xlu0 %v7260_v23, %s6822_s26  ;;  %6259 = vrot.lane.b32.xlu1 %v7270_v21, %s6822_s26 }
 0x77b   :  { %v1835_v39 = vpop.xlane.xlu0 %1834 }
 0x77c   :  { %6481 = vrcp.f32 %v1835_v39  ;;  %v1833_v4 = vpop.xlane.xlu1 %1832 }
 0x77d   :  { %6483 = vrcp.f32 %v1833_v4  ;;  %6274 = vrot.lane.b32.xlu0 %v7230_v9, %s6823_s27  ;;  %6264 = vrot.lane.b32.xlu1 %v7292_v12, %s6822_s26 }
 0x77f   :  { %v6225_v42 = vpop.permute.xlu0 %6224 }
 0x780   :  { %v6220_v11 = vpop.permute.xlu1 %6219  ;;  %v6227_v39 = vunpack.i.h.bf16 %v6225_v42 }
 0x781   :  { %6284 = vrot.lane.b32.xlu0 %v7244_v31, %s6823_s27  ;;  %6269 = vrot.lane.b32.xlu1 %v7298_v32, %s6822_s26  ;;  %v6222_v49 = vunpack.i.h.bf16 %v6220_v11  ;;  %v6221_v54 = vunpack.i.l.bf16 %v6220_v11 }
 0x785   :  { %6279 = vrot.lane.b32.xlu1 %v7236_v15, %s6823_s27 }
 0x786   :  { %v6482_v50 = vpop.eup %6481 }
 0x787   :  { %v6484_v20 = vpop.eup %6483  ;;  %v1867_v34 = vmul.f32 %v6482_v50, %v7782_v52  ;;  %v6212_v52 = vunpack.i.h.bf16 %v7792_v51  ;;  %v5817_v51 = vpack.c.bf16 %v6222_v49, %v6221_v54 }
 0x788   :  { %v1865_v19 = vmul.f32 %v6484_v20, %v7784_v27  ;;  %v5799_v27 = vpack.c.bf16 %v6207_v13, %v6206_v35 }
 0x789   :  { %6289 = vrot.lane.b32.xlu1 %v7251_v46, %s6823_s27  ;;  %v5805_v0 = vpack.c.bf16 %v6212_v52, %v6211_v41 }
 0x78a   :  { %5251 = vmatprep.mubr.f32.mxu1 %v1865_v19 }
 0x78b   :  { %5252 = vmatmul.mubr.f32.vlgmr.msra.gmra.mrb[16].mxu1 %v1867_v34 }
 0x78c   :  { %5792 = vmatpush3.bf16.xpose.msk.msra.mxu1 %vm7354_vm2, %v7688_v7  ;;  %v6217_v7 = vunpack.i.h.bf16 %v6215_v24  ;;  %v6226_v24 = vunpack.i.l.bf16 %v6225_v42 }
 0x78d   :  { %5795 = vmatprep.subr.msk.bf16.mxu1 %vm7354_vm2, %v5793_v1 }
 0x78e   :  { %v5811_v10 = vpack.c.bf16 %v6217_v7, %v6216_v40  ;;  %v5823_v20 = vpack.c.bf16 %v6227_v39, %v6226_v24 }
 0x794   :  { %5798 = vmatpush3.bf16.xpose.msk.msra.mxu1 %vm7354_vm2, %v5793_v1 }
 0x795   :  { %5801 = vmatprep.subr.msk.bf16.mxu1 %vm7354_vm2, %v5799_v27 }
 0x79c   :  { %5804 = vmatpush3.bf16.xpose.msk.msra.mxu1 %vm7354_vm2, %v5799_v27 }
 0x79d   :  { %5807 = vmatprep.subr.msk.bf16.mxu1 %vm7354_vm2, %v5805_v0 }
 0x7a4   :  { %5810 = vmatpush3.bf16.xpose.msk.msra.mxu1 %vm7354_vm2, %v5805_v0 }
 0x7a5   :  { %5813 = vmatprep.subr.msk.bf16.mxu1 %vm7354_vm2, %v5811_v10 }
 0x7ac   :  { %5816 = vmatpush3.bf16.xpose.msk.msra.mxu1 %vm7354_vm2, %v5811_v10 }
 0x7ad   :  { %5819 = vmatprep.subr.msk.bf16.mxu1 %vm7354_vm2, %v5817_v51 }
 0x7b0   :  { %v1837_v4 = vpop.xlane.xlu0 %1836 }
 0x7b1   :  { %6485 = vrcp.f32 %v1837_v4  ;;  %v1839_v50 = vpop.xlane.xlu1 %1838 }
 0x7b2   :  { %6487 = vrcp.f32 %v1839_v50 }
 0x7b4   :  { %5822 = vmatpush3.bf16.xpose.msk.msra.mxu1 %vm7354_vm2, %v5817_v51  ;;  %v1843_v48 = vpop.xlane.xlu0 %1842 }
 0x7b5   :  { %5825 = vmatprep.subr.msk.bf16.mxu1 %vm7354_vm2, %v5823_v20  ;;  %v1847_v33 = vpop.xlane.xlu1 %1846  ;;  %6489 = vrcp.f32 %v1843_v48 }
 0x7b8   :  { %v1841_v19 = vpop.xlane.xlu0 %1840 }
 0x7b9   :  { %6491 = vrcp.f32 %v1841_v19  ;;  %v1845_v34 = vpop.xlane.xlu1 %1844 }
 0x7ba   :  { %6493 = vrcp.f32 %v1845_v34 }
 0x7bb   :  { %v6486_v1 = vpop.eup %6485  ;;  %6495 = vrcp.f32 %v1847_v33 }
 0x7bc   :  { %v6488_v13 = vpop.eup %6487  ;;  %5828 = vmatpush3.bf16.xpose.msk.msra.mxu1 %vm7354_vm2, %v5823_v20  ;;  %v1853_v35 = vpop.xlane.xlu0 %1852  ;;  %v1869_v27 = vmul.f32 %v6486_v1, %v7800_v16 }
 0x7bd   :  { %v1851_v52 = vpop.xlane.xlu1 %1850  ;;  %v1871_v41 = vmul.f32 %v6488_v13, %v7802_v36  ;;  %6497 = vrcp.f32 %v1853_v35 }
 0x7be   :  { %5254 = vmatprep.mubr.f32.mxu1 %v1869_v27  ;;  %6499 = vrcp.f32 %v1851_v52 }
 0x7bf   :  { %5255 = vmatmul.mubr.f32.gmra.mrb[18].mxu1 %v1871_v41  ;;  %v6490_v40 = vpop.eup %6489 }
 0x7c0   :  { %v1859_v0 = vpop.xlane.xlu0 %1858  ;;  %v1875_v16 = vmul.f32 %v6490_v40, %v7808_v18 }
 0x7c1   :  { %v1849_v7 = vpop.xlane.xlu1 %1848 }
 0x7c2   :  { %6501 = vrcp.f32 %v1849_v7 }
 0x7c3   :  { %v6492_v10 = vpop.eup %6491 }
 0x7c4   :  { %v6494_v11 = vpop.eup %6493  ;;  %v1857_v49 = vpop.xlane.xlu0 %1856  ;;  %v1873_v54 = vmul.f32 %v6492_v10, %v7816_v59 }
 0x7c5   :  { %6503 = vrcp.f32 %v1857_v49  ;;  %v1855_v51 = vpop.xlane.xlu1 %1854  ;;  %v1877_v42 = vmul.f32 %v6494_v11, %v7818_v61  ;;  %v6496_v36 = vpop.eup %6495 }
 0x7c6   :  { %6505 = vrcp.f32 %v1855_v51  ;;  %5257 = vmatprep.mubr.f32.mxu1 %v1873_v54  ;;  %v1879_v20 = vmul.f32 %v6496_v36, %v7811_v60 }
 0x7c7   :  { %5258 = vmatmul.mubr.f32.gmra.mrb[20].mxu1 %v1875_v16  ;;  %6507 = vrcp.f32 %v1859_v0  ;;  %v6498_v48 = vpop.eup %6497 }
 0x7c8   :  { %5260 = vmatprep.mubr.f32.mxu1 %v1877_v42  ;;  %v6230_v39 = vpop.permute.xlu0 %6229  ;;  %v6500_v59 = vpop.eup %6499  ;;  %v1885_v13 = vmul.f32 %v6498_v48, %v7823_v43 }
 0x7c9   :  { %v6232_v24 = vunpack.i.h.bf16 %v6230_v39  ;;  %v6231_v4 = vunpack.i.l.bf16 %v6230_v39  ;;  %v1863_v50 = vpop.xlane.xlu1 %1862  ;;  %v1883_v1 = vmul.f32 %v6500_v59, %v7825_v14 }
 0x7ca   :  { %6509 = vrcp.f32 %v1863_v50 }
 0x7cb   :  { %v5829_v33 = vpack.c.bf16 %v6232_v24, %v6231_v4  ;;  %5261 = vmatmul.mubr.f32.gmra.mrb[22].mxu1 %v1879_v20 }
 0x7cc   :  { %v6502_v19 = vpop.eup %6501  ;;  %v2106_v18 = vpop.permute.xlu0 %2105 }
 0x7cd   :  { %v1861_v61 = vpop.xlane.xlu1 %1860  ;;  %5831 = vmatprep.subr.msk.bf16.mxu1 %vm7354_vm2, %v5829_v33  ;;  %v1881_v34 = vmul.f32 %v6502_v19, %v7831_v38 }
 0x7ce   :  { %6511 = vrcp.f32 %v1861_v61  ;;  %5834 = vmatpush3.bf16.xpose.msk.msra.mxu1 %vm7354_vm2, %v5829_v33 }
 0x7cf   :  { %v6504_v60 = vpop.eup %6503  ;;  %5263 = vmatprep.mubr.f32.mxu1 %v1881_v34 }
 0x7d0   :  { %v6506_v35 = vpop.eup %6505  ;;  %5264 = vmatmul.mubr.f32.gmra.mrb[24].mxu1 %v1883_v1  ;;  %v2110_v27 = vpop.permute.xlu0 %2109  ;;  %v1889_v38 = vmul.f32 %v6504_v60, %v7835_v26 }
 0x7d1   :  { %v2108_v52 = vpop.permute.xlu1 %2107  ;;  %5266 = vmatprep.mubr.f32.mxu1 %v1885_v13  ;;  %v1887_v41 = vmul.f32 %v6506_v35, %v7837_v55  ;;  %v6508_v0 = vpop.eup %6507 }
 0x7d2   :  { %v1891_v14 = vmul.f32 %v6508_v0, %v7829_v25 }
 0x7d4   :  { %5267 = vmatmul.mubr.f32.gmra.mrb[26].mxu1 %v1887_v41  ;;  %v2114_v7 = vpop.permute.xlu0 %2113  ;;  %v6510_v10 = vpop.eup %6509 }
 0x7d5   :  { %v2112_v40 = vpop.permute.xlu1 %2111  ;;  %5269 = vmatprep.mubr.f32.mxu1 %v1889_v38  ;;  %v1895_v51 = vmul.f32 %v6510_v10, %v7841_v22 }
 0x7d8   :  { %v6512_v11 = vpop.eup %6511  ;;  %5270 = vmatmul.mubr.f32.gmra.mrb[28].mxu1 %v1891_v14  ;;  %v2118_v43 = vpop.permute.xlu0 %2117 }
 0x7d9   :  { %v2116_v49 = vpop.permute.xlu1 %2115  ;;  %v1893_v54 = vmul.f32 %v6512_v11, %v7844_v30 }
 0x7db   :  { %5272 = vmatprep.mubr.f32.mxu1 %v1893_v54 }
 0x7dc   :  { %5273 = vmatmul.mubr.f32.gmra.mrb[30].mxu1 %v1895_v51  ;;  %v2122_v55 = vpop.permute.xlu0 %2121 }
 0x7dd   :  { %v2120_v16 = vpop.permute.xlu1 %2119  ;;  %5307 = vmatprep.mubr.msk.f32.mxu1 %vm900_vm1, %v2106_v18 }
 0x7e0   :  { %v2126_v26 = vpop.permute.xlu0 %2125  ;;  %5308 = vmatmul.mubr.msk.f32.vlgmr.msra.gmra.mrb[32].mxu1 %vm900_vm1, %v2108_v52 }
 0x7e1   :  { %v2124_v42 = vpop.permute.xlu1 %2123  ;;  %5310 = vmatprep.mubr.msk.f32.mxu1 %vm900_vm1, %v2110_v27 }
 0x7e4   :  { %v2130_v25 = vpop.permute.xlu0 %2129  ;;  %5311 = vmatmul.mubr.msk.f32.gmra.mrb[34].mxu1 %vm900_vm1, %v2112_v40 }
 0x7e5   :  { %v2128_v36 = vpop.permute.xlu1 %2127  ;;  %5313 = vmatprep.mubr.msk.f32.mxu1 %vm900_vm1, %v2114_v7 }
 0x7e8   :  { %v2134_v30 = vpop.permute.xlu0 %2133  ;;  %5314 = vmatmul.mubr.msk.f32.gmra.mrb[36].mxu1 %vm900_vm1, %v2116_v49 }
 0x7e9   :  { %v2132_v22 = vpop.permute.xlu1 %2131  ;;  %5316 = vmatprep.mubr.msk.f32.mxu1 %vm900_vm1, %v2118_v43 }
 0x7ec   :  { %v6235_v39 = vpop.permute.xlu0 %6234  ;;  %5317 = vmatmul.mubr.msk.f32.gmra.mrb[38].mxu1 %vm900_vm1, %v2120_v16 }
 0x7ed   :  { %v6237_v24 = vunpack.i.h.bf16 %v6235_v39  ;;  %v6236_v4 = vunpack.i.l.bf16 %v6235_v39  ;;  %v2136_v50 = vpop.permute.xlu1 %2135  ;;  %5319 = vmatprep.mubr.msk.f32.mxu1 %vm900_vm1, %v2122_v55 }
 0x7ef   :  { %v5835_v20 = vpack.c.bf16 %v6237_v24, %v6236_v4 }
 0x7f0   :  { %5320 = vmatmul.mubr.msk.f32.gmra.mrb[40].mxu1 %vm900_vm1, %v2124_v42  ;;  %v6250_v48 = vpop.permute.xlu0 %6249 }
 0x7f1   :  { %v6240_v59 = vpop.permute.xlu1 %6239  ;;  %5322 = vmatprep.mubr.msk.f32.mxu1 %vm900_vm1, %v2126_v26  ;;  %5836 = vmatprep.subr.bf16.mxu0 %v5835_v20  ;;  %v6252_v34 = vunpack.i.h.bf16 %v6250_v48  ;;  %v6251_v1 = vunpack.i.l.bf16 %v6250_v48 }
 0x7f2   :  { %v6242_v33 = vunpack.i.h.bf16 %v6240_v59  ;;  %v6241_v19 = vunpack.i.l.bf16 %v6240_v59  ;;  %5838 = vmatpush3.bf16.msra.mxu0 %v5835_v20 }
 0x7f3   :  { %v5847_v38 = vpack.c.bf16 %v6252_v34, %v6251_v1 }
 0x7f4   :  { %5323 = vmatmul.mubr.msk.f32.gmra.mrb[42].mxu1 %vm900_vm1, %v2128_v36  ;;  %v5839_v18 = vpack.c.bf16 %v6242_v33, %v6241_v19  ;;  %v6255_v35 = vpop.permute.xlu0 %6254 }
 0x7f5   :  { %v6245_v61 = vpop.permute.xlu1 %6244  ;;  %5325 = vmatprep.mubr.msk.f32.mxu1 %vm900_vm1, %v2130_v25  ;;  %v6257_v41 = vunpack.i.h.bf16 %v6255_v35  ;;  %v6256_v0 = vunpack.i.l.bf16 %v6255_v35  ;;  %v7987_v35 = vld [vmem:[#allocation2 + $0x8] sm:$0xff] }
 0x7f6   :  { %v6247_v60 = vunpack.i.h.bf16 %v6245_v61  ;;  %v6246_v13 = vunpack.i.l.bf16 %v6245_v61  ;;  %5840 = vmatprep.subr.bf16.mxu0 %v5839_v18 }
 0x7f7   :  { %5842 = vmatpush3.bf16.msra.mxu0 %v5839_v18  ;;  %v5851_v10 = vpack.c.bf16 %v6257_v41, %v6256_v0 }
 0x7f8   :  { %5326 = vmatmul.mubr.msk.f32.gmra.mrb[44].mxu1 %vm900_vm1, %v2132_v22  ;;  %v5843_v27 = vpack.c.bf16 %v6247_v60, %v6246_v13  ;;  %v6275_v26 = vpop.permute.xlu0 %6274 }
 0x7f9   :  { %v6260_v52 = vpop.permute.xlu1 %6259  ;;  %5328 = vmatprep.mubr.msk.f32.mxu1 %vm900_vm1, %v2134_v30  ;;  %v6277_v42 = vunpack.i.h.bf16 %v6275_v26  ;;  %v6276_v25 = vunpack.i.l.bf16 %v6275_v26  ;;  %v8017_v26 = vld [vmem:[#allocation2 + $0x20] sm:$0xff] }
 0x7fa   :  { %5844 = vmatprep.subr.bf16.mxu0 %v5843_v27  ;;  %v6262_v40 = vunpack.i.h.bf16 %v6260_v52  ;;  %v6261_v14 = vunpack.i.l.bf16 %v6260_v52  ;;  %9135 = vst [vmem:[#allocation49_spill] sm:$0xff] %v8017_v26 }
 0x7fb   :  { %5846 = vmatpush3.bf16.msra.mxu0 %v5843_v27  ;;  %v7950_v30 = vpack.c.bf16 %v6277_v42, %v6276_v25  ;;  %v7989_v27 = vld [vmem:[#allocation2] sm:$0xff] }
 0x7fc   :  { %5329 = vmatmul.mubr.msk.f32.gmra.mrb[46].mxu1 %vm900_vm1, %v2136_v50  ;;  %5848 = vmatprep.subr.bf16.mxu0 %v5847_v38  ;;  %v5855_v49 = vpack.c.bf16 %v6262_v40, %v6261_v14 }
 0x7fd   :  { %v6265_v7 = vpop.permute.xlu1 %6264 }
 0x7fe   :  { %v6267_v11 = vunpack.i.h.bf16 %v6265_v7  ;;  %v6266_v43 = vunpack.i.l.bf16 %v6265_v7  ;;  %v7997_v7 = vld [vmem:[#allocation2 + $0x18] sm:$0xff] }
 0x7ff   :  { %5850 = vmatpush3.bf16.msra.mxu0 %v5847_v38 }
 0x800   :  { %5852 = vmatprep.subr.bf16.mxu0 %v5851_v10  ;;  %v5859_v16 = vpack.c.bf16 %v6267_v11, %v6266_v43  ;;  %v8004_v11 = vld [vmem:[#allocation2 + $0x28] sm:$0xff]  ;;  %v8006_v43 = vld [vmem:[#allocation2 + $0x10] sm:$0xff] }
 0x801   :  { %v6270_v54 = vpop.permute.xlu1 %6269 }
 0x802   :  { %v6272_v51 = vunpack.i.h.bf16 %v6270_v54  ;;  %v6271_v55 = vunpack.i.l.bf16 %v6270_v54 }
 0x803   :  { %5854 = vmatpush3.bf16.msra.mxu0 %v5851_v10 }
 0x804   :  { %5856 = vmatprep.subr.bf16.mxu0 %v5855_v49  ;;  %v5863_v36 = vpack.c.bf16 %v6272_v51, %v6271_v55 }
 0x807   :  { %5858 = vmatpush3.bf16.msra.mxu0 %v5855_v49 }
 0x808   :  { %5860 = vmatprep.subr.bf16.mxu0 %v5859_v16 }
 0x80b   :  { %5862 = vmatpush3.bf16.msra.mxu0 %v5859_v16  ;;  %v8015_v16 = vld [vmem:[#allocation2 + $0x38] sm:$0xff] }
 0x80c   :  { %5864 = vmatprep.subr.bf16.mxu0 %v5863_v36  ;;  %9134 = vst [vmem:[#allocation48_spill] sm:$0xff] %v8015_v16 }
 0x80f   :  { %5866 = vmatpush3.bf16.msra.mxu0 %v5863_v36 }
 0x810   :  { %5869 = vmatprep.subr.msk.bf16.mxu0 %vm7354_vm2, %v7950_v30 }
 0x85e   :  { %v7955_v22 = vpop.f32.mrb[16].mxu1 }
 0x85f   :  { %9118 = vst [vmem:[#allocation16_spill] sm:$0xff] %v7955_v22  ;;  %v7957_v39 = vpop.f32.mrb[17].mxu1 }
 0x860   :  { %9119 = vst [vmem:[#allocation17_spill] sm:$0xff] %v7957_v39 }
 0x892   :  { %v7959_v24 = vpop.f32.mrb[18].mxu1 }
 0x893   :  { %9120 = vst [vmem:[#allocation18_spill] sm:$0xff] %v7959_v24  ;;  %v7961_v4 = vpop.f32.mrb[19].mxu1  ;;  %v8075_v24 = vld [vmem:[#allocation2 + $0x70] sm:$0xff] }
 0x894   :  { %9121 = vst [vmem:[#allocation19_spill] sm:$0xff] %v7961_v4  ;;  %9144 = vst [vmem:[#allocation58_spill] sm:$0xff] %v8075_v24  ;;  %v8091_v4 = vpop.permute.xlu0 %6284 }
 0x89a   :  { %v7963_v50 = vpop.f32.mrb[20].mxu1 }
 0x89b   :  { %9122 = vst [vmem:[#allocation20_spill] sm:$0xff] %v7963_v50  ;;  %v7965_v20 = vpop.f32.mrb[21].mxu1  ;;  %v8063_v50 = vld [vmem:[#allocation2 + $0x78] sm:$0xff] }
 0x89c   :  { %9123 = vst [vmem:[#allocation21_spill] sm:$0xff] %v7965_v20  ;;  %9142 = vst [vmem:[#allocation56_spill] sm:$0xff] %v8063_v50 }
 0x89e   :  { %v7967_v48 = vpop.f32.mrb[22].mxu1 }
 0x89f   :  { %9124 = vst [vmem:[#allocation22_spill] sm:$0xff] %v7967_v48  ;;  %v7969_v59 = vpop.f32.mrb[23].mxu1 }
 0x8a0   :  { %9125 = vst [vmem:[#allocation23_spill] sm:$0xff] %v7969_v59 }
 0x8a3   :  { %v7971_v33 = vpop.f32.mrb[24].mxu1 }
 0x8a4   :  { %9126 = vst [vmem:[#allocation24_spill] sm:$0xff] %v7971_v33  ;;  %v7973_v19 = vpop.f32.mrb[25].mxu1  ;;  %v8051_v33 = vld [vmem:[#allocation2 + $0x68] sm:$0xff] }
 0x8a5   :  { %9127 = vst [vmem:[#allocation25_spill] sm:$0xff] %v7973_v19  ;;  %9140 = vst [vmem:[#allocation54_spill] sm:$0xff] %v8051_v33 }
 0x8a7   :  { %v7975_v18 = vpop.f32.mrb[26].mxu1 }
 0x8a8   :  { %9128 = vst [vmem:[#allocation26_spill] sm:$0xff] %v7975_v18  ;;  %v7977_v61 = vpop.f32.mrb[27].mxu1 }
 0x8a9   :  { %9129 = vst [vmem:[#allocation27_spill] sm:$0xff] %v7977_v61 }
 0x8ab   :  { %v7979_v34 = vpop.f32.mrb[28].mxu1 }
 0x8ac   :  { %9130 = vst [vmem:[#allocation28_spill] sm:$0xff] %v7979_v34  ;;  %v7981_v1 = vpop.f32.mrb[29].mxu1 }
 0x8ad   :  { %9131 = vst [vmem:[#allocation29_spill] sm:$0xff] %v7981_v1 }
 0x8af   :  { %v7983_v60 = vpop.f32.mrb[30].mxu1 }
 0x8b0   :  { %9132 = vst [vmem:[#allocation30_spill] sm:$0xff] %v7983_v60  ;;  %v7985_v13 = vpop.f32.mrb[31].mxu1  ;;  %v8039_v60 = vld [vmem:[#allocation2 + $0x58] sm:$0xff] }
 0x8b1   :  { %9133 = vst [vmem:[#allocation47_spill] sm:$0xff] %v7985_v13  ;;  %9138 = vst [vmem:[#allocation52_spill] sm:$0xff] %v8039_v60 }
 0x8b3   :  { %v5309_v52 = vpop.f32.mrb[32].mxu1 }
 0x8b4   :  { %v7992_v41 = vadd.f32 %v5309_v52, %v7987_v35  ;;  %v2299_v0 = vpop.f32.mrb[33].mxu1 }
 0x8b5   :  { %v7995_v38 = vadd.f32 %v2299_v0, %v7989_v27  ;;  %v8027_v0 = vld [vmem:[#allocation2 + $0x48] sm:$0xff] }
 0x8b6   :  { %2380 = vmax.xlane.f32.xlu1 %v7992_v41  ;;  %9136 = vst [vmem:[#allocation50_spill] sm:$0xff] %v8027_v0 }
 0x8b7   :  { %v5312_v40 = vpop.f32.mrb[34].mxu1  ;;  %2378 = vmax.xlane.f32.xlu0 %v7995_v38 }
 0x8b8   :  { %v8002_v14 = vadd.f32 %v5312_v40, %v7997_v7  ;;  %v2309_v10 = vpop.f32.mrb[35].mxu1  ;;  %v8029_v40 = vld [vmem:[#allocation2 + $0x30] sm:$0xff] }
 0x8b9   :  { %v8013_v55 = vadd.f32 %v2309_v10, %v8006_v43  ;;  %9137 = vst [vmem:[#allocation51_spill] sm:$0xff] %v8029_v40 }
 0x8bb   :  { %v5315_v49 = vpop.f32.mrb[36].mxu1  ;;  %2384 = vmax.xlane.f32.xlu0 %v8002_v14 }
 0x8bc   :  { %v8010_v54 = vadd.f32 %v5315_v49, %v8004_v11  ;;  %v2319_v51 = vpop.f32.mrb[37].mxu1 }
 0x8bd   :  { %v8025_v52 = vadd.f32 %v2319_v51, %v8017_v26  ;;  %v8041_v51 = vld [vmem:[#allocation2 + $0x40] sm:$0xff] }
 0x8be   :  { %2388 = vmax.xlane.f32.xlu1 %v8010_v54  ;;  %9139 = vst [vmem:[#allocation53_spill] sm:$0xff] %v8041_v51 }
 0x8bf   :  { %v5318_v42 = vpop.f32.mrb[38].mxu1  ;;  %2382 = vmax.xlane.f32.xlu0 %v8013_v55 }
 0x8c0   :  { %v8022_v25 = vadd.f32 %v5318_v42, %v8015_v16  ;;  %v2329_v36 = vpop.f32.mrb[39].mxu1 }
 0x8c1   :  { %v8037_v42 = vadd.f32 %v2329_v36, %v8029_v40  ;;  %v8053_v36 = vld [vmem:[#allocation2 + $0x50] sm:$0xff] }
 0x8c2   :  { %2392 = vmax.xlane.f32.xlu1 %v8022_v25  ;;  %9141 = vst [vmem:[#allocation55_spill] sm:$0xff] %v8053_v36 }
 0x8c3   :  { %v5321_v10 = vpop.f32.mrb[40].mxu1  ;;  %2386 = vmax.xlane.f32.xlu0 %v8025_v52 }
 0x8c4   :  { %v8034_v49 = vadd.f32 %v5321_v10, %v8027_v0  ;;  %v2339_v8 = vpop.f32.mrb[41].mxu1 }
 0x8c5   :  { %v8049_v10 = vadd.f32 %v2339_v8, %v8041_v51  ;;  %v8065_v8 = vld [vmem:[#allocation2 + $0x60] sm:$0xff] }
 0x8c6   :  { %2396 = vmax.xlane.f32.xlu1 %v8034_v49  ;;  %9143 = vst [vmem:[#allocation57_spill] sm:$0xff] %v8065_v8 }
 0x8c7   :  { %v5324_v34 = vpop.f32.mrb[42].mxu1  ;;  %2390 = vmax.xlane.f32.xlu0 %v8037_v42 }
 0x8c8   :  { %v8046_v18 = vadd.f32 %v5324_v34, %v8039_v60  ;;  %v2349_v13 = vpop.f32.mrb[43].mxu1 }
 0x8c9   :  { %v8061_v34 = vadd.f32 %v2349_v13, %v8053_v36 }
 0x8ca   :  { %2400 = vmax.xlane.f32.xlu1 %v8046_v18 }
 0x8cb   :  { %v5327_v1 = vpop.f32.mrb[44].mxu1  ;;  %2394 = vmax.xlane.f32.xlu0 %v8049_v10 }
 0x8cc   :  { %v8058_v48 = vadd.f32 %v5327_v1, %v8051_v33  ;;  %v2359_v61 = vpop.f32.mrb[45].mxu1 }
 0x8cd   :  { %v8073_v1 = vadd.f32 %v2359_v61, %v8065_v8 }
 0x8ce   :  { %2404 = vmax.xlane.f32.xlu1 %v8058_v48 }
 0x8cf   :  { %v5330_v19 = vpop.f32.mrb[46].mxu1  ;;  %2398 = vmax.xlane.f32.xlu0 %v8061_v34 }
 0x8d0   :  { %v8070_v59 = vadd.f32 %v5330_v19, %v8063_v50  ;;  %v2369_v20 = vpop.f32.mrb[47].mxu1  ;;  %v8087_v19 = vpop.permute.xlu1 %6279 }
 0x8d1   :  { %v8080_v13 = vadd.f32 %v2369_v20, %v8075_v24 }
 0x8d2   :  { %2408 = vmax.xlane.f32.xlu1 %v8070_v59 }
 0x8d3   :  { %2402 = vmax.xlane.f32.xlu0 %v8073_v1 }
 0x8d4   :  { %v8089_v61 = vpop.permute.xlu1 %6289 }
 0x8d7   :  { %2406 = vmax.xlane.f32.xlu0 %v8080_v13 }
 0x8e3   :  { %6299 = vrot.lane.b32.xlu1 %v7270_v21, %s6823_s27 }
 0x8ed   :  { %6294 = vrot.lane.b32.xlu0 %v7260_v23, %s6823_s27 }
 0x943   :  { %v2381_v22 = vpop.xlane.xlu1 %2380 }
 0x944   :  { %v2411_v39 = vsub.f32 %v7992_v41, %v2381_v22  ;;  %v2379_v8 = vpop.xlane.xlu0 %2378 }
 0x945   :  { %v2410_v20 = vsub.f32 %v7995_v38, %v2379_v8 }
 0x946   :  { %v2428_v24 = vmul.f32 1.442695, %v2411_v39 }
 0x947   :  { %v2426_v50 = vmul.f32 1.442695, %v2410_v20 }
 0x948   :  { %6513 = vpow2.f32 %v2428_v24  ;;  %v2385_v36 = vpop.xlane.xlu0 %2384 }
 0x949   :  { %6515 = vpow2.f32 %v2426_v50  ;;  %v2413_v21 = vsub.f32 %v8002_v14, %v2385_v36 }
 0x94b   :  { %v2432_v33 = vmul.f32 1.442695, %v2413_v21  ;;  %v2389_v51 = vpop.xlane.xlu1 %2388 }
 0x94c   :  { %v2383_v60 = vpop.xlane.xlu0 %2382 }
 0x94d   :  { %6517 = vpow2.f32 %v2432_v33 }
 0x94f   :  { %v2393_v40 = vpop.xlane.xlu1 %2392 }
 0x950   :  { %v2417_v0 = vsub.f32 %v8022_v25, %v2393_v40  ;;  %v2387_v26 = vpop.xlane.xlu0 %2386 }
 0x952   :  { %v8097_v16 = vpop.eup %6513  ;;  %v2440_v22 = vmul.f32 1.442695, %v2417_v0 }
 0x953   :  { %v8099_v41 = vpop.eup %6515  ;;  %v2397_v39 = vpop.xlane.xlu1 %2396  ;;  %2460 = vadd.xlane.f32.xlu0 %v8097_v16 }
 0x954   :  { %6519 = vpow2.f32 %v2440_v22  ;;  %2458 = vadd.xlane.f32.xlu1 %v8099_v41  ;;  %v2391_v24 = vpop.xlane.xlu0 %2390  ;;  %v2419_v21 = vsub.f32 %v8034_v49, %v2397_v39  ;;  %v2412_v39 = vsub.f32 %v8013_v55, %v2383_v60 }
 0x955   :  { %v2416_v50 = vsub.f32 %v8037_v42, %v2391_v24  ;;  %v2415_v24 = vsub.f32 %v8010_v54, %v2389_v51 }
 0x956   :  { %v2444_v25 = vmul.f32 1.442695, %v2419_v21  ;;  %v2430_v21 = vmul.f32 1.442695, %v2412_v39 }
 0x957   :  { %v8105_v33 = vpop.eup %6517  ;;  %v2438_v38 = vmul.f32 1.442695, %v2416_v50  ;;  %v2401_v40 = vpop.xlane.xlu1 %2400  ;;  %v2436_v50 = vmul.f32 1.442695, %v2415_v24 }
 0x958   :  { %2464 = vadd.xlane.f32.xlu1 %v8105_v33  ;;  %v2395_v14 = vpop.xlane.xlu0 %2394  ;;  %v2421_v36 = vsub.f32 %v8046_v18, %v2401_v40 }
 0x959   :  { %6521 = vpow2.f32 %v2438_v38  ;;  %v2418_v0 = vsub.f32 %v8049_v10, %v2395_v14  ;;  %v2414_v38 = vsub.f32 %v8025_v52, %v2387_v26 }
 0x95a   :  { %6523 = vpow2.f32 %v2444_v25  ;;  %v2448_v49 = vmul.f32 1.442695, %v2421_v36 }
 0x95b   :  { %v2442_v8 = vmul.f32 1.442695, %v2418_v0  ;;  %v2434_v25 = vmul.f32 1.442695, %v2414_v38  ;;  %v2405_v40 = vpop.xlane.xlu1 %2404 }
 0x95c   :  { %v2399_v14 = vpop.xlane.xlu0 %2398  ;;  %v2423_v60 = vsub.f32 %v8058_v48, %v2405_v40 }
 0x95d   :  { %6525 = vpow2.f32 %v2442_v8  ;;  %v2420_v0 = vsub.f32 %v8061_v34, %v2399_v14 }
 0x95e   :  { %v8110_v20 = vpop.eup %6519  ;;  %6527 = vpow2.f32 %v2448_v49  ;;  %v2452_v26 = vmul.f32 1.442695, %v2423_v60 }
 0x95f   :  { %2472 = vadd.xlane.f32.xlu1 %v8110_v20  ;;  %6529 = vpow2.f32 %v2430_v21  ;;  %v2446_v55 = vmul.f32 1.442695, %v2420_v0  ;;  %v2409_v8 = vpop.xlane.xlu1 %2408 }
 0x960   :  { %6531 = vpow2.f32 %v2436_v50  ;;  %v2403_v54 = vpop.xlane.xlu0 %2402  ;;  %v2425_v48 = vsub.f32 %v8070_v59, %v2409_v8 }
 0x961   :  { %6533 = vpow2.f32 %v2434_v25  ;;  %v2422_v52 = vsub.f32 %v8073_v1, %v2403_v54 }
 0x962   :  { %6535 = vpow2.f32 %v2446_v55  ;;  %v2456_v1 = vmul.f32 1.442695, %v2425_v48 }
 0x963   :  { %v8113_v42 = vpop.eup %6521  ;;  %6537 = vpow2.f32 %v2452_v26 }
 0x964   :  { %2470 = vadd.xlane.f32.xlu1 %v8113_v42  ;;  %v8116_v22 = vpop.eup %6523  ;;  %v2407_v39 = vpop.xlane.xlu0 %2406 }
 0x965   :  { %v2424_v24 = vsub.f32 %v8080_v13, %v2407_v39 }
 0x967   :  { %v8121_v18 = vpop.eup %6525  ;;  %v2454_v50 = vmul.f32 1.442695, %v2424_v24 }
 0x968   :  { %2476 = vadd.xlane.f32.xlu1 %v8116_v22  ;;  %v8124_v10 = vpop.eup %6527 }
 0x969   :  { %6304 = vrot.lane.b32.xlu0 %v7292_v12, %s6823_s27  ;;  %v8134_v51 = vpop.eup %6529 }
 0x96a   :  { %v8138_v36 = vpop.eup %6531 }
 0x96b   :  { %v8141_v34 = vpop.eup %6533 }
 0x96c   :  { %2474 = vadd.xlane.f32.xlu1 %v8121_v18  ;;  %v8145_v49 = vpop.eup %6535 }
 0x96d   :  { %v8149_v21 = vpop.eup %6537 }
 0x970   :  { %2480 = vadd.xlane.f32.xlu1 %v8124_v10 }
 0x981   :  { %2733 = vrot.lane.b32.xlu1 %v7272_v47, %s6824_s28  ;;  %v2450_v47 = vmul.f32 1.442695, %v2422_v52 }
 0x983   :  { %6539 = vpow2.f32 %v2450_v47 }
 0x984   :  { %6541 = vpow2.f32 %v2456_v1 }
 0x985   :  { %6543 = vpow2.f32 %v2454_v50 }
 0x988   :  { %2462 = vadd.xlane.f32.xlu0 %v8134_v51 }
 0x98c   :  { %2468 = vadd.xlane.f32.xlu0 %v8138_v36 }
 0x98d   :  { %v8152_v38 = vpop.eup %6539 }
 0x98e   :  { %v8155_v59 = vpop.eup %6541 }
 0x98f   :  { %v8158_v14 = vpop.eup %6543 }
 0x990   :  { %2466 = vadd.xlane.f32.xlu0 %v8141_v34 }
 0x994   :  { %2478 = vadd.xlane.f32.xlu0 %v8145_v49 }
 0x998   :  { %2484 = vadd.xlane.f32.xlu0 %v8149_v21 }
 0x99c   :  { %2482 = vadd.xlane.f32.xlu0 %v8152_v38 }
 0x9a5   :  { %2488 = vadd.xlane.f32.xlu1 %v8155_v59 }
 0x9a9   :  { %2486 = vadd.xlane.f32.xlu1 %v8158_v14 }
 0x9b2   :  { %6309 = vrot.lane.b32.xlu0 %v7298_v32, %s6823_s27 }
 0x9b6   :  { %2731 = vrot.lane.b32.xlu0 %v7268_v37, %s6824_s28  ;;  %v6295_v37 = vpop.permute.xlu0 %6294 }
 0x9ba   :  { %2735 = vrot.lane.b32.xlu0 %v7274_v62, %s6824_s28  ;;  %2737 = vrot.lane.b32.xlu1 %v7276_v63, %s6824_s28  ;;  %v6300_v62 = vpop.permute.xlu1 %6299 }
 0x9be   :  { %2739 = vrot.lane.b32.xlu0 %v7278_v2, %s6824_s28  ;;  %2741 = vrot.lane.b32.xlu1 %v7280_v3, %s6824_s28 }
 0x9c2   :  { %2743 = vrot.lane.b32.xlu0 %v7286_v5, %s6824_s28  ;;  %2745 = vrot.lane.b32.xlu1 %v7288_v6, %s6824_s28  ;;  %v6282_v5 = vunpack.i.h.bf16 %v8087_v19 }
 0x9c6   :  { %2747 = vrot.lane.b32.xlu0 %v7320_v28, %s6824_s28  ;;  %2749 = vrot.lane.b32.xlu1 %v7322_v45, %s6824_s28  ;;  %v6286_v28 = vunpack.i.l.bf16 %v8091_v4 }
 0x9ca   :  { %2751 = vrot.lane.b32.xlu0 %v7324_v29, %s6824_s28  ;;  %2753 = vrot.lane.b32.xlu1 %v7326_v53, %s6824_s28  ;;  %v6292_v29 = vunpack.i.h.bf16 %v8089_v61  ;;  %v6291_v53 = vunpack.i.l.bf16 %v8089_v61 }
 0x9ce   :  { %2755 = vrot.lane.b32.xlu0 %v7328_v56, %s6824_s28  ;;  %2757 = vrot.lane.b32.xlu1 %v7330_v57, %s6824_s28  ;;  %v5885_v56 = vpack.c.bf16 %v6292_v29, %v6291_v53  ;;  %v6297_v57 = vunpack.i.h.bf16 %v6295_v37 }
 0x9d2   :  { %2759 = vrot.lane.b32.xlu0 %v7332_v17, %s6824_s28  ;;  %2761 = vrot.lane.b32.xlu1 %v7334_v58, %s6824_s28  ;;  %v6296_v17 = vunpack.i.l.bf16 %v6295_v37 }
 0x9d4   :  { %v5891_v58 = vpack.c.bf16 %v6297_v57, %v6296_v17 }
 0x9d6   :  { %6314 = vrot.lane.b32.xlu0 %v7230_v9, %s6825_s5  ;;  %6319 = vrot.lane.b32.xlu1 %v7236_v15, %s6825_s5  ;;  %v6281_v15 = vunpack.i.l.bf16 %v8087_v19 }
 0x9da   :  { %6324 = vrot.lane.b32.xlu0 %v7244_v31, %s6825_s5  ;;  %6329 = vrot.lane.b32.xlu1 %v7251_v46, %s6825_s5  ;;  %v5873_v46 = vpack.c.bf16 %v6282_v5, %v6281_v15 }
 0x9de   :  { %6334 = vrot.lane.b32.xlu0 %v7260_v23, %s6825_s5  ;;  %v6287_v23 = vunpack.i.h.bf16 %v8091_v4  ;;  %v6302_v4 = vunpack.i.h.bf16 %v6300_v62 }
 0x9e0   :  { %v2461_v63 = vpop.xlane.xlu0 %2460  ;;  %v5879_v45 = vpack.c.bf16 %v6287_v23, %v6286_v28 }
 0x9e1   :  { %6545 = vrcp.f32 %v2461_v63  ;;  %v2459_v2 = vpop.xlane.xlu1 %2458 }
 0x9e2   :  { %6547 = vrcp.f32 %v2459_v2 }
 0x9e4   :  { %v6305_v61 = vpop.permute.xlu0 %6304 }
 0x9e5   :  { %v6307_v25 = vunpack.i.h.bf16 %v6305_v61  ;;  %v6306_v0 = vunpack.i.l.bf16 %v6305_v61 }
 0x9e7   :  { %v5903_v60 = vpack.c.bf16 %v6307_v25, %v6306_v0 }
 0x9eb   :  { %v6546_v3 = vpop.eup %6545 }
 0x9ec   :  { %v6548_v9 = vpop.eup %6547  ;;  %v2493_v6 = vmul.f32 %v6546_v3, %v8097_v16  ;;  %v6301_v16 = vunpack.i.l.bf16 %v6300_v62 }
 0x9ed   :  { %v2491_v31 = vmul.f32 %v6548_v9, %v8099_v41 }
 0x9ee   :  { %v5897_v19 = vpack.c.bf16 %v6302_v4, %v6301_v16 }
 0x9ef   :  { %5363 = vmatprep.mubr.f32.mxu0 %v2491_v31 }
 0x9f0   :  { %5364 = vmatmul.mubr.f32.vlgmr.msra.gmra.mrb[48].mxu0 %v2493_v6 }
 0x9f1   :  { %5872 = vmatpush3.bf16.xpose.msk.msra.mxu0 %vm7354_vm2, %v7950_v30  ;;  %v2465_v30 = vpop.xlane.xlu1 %2464 }
 0x9f2   :  { %5875 = vmatprep.subr.msk.bf16.mxu0 %vm7354_vm2, %v5873_v46  ;;  %6549 = vrcp.f32 %v2465_v30 }
 0x9f5   :  { %v2473_v13 = vpop.xlane.xlu1 %2472 }
 0x9f9   :  { %5878 = vmatpush3.bf16.xpose.msk.msra.mxu0 %vm7354_vm2, %v5873_v46  ;;  %v2471_v41 = vpop.xlane.xlu1 %2470 }
 0x9fa   :  { %5881 = vmatprep.subr.msk.bf16.mxu0 %vm7354_vm2, %v5879_v45 }
 0x9fc   :  { %v6550_v52 = vpop.eup %6549 }
 0x9fd   :  { %v2477_v55 = vpop.xlane.xlu1 %2476  ;;  %v2497_v1 = vmul.f32 %v6550_v52, %v8105_v33 }
 0xa01   :  { %5884 = vmatpush3.bf16.xpose.msk.msra.mxu0 %vm7354_vm2, %v5879_v45  ;;  %v2475_v47 = vpop.xlane.xlu1 %2474 }
 0xa02   :  { %5887 = vmatprep.subr.msk.bf16.mxu0 %vm7354_vm2, %v5885_v56 }
 0xa05   :  { %v2481_v37 = vpop.xlane.xlu1 %2480 }
 0xa09   :  { %5890 = vmatpush3.bf16.xpose.msk.msra.mxu0 %vm7354_vm2, %v5885_v56  ;;  %v2734_v31 = vpop.permute.xlu1 %2733 }
 0xa0a   :  { %5893 = vmatprep.subr.msk.bf16.mxu0 %vm7354_vm2, %v5891_v58 }
 0xa11   :  { %5896 = vmatpush3.bf16.xpose.msk.msra.mxu0 %vm7354_vm2, %v5891_v58 }
 0xa12   :  { %5899 = vmatprep.subr.msk.bf16.mxu0 %vm7354_vm2, %v5897_v19 }
 0xa15   :  { %v2463_v40 = vpop.xlane.xlu0 %2462 }
 0xa16   :  { %6551 = vrcp.f32 %v2463_v40 }
 0xa17   :  { %6553 = vrcp.f32 %v2471_v41 }
 0xa19   :  { %5902 = vmatpush3.bf16.xpose.msk.msra.mxu0 %vm7354_vm2, %v5897_v19  ;;  %v2469_v54 = vpop.xlane.xlu0 %2468 }
 0xa1a   :  { %5905 = vmatprep.subr.msk.bf16.mxu0 %vm7354_vm2, %v5903_v60  ;;  %6555 = vrcp.f32 %v2469_v54 }
 0xa1d   :  { %v2467_v26 = vpop.xlane.xlu0 %2466 }
 0xa1e   :  { %6557 = vrcp.f32 %v2467_v26 }
 0xa1f   :  { %6559 = vrcp.f32 %v2473_v13 }
 0xa20   :  { %v6552_v8 = vpop.eup %6551  ;;  %6561 = vrcp.f32 %v2475_v47 }
 0xa21   :  { %5908 = vmatpush3.bf16.xpose.msk.msra.mxu0 %vm7354_vm2, %v5903_v60  ;;  %v2479_v48 = vpop.xlane.xlu0 %2478  ;;  %v2495_v39 = vmul.f32 %v6552_v8, %v8134_v51  ;;  %6563 = vrcp.f32 %v2477_v55  ;;  %v6554_v50 = vpop.eup %6553 }
 0xa22   :  { %6565 = vrcp.f32 %v2479_v48  ;;  %v2503_v33 = vmul.f32 %v6554_v50, %v8113_v42 }
 0xa23   :  { %5366 = vmatprep.mubr.f32.mxu0 %v2495_v39  ;;  %6567 = vrcp.f32 %v2481_v37 }
 0xa24   :  { %5367 = vmatmul.mubr.f32.gmra.mrb[50].mxu0 %v2497_v1  ;;  %v6556_v62 = vpop.eup %6555 }
 0xa25   :  { %v2485_v24 = vpop.xlane.xlu0 %2484  ;;  %v2501_v9 = vmul.f32 %v6556_v62, %v8138_v36 }
 0xa28   :  { %v6558_v63 = vpop.eup %6557 }
 0xa29   :  { %v2483_v2 = vpop.xlane.xlu0 %2482  ;;  %v2499_v3 = vmul.f32 %v6558_v63, %v8141_v34  ;;  %v6560_v51 = vpop.eup %6559 }
 0xa2a   :  { %6569 = vrcp.f32 %v2483_v2  ;;  %v6562_v5 = vpop.eup %6561  ;;  %v2505_v23 = vmul.f32 %v6560_v51, %v8110_v20 }
 0xa2b   :  { %5369 = vmatprep.mubr.f32.mxu0 %v2499_v3  ;;  %6571 = vrcp.f32 %v2485_v24  ;;  %v6564_v28 = vpop.eup %6563  ;;  %v2507_v34 = vmul.f32 %v6562_v5, %v8121_v18 }
 0xa2c   :  { %5370 = vmatmul.mubr.f32.gmra.mrb[52].mxu0 %v2501_v9  ;;  %v6566_v45 = vpop.eup %6565  ;;  %v2509_v42 = vmul.f32 %v6564_v28, %v8116_v22 }
 0xa2d   :  { %5372 = vmatprep.mubr.f32.mxu0 %v2503_v33  ;;  %v6310_v15 = vpop.permute.xlu0 %6309  ;;  %v6568_v56 = vpop.eup %6567  ;;  %v2511_v20 = vmul.f32 %v6566_v45, %v8145_v49 }
 0xa2e   :  { %v6312_v6 = vunpack.i.h.bf16 %v6310_v15  ;;  %v6311_v46 = vunpack.i.l.bf16 %v6310_v15  ;;  %v2513_v58 = vmul.f32 %v6568_v56, %v8124_v10 }
 0xa30   :  { %v5909_v29 = vpack.c.bf16 %v6312_v6, %v6311_v46  ;;  %5373 = vmatmul.mubr.f32.gmra.mrb[54].mxu0 %v2505_v23 }
 0xa31   :  { %5375 = vmatprep.mubr.f32.mxu0 %v2507_v34  ;;  %v2732_v36 = vpop.permute.xlu0 %2731 }
 0xa32   :  { %v2489_v53 = vpop.xlane.xlu1 %2488  ;;  %5911 = vmatprep.subr.msk.bf16.mxu0 %vm7354_vm2, %v5909_v29 }
 0xa33   :  { %5914 = vmatpush3.bf16.xpose.msk.msra.mxu0 %vm7354_vm2, %v5909_v29  ;;  %6573 = vrcp.f32 %v2489_v53 }
 0xa34   :  { %v6570_v57 = vpop.eup %6569  ;;  %5376 = vmatmul.mubr.f32.gmra.mrb[56].mxu0 %v2509_v42 }
 0xa35   :  { %5378 = vmatprep.mubr.f32.mxu0 %v2511_v20  ;;  %v2736_v18 = vpop.permute.xlu0 %2735  ;;  %v6572_v30 = vpop.eup %6571  ;;  %v2515_v4 = vmul.f32 %v6570_v57, %v8152_v38 }
 0xa36   :  { %v2487_v17 = vpop.xlane.xlu1 %2486  ;;  %v2517_v44 = vmul.f32 %v6572_v30, %v8149_v21 }
 0xa37   :  { %6575 = vrcp.f32 %v2487_v17 }
 0xa38   :  { %5379 = vmatmul.mubr.f32.gmra.mrb[58].mxu0 %v2513_v58 }
 0xa39   :  { %5381 = vmatprep.mubr.f32.mxu0 %v2515_v4  ;;  %v2740_v22 = vpop.permute.xlu0 %2739 }
 0xa3a   :  { %v2738_v16 = vpop.permute.xlu1 %2737 }
 0xa3c   :  { %5382 = vmatmul.mubr.f32.gmra.mrb[60].mxu0 %v2517_v44 }
 0xa3d   :  { %v2744_v49 = vpop.permute.xlu0 %2743  ;;  %v6574_v19 = vpop.eup %6573 }
 0xa3e   :  { %v2742_v13 = vpop.permute.xlu1 %2741  ;;  %v2521_v10 = vmul.f32 %v6574_v19, %v8155_v59 }
 0xa41   :  { %v6576_v61 = vpop.eup %6575  ;;  %v2748_v41 = vpop.permute.xlu0 %2747 }
 0xa42   :  { %v2746_v25 = vpop.permute.xlu1 %2745  ;;  %v2519_v0 = vmul.f32 %v6576_v61, %v8158_v14 }
 0xa44   :  { %5384 = vmatprep.mubr.f32.mxu0 %v2519_v0 }
 0xa45   :  { %5385 = vmatmul.mubr.f32.gmra.mrb[62].mxu0 %v2521_v10  ;;  %v2752_v38 = vpop.permute.xlu0 %2751  ;;  %v9146_v10 = vld [vmem:[#allocation49_spill] sm:$0xff] }
 0xa46   :  { %v2750_v40 = vpop.permute.xlu1 %2749  ;;  %5419 = vmatprep.mubr.msk.f32.mxu0 %vm900_vm1, %v2732_v36 }
 0xa49   :  { %v2756_v60 = vpop.permute.xlu0 %2755  ;;  %5420 = vmatmul.mubr.msk.f32.vlgmr.msra.gmra.mrb[64].mxu0 %vm900_vm1, %v2734_v31 }
 0xa4a   :  { %v2754_v21 = vpop.permute.xlu1 %2753  ;;  %5422 = vmatprep.mubr.msk.f32.mxu0 %vm900_vm1, %v2736_v18 }
 0xa4d   :  { %v2760_v55 = vpop.permute.xlu0 %2759  ;;  %5423 = vmatmul.mubr.msk.f32.gmra.mrb[66].mxu0 %vm900_vm1, %v2738_v16 }
 0xa4e   :  { %v2758_v54 = vpop.permute.xlu1 %2757  ;;  %5425 = vmatprep.mubr.msk.f32.mxu0 %vm900_vm1, %v2740_v22 }
 0xa51   :  { %v6315_v14 = vpop.permute.xlu0 %6314  ;;  %5426 = vmatmul.mubr.msk.f32.gmra.mrb[68].mxu0 %vm900_vm1, %v2742_v13 }
 0xa52   :  { %v6317_v59 = vunpack.i.h.bf16 %v6315_v14  ;;  %v6316_v26 = vunpack.i.l.bf16 %v6315_v14  ;;  %v2762_v52 = vpop.permute.xlu1 %2761  ;;  %5428 = vmatprep.mubr.msk.f32.mxu0 %vm900_vm1, %v2744_v49 }
 0xa54   :  { %v5915_v47 = vpack.c.bf16 %v6317_v59, %v6316_v26  ;;  %v9150_v26 = vld [vmem:[#allocation53_spill] sm:$0xff] }
 0xa55   :  { %v6325_v8 = vpop.permute.xlu0 %6324  ;;  %5429 = vmatmul.mubr.msk.f32.gmra.mrb[70].mxu0 %vm900_vm1, %v2746_v25 }
 0xa56   :  { %v6320_v48 = vpop.permute.xlu1 %6319  ;;  %5431 = vmatprep.mubr.msk.f32.mxu0 %vm900_vm1, %v2748_v41  ;;  %5916 = vmatprep.subr.bf16.mxu0 %v5915_v47  ;;  %v6327_v39 = vunpack.i.h.bf16 %v6325_v8  ;;  %v6326_v1 = vunpack.i.l.bf16 %v6325_v8  ;;  %v9151_v8 = vld [vmem:[#allocation54_spill] sm:$0xff] }
 0xa57   :  { %v6322_v24 = vunpack.i.h.bf16 %v6320_v48  ;;  %v6321_v50 = vunpack.i.l.bf16 %v6320_v48  ;;  %5995 = vmatprep.subr.bf16.mxu1 %v5915_v47  ;;  %5918 = vmatpush3.bf16.msra.mxu0 %v5915_v47 }
 0xa58   :  { %6003 = vmatpush3.bf16.msra.mxu1 %v5915_v47  ;;  %v5923_v63 = vpack.c.bf16 %v6327_v39, %v6326_v1  ;;  %v9152_v1 = vld [vmem:[#allocation55_spill] sm:$0xff] }
 0xa59   :  { %v5919_v37 = vpack.c.bf16 %v6322_v24, %v6321_v50  ;;  %5432 = vmatmul.mubr.msk.f32.gmra.mrb[72].mxu0 %vm900_vm1, %v2750_v40  ;;  %v6335_v9 = vpop.permute.xlu0 %6334  ;;  %v9147_v40 = vld [vmem:[#allocation50_spill] sm:$0xff] }
 0xa5a   :  { %v6330_v62 = vpop.permute.xlu1 %6329  ;;  %5434 = vmatprep.mubr.msk.f32.mxu0 %vm900_vm1, %v2752_v38  ;;  %v6337_v51 = vunpack.i.h.bf16 %v6335_v9  ;;  %v6336_v33 = vunpack.i.l.bf16 %v6335_v9  ;;  %v9155_v9 = vld [vmem:[#allocation58_spill] sm:$0xff] }
 0xa5b   :  { %v6332_v2 = vunpack.i.h.bf16 %v6330_v62  ;;  %v6331_v3 = vunpack.i.l.bf16 %v6330_v62  ;;  %5920 = vmatprep.subr.bf16.mxu0 %v5919_v37  ;;  %5996 = vmatprep.subr.bf16.mxu1 %v5919_v37 }
 0xa5c   :  { %5922 = vmatpush3.bf16.msra.mxu0 %v5919_v37  ;;  %6004 = vmatpush3.bf16.msra.mxu1 %v5919_v37  ;;  %v5931_v15 = vpack.c.bf16 %v6337_v51, %v6336_v33  ;;  %v9153_v37 = vld [vmem:[#allocation56_spill] sm:$0xff]  ;;  %v9156_v33 = vld [vmem:[#allocation15_spill] sm:$0xff] }
 0xa5d   :  { %5435 = vmatmul.mubr.msk.f32.gmra.mrb[74].mxu0 %vm900_vm1, %v2754_v21  ;;  %5924 = vmatprep.subr.bf16.mxu0 %v5923_v63  ;;  %v5927_v5 = vpack.c.bf16 %v6332_v2, %v6331_v3  ;;  %v9148_v21 = vld [vmem:[#allocation51_spill] sm:$0xff]  ;;  %v9154_v2 = vld [vmem:[#allocation57_spill] sm:$0xff] }
 0xa5e   :  { %5997 = vmatprep.subr.bf16.mxu1 %v5923_v63  ;;  %5437 = vmatprep.mubr.msk.f32.mxu0 %vm900_vm1, %v2756_v60 }
 0xa60   :  { %5926 = vmatpush3.bf16.msra.mxu0 %v5923_v63  ;;  %6005 = vmatpush3.bf16.msra.mxu1 %v5923_v63 }
 0xa61   :  { %5438 = vmatmul.mubr.msk.f32.gmra.mrb[76].mxu0 %vm900_vm1, %v2758_v54  ;;  %5928 = vmatprep.subr.bf16.mxu0 %v5927_v5  ;;  %v9149_v54 = vld [vmem:[#allocation52_spill] sm:$0xff] }
 0xa62   :  { %5998 = vmatprep.subr.bf16.mxu1 %v5927_v5  ;;  %5440 = vmatprep.mubr.msk.f32.mxu0 %vm900_vm1, %v2760_v55 }
 0xa64   :  { %5930 = vmatpush3.bf16.msra.mxu0 %v5927_v5  ;;  %6006 = vmatpush3.bf16.msra.mxu1 %v5927_v5 }
 0xa65   :  { %5441 = vmatmul.mubr.msk.f32.gmra.mrb[78].mxu0 %vm900_vm1, %v2762_v52  ;;  %5932 = vmatprep.subr.bf16.mxu0 %v5931_v15 }
 0xa66   :  { %5999 = vmatprep.subr.bf16.mxu1 %v5931_v15 }
 0xa68   :  { %5934 = vmatpush3.bf16.msra.mxu0 %v5931_v15  ;;  %6007 = vmatpush3.bf16.msra.mxu1 %v5931_v15 }
 0xac3   :  { %v8272_v31 = vpop.f32.mrb[48].mxu0 }
 0xac4   :  { %v8274_v6 = vpop.f32.mrb[49].mxu0 }
 0xaf7   :  { %v8276_v46 = vpop.f32.mrb[50].mxu0 }
 0xaf8   :  { %v8278_v23 = vpop.f32.mrb[51].mxu0 }
 0xaff   :  { %v8280_v28 = vpop.f32.mrb[52].mxu0 }
 0xb00   :  { %v8282_v34 = vpop.f32.mrb[53].mxu0 }
 0xb03   :  { %v8284_v45 = vpop.f32.mrb[54].mxu0 }
 0xb04   :  { %v8286_v29 = vpop.f32.mrb[55].mxu0 }
 0xb07   :  { %v8288_v36 = vpop.f32.mrb[56].mxu0 }
 0xb08   :  { %v8290_v53 = vpop.f32.mrb[57].mxu0 }
 0xb0b   :  { %v8292_v42 = vpop.f32.mrb[58].mxu0 }
 0xb0c   :  { %v8294_v56 = vpop.f32.mrb[59].mxu0 }
 0xb0f   :  { %v8296_v20 = vpop.f32.mrb[60].mxu0 }
 0xb10   :  { %v8298_v57 = vpop.f32.mrb[61].mxu0 }
 0xb18   :  { %v8300_v18 = vpop.f32.mrb[62].mxu0 }
 0xb19   :  { %v8302_v17 = vpop.f32.mrb[63].mxu0 }
 0xb1c   :  { %v5421_v58 = vpop.f32.mrb[64].mxu0 }
 0xb1d   :  { %v2931_v30 = vadd.f32 %v5421_v58, %v7987_v35  ;;  %v2925_v4 = vpop.f32.mrb[65].mxu0  ;;  %v9145_v35 = vld [vmem:[#allocation48_spill] sm:$0xff] }
 0xb1e   :  { %v2926_v22 = vadd.f32 %v2925_v4, %v7989_v27 }
 0xb1f   :  { %3006 = vmax.xlane.f32.xlu1 %v2931_v30 }
 0xb20   :  { %v5424_v16 = vpop.f32.mrb[66].mxu0  ;;  %3004 = vmax.xlane.f32.xlu0 %v2926_v22 }
 0xb21   :  { %v2941_v44 = vadd.f32 %v5424_v16, %v7997_v7  ;;  %v2935_v49 = vpop.f32.mrb[67].mxu0 }
 0xb22   :  { %v2936_v41 = vadd.f32 %v2935_v49, %v8006_v43 }
 0xb24   :  { %v5427_v13 = vpop.f32.mrb[68].mxu0  ;;  %3010 = vmax.xlane.f32.xlu0 %v2941_v44 }
 0xb25   :  { %v2951_v19 = vadd.f32 %v5427_v13, %v8004_v11  ;;  %v2945_v61 = vpop.f32.mrb[69].mxu0 }
 0xb26   :  { %v2946_v38 = vadd.f32 %v2945_v61, %v9146_v10 }
 0xb27   :  { %3014 = vmax.xlane.f32.xlu1 %v2951_v19 }
 0xb28   :  { %v5430_v25 = vpop.f32.mrb[70].mxu0  ;;  %3008 = vmax.xlane.f32.xlu0 %v2936_v41 }
 0xb29   :  { %v8310_v0 = vadd.f32 %v5430_v25, %v9145_v35  ;;  %v2955_v27 = vpop.f32.mrb[71].mxu0 }
 0xb2a   :  { %v8318_v55 = vadd.f32 %v2955_v27, %v9148_v21 }
 0xb2b   :  { %3018 = vmax.xlane.f32.xlu1 %v8310_v0 }
 0xb2c   :  { %v5433_v7 = vpop.f32.mrb[72].mxu0  ;;  %3012 = vmax.xlane.f32.xlu0 %v2946_v38 }
 0xb2d   :  { %v8315_v60 = vadd.f32 %v5433_v7, %v9147_v40  ;;  %v2965_v11 = vpop.f32.mrb[73].mxu0 }
 0xb2e   :  { %v2966_v52 = vadd.f32 %v2965_v11, %v9150_v26 }
 0xb2f   :  { %3022 = vmax.xlane.f32.xlu1 %v8315_v60 }
 0xb30   :  { %v5436_v43 = vpop.f32.mrb[74].mxu0  ;;  %3016 = vmax.xlane.f32.xlu0 %v8318_v55 }
 0xb31   :  { %v8323_v14 = vadd.f32 %v5436_v43, %v9149_v54  ;;  %v2975_v59 = vpop.f32.mrb[75].mxu0 }
 0xb32   :  { %v8331_v24 = vadd.f32 %v2975_v59, %v9152_v1 }
 0xb33   :  { %3026 = vmax.xlane.f32.xlu1 %v8323_v14 }
 0xb34   :  { %v5439_v47 = vpop.f32.mrb[76].mxu0  ;;  %3020 = vmax.xlane.f32.xlu0 %v2966_v52 }
 0xb35   :  { %v8328_v48 = vadd.f32 %v5439_v47, %v9151_v8  ;;  %v2985_v39 = vpop.f32.mrb[77].mxu0 }
 0xb36   :  { %v8339_v3 = vadd.f32 %v2985_v39, %v9154_v2 }
 0xb37   :  { %3030 = vmax.xlane.f32.xlu1 %v8328_v48 }
 0xb38   :  { %v5442_v50 = vpop.f32.mrb[78].mxu0  ;;  %3024 = vmax.xlane.f32.xlu0 %v8331_v24 }
 0xb39   :  { %v8336_v62 = vadd.f32 %v5442_v50, %v9153_v37  ;;  %v2995_v63 = vpop.f32.mrb[79].mxu0 }
 0xb3a   :  { %v8344_v51 = vadd.f32 %v2995_v63, %v9155_v9 }
 0xb3b   :  { %3034 = vmax.xlane.f32.xlu1 %v8336_v62 }
 0xb3c   :  { %3028 = vmax.xlane.f32.xlu0 %v8339_v3 }
 0xb40   :  { %3032 = vmax.xlane.f32.xlu0 %v8344_v51 }
 0xb4c   :  { %6339 = vrot.lane.b32.xlu1 %v9156_v33, %s6825_s5 }
 0xb56   :  { %6344 = vrot.lane.b32.xlu0 %v7292_v12, %s6825_s5 }
 0xbac   :  { %v3007_v5 = vpop.xlane.xlu1 %3006 }
 0xbad   :  { %v3037_v15 = vsub.f32 %v2931_v30, %v3007_v5  ;;  %v3005_v58 = vpop.xlane.xlu0 %3004 }
 0xbae   :  { %v3036_v4 = vsub.f32 %v2926_v22, %v3005_v58 }
 0xbaf   :  { %v3054_v16 = vmul.f32 1.442695, %v3037_v15 }
 0xbb0   :  { %v3052_v49 = vmul.f32 1.442695, %v3036_v4 }
 0xbb1   :  { %6577 = vpow2.f32 %v3054_v16  ;;  %v3011_v13 = vpop.xlane.xlu0 %3010 }
 0xbb2   :  { %6579 = vpow2.f32 %v3052_v49  ;;  %v3039_v61 = vsub.f32 %v2941_v44, %v3011_v13 }
 0xbb4   :  { %v3058_v25 = vmul.f32 1.442695, %v3039_v61  ;;  %v3015_v35 = vpop.xlane.xlu1 %3014 }
 0xbb5   :  { %v3041_v27 = vsub.f32 %v2951_v19, %v3015_v35  ;;  %v3009_v10 = vpop.xlane.xlu0 %3008 }
 0xbb6   :  { %6581 = vpow2.f32 %v3058_v25  ;;  %v3038_v7 = vsub.f32 %v2936_v41, %v3009_v10 }
 0xbb7   :  { %v3062_v21 = vmul.f32 1.442695, %v3041_v27 }
 0xbb8   :  { %v3056_v40 = vmul.f32 1.442695, %v3038_v7  ;;  %v3019_v11 = vpop.xlane.xlu1 %3018 }
 0xbb9   :  { %v3013_v12 = vpop.xlane.xlu0 %3012  ;;  %v3043_v30 = vsub.f32 %v8310_v0, %v3019_v11 }
 0xbba   :  { %6583 = vpow2.f32 %v3056_v40  ;;  %v3040_v22 = vsub.f32 %v2946_v38, %v3013_v12 }
 0xbbb   :  { %v8352_v43 = vpop.eup %6577  ;;  %6585 = vpow2.f32 %v3062_v21  ;;  %v3066_v41 = vmul.f32 1.442695, %v3043_v30 }
 0xbbc   :  { %v8354_v54 = vpop.eup %6579  ;;  %v3060_v59 = vmul.f32 1.442695, %v3040_v22  ;;  %v3023_v44 = vpop.xlane.xlu1 %3022  ;;  %3086 = vadd.xlane.f32.xlu0 %v8352_v43 }
 0xbbd   :  { %3084 = vadd.xlane.f32.xlu1 %v8354_v54  ;;  %v3017_v19 = vpop.xlane.xlu0 %3016  ;;  %v3045_v39 = vsub.f32 %v8315_v60, %v3023_v44 }
 0xbbe   :  { %6587 = vpow2.f32 %v3060_v59  ;;  %v3042_v26 = vsub.f32 %v8318_v55, %v3017_v19 }
 0xbbf   :  { %6589 = vpow2.f32 %v3066_v41  ;;  %v3070_v9 = vmul.f32 1.442695, %v3045_v39  ;;  %v9159_v39 = vld [vmem:[#allocation19_spill] sm:$0xff] }
 0xbc0   :  { %v8359_v47 = vpop.eup %6581  ;;  %v3027_v0 = vpop.xlane.xlu1 %3026  ;;  %v3064_v1 = vmul.f32 1.442695, %v3042_v26 }
 0xbc1   :  { %3090 = vadd.xlane.f32.xlu1 %v8359_v47  ;;  %v3021_v38 = vpop.xlane.xlu0 %3020  ;;  %v3047_v33 = vsub.f32 %v8323_v14, %v3027_v0 }
 0xbc2   :  { %v3044_v8 = vsub.f32 %v2966_v52, %v3021_v38  ;;  %v9157_v38 = vld [vmem:[#allocation17_spill] sm:$0xff] }
 0xbc3   :  { %v3074_v15 = vmul.f32 1.442695, %v3047_v33 }
 0xbc4   :  { %v8363_v50 = vpop.eup %6583  ;;  %v3068_v37 = vmul.f32 1.442695, %v3044_v8  ;;  %v8365_v63 = vpop.xlane.xlu1 %3030  ;;  %v9158_v8 = vld [vmem:[#allocation16_spill] sm:$0xff] }
 0xbc5   :  { %3088 = vadd.xlane.f32.xlu1 %v8363_v50  ;;  %v3025_v2 = vpop.xlane.xlu0 %3024  ;;  %v8368_v55 = vpop.eup %6585  ;;  %v3049_v26 = vsub.f32 %v8328_v48, %v8365_v63  ;;  %v9160_v48 = vld [vmem:[#allocation18_spill] sm:$0xff] }
 0xbc6   :  { %6591 = vpow2.f32 %v3068_v37  ;;  %v3046_v58 = vsub.f32 %v8331_v24, %v3025_v2  ;;  %v9164_v37 = vld [vmem:[#allocation20_spill] sm:$0xff] }
 0xbc7   :  { %6593 = vpow2.f32 %v3064_v1  ;;  %v3078_v0 = vmul.f32 1.442695, %v3049_v26  ;;  %v9161_v1 = vld [vmem:[#allocation21_spill] sm:$0xff] }
 0xbc8   :  { %v8371_v5 = vpop.eup %6587  ;;  %v3035_v52 = vpop.xlane.xlu1 %3034  ;;  %6595 = vpow2.f32 %v3070_v9  ;;  %v3072_v61 = vmul.f32 1.442695, %v3046_v58 }
 0xbc9   :  { %3094 = vadd.xlane.f32.xlu1 %v8368_v55  ;;  %3092 = vadd.xlane.f32.xlu0 %v8371_v5  ;;  %v3029_v60 = vpop.xlane.xlu0 %3028  ;;  %v8376_v4 = vpop.eup %6589  ;;  %6597 = vpow2.f32 %v3074_v15  ;;  %v3051_v30 = vsub.f32 %v8336_v62, %v3035_v52 }
 0xbca   :  { %v3048_v25 = vsub.f32 %v8339_v3, %v3029_v60  ;;  %6599 = vpow2.f32 %v3072_v61 }
 0xbcc   :  { %v6340_v16 = vpop.permute.xlu1 %6339  ;;  %v3076_v11 = vmul.f32 1.442695, %v3048_v25 }
 0xbcd   :  { %v6342_v49 = vunpack.i.h.bf16 %v6340_v16  ;;  %v6341_v13 = vunpack.i.l.bf16 %v6340_v16  ;;  %3098 = vadd.xlane.f32.xlu1 %v8376_v4  ;;  %v3033_v14 = vpop.xlane.xlu0 %3032 }
 0xbce   :  { %v3050_v21 = vsub.f32 %v8344_v51, %v3033_v14  ;;  %6601 = vpow2.f32 %v3076_v11  ;;  %v3082_v51 = vmul.f32 1.442695, %v3051_v30 }
 0xbcf   :  { %v5935_v35 = vpack.c.bf16 %v6342_v49, %v6341_v13 }
 0xbd0   :  { %v8380_v27 = vpop.eup %6591  ;;  %v3080_v22 = vmul.f32 1.442695, %v3050_v21 }
 0xbd1   :  { %v8382_v10 = vpop.eup %6593  ;;  %5936 = vmatprep.subr.bf16.mxu0 %v5935_v35  ;;  %6000 = vmatprep.subr.bf16.mxu1 %v5935_v35  ;;  %v6345_v24 = vpop.permute.xlu0 %6344 }
 0xbd2   :  { %3096 = vadd.xlane.f32.xlu1 %v8382_v10  ;;  %3100 = vadd.xlane.f32.xlu0 %v8380_v27  ;;  %v6347_v7 = vunpack.i.h.bf16 %v6345_v24  ;;  %v6346_v40 = vunpack.i.l.bf16 %v6345_v24  ;;  %v8387_v12 = vpop.eup %6595  ;;  %6603 = vpow2.f32 %v3080_v22 }
 0xbd3   :  { %5938 = vmatpush3.bf16.msra.mxu0 %v5935_v35  ;;  %6008 = vmatpush3.bf16.msra.mxu1 %v5935_v35  ;;  %v8391_v59 = vpop.eup %6597  ;;  %6605 = vpow2.f32 %v3082_v51 }
 0xbd4   :  { %v5939_v3 = vpack.c.bf16 %v6347_v7, %v6346_v40  ;;  %v8394_v44 = vpop.eup %6599  ;;  %6607 = vpow2.f32 %v3078_v0 }
 0xbd6   :  { %3102 = vadd.xlane.f32.xlu1 %v8387_v12  ;;  %5940 = vmatprep.subr.bf16.mxu0 %v5939_v3 }
 0xbd7   :  { %6001 = vmatprep.subr.bf16.mxu1 %v5939_v3  ;;  %5942 = vmatpush3.bf16.msra.mxu0 %v5939_v3 }
 0xbd8   :  { %6009 = vmatpush3.bf16.msra.mxu1 %v5939_v3  ;;  %v8397_v19 = vpop.eup %6601 }
 0xbda   :  { %3106 = vadd.xlane.f32.xlu1 %v8391_v59 }
 0xbdc   :  { %v8400_v62 = vpop.eup %6603 }
 0xbdd   :  { %v8405_v41 = vpop.eup %6605 }
 0xbde   :  { %3104 = vadd.xlane.f32.xlu1 %v8394_v44 }
 0xbe2   :  { %3108 = vadd.xlane.f32.xlu1 %v8397_v19 }
 0xbe6   :  { %3112 = vadd.xlane.f32.xlu1 %v8400_v62 }
 0xbe8   :  { %6349 = vrot.lane.b32.xlu0 %v7298_v32, %s6825_s5  ;;  %v8416_v32 = vpop.eup %6607 }
 0xbea   :  { %3114 = vadd.xlane.f32.xlu1 %v8405_v41 }
 0xbfb   :  { %3357 = vrot.lane.b32.xlu1 %v9157_v38, %s6810_s16 }
 0xbff   :  { %3359 = vrot.lane.b32.xlu1 %v9158_v8, %s6810_s16 }
 0xc03   :  { %3423 = vrot.lane.b32.xlu1 %v8272_v31, %s6826_s22  ;;  %v9162_v31 = vld [vmem:[#allocation23_spill] sm:$0xff] }
 0xc07   :  { %3110 = vadd.xlane.f32.xlu0 %v8416_v32  ;;  %3361 = vrot.lane.b32.xlu1 %v9159_v39, %s6810_s16 }
 0xc0b   :  { %3363 = vrot.lane.b32.xlu1 %v9160_v48, %s6810_s16 }
 0xc0f   :  { %3425 = vrot.lane.b32.xlu1 %v8278_v23, %s6826_s22  ;;  %v9163_v23 = vld [vmem:[#allocation25_spill] sm:$0xff] }
 0xc13   :  { %3365 = vrot.lane.b32.xlu1 %v9161_v1, %s6810_s16 }
 0xc17   :  { %3429 = vrot.lane.b32.xlu1 %v8282_v34, %s6826_s22  ;;  %v9166_v34 = vld [vmem:[#allocation22_spill] sm:$0xff] }
 0xc1b   :  { %3369 = vrot.lane.b32.xlu1 %v9162_v31, %s6810_s16  ;;  %v9173_v31 = vld [vmem:[#allocation32_spill] sm:$0xff] }
 0xc1d   :  { %3421 = vrot.lane.b32.xlu0 %v8274_v6, %s6826_s22  ;;  %v9165_v6 = vld [vmem:[#allocation27_spill] sm:$0xff] }
 0xc1f   :  { %3433 = vrot.lane.b32.xlu1 %v8286_v29, %s6826_s22  ;;  %v9168_v29 = vld [vmem:[#allocation24_spill] sm:$0xff] }
 0xc21   :  { %3427 = vrot.lane.b32.xlu0 %v8276_v46, %s6826_s22  ;;  %v9167_v46 = vld [vmem:[#allocation29_spill] sm:$0xff] }
 0xc23   :  { %3373 = vrot.lane.b32.xlu1 %v9163_v23, %s6810_s16 }
 0xc25   :  { %3367 = vrot.lane.b32.xlu0 %v9164_v37, %s6810_s16  ;;  %v9174_v37 = vld [vmem:[#allocation31_spill] sm:$0xff] }
 0xc27   :  { %3437 = vrot.lane.b32.xlu1 %v8290_v53, %s6826_s22  ;;  %v9170_v53 = vld [vmem:[#allocation26_spill] sm:$0xff] }
 0xc29   :  { %3431 = vrot.lane.b32.xlu0 %v8280_v28, %s6826_s22  ;;  %v9169_v28 = vld [vmem:[#allocation47_spill] sm:$0xff] }
 0xc2b   :  { %3377 = vrot.lane.b32.xlu1 %v9165_v6, %s6810_s16 }
 0xc2d   :  { %3371 = vrot.lane.b32.xlu0 %v9166_v34, %s6810_s16 }
 0xc2f   :  { %3441 = vrot.lane.b32.xlu1 %v8294_v56, %s6826_s22 }
 0xc31   :  { %3435 = vrot.lane.b32.xlu0 %v8284_v45, %s6826_s22  ;;  %v9171_v45 = vld [vmem:[#allocation28_spill] sm:$0xff] }
 0xc33   :  { %3381 = vrot.lane.b32.xlu1 %v9167_v46, %s6810_s16  ;;  %v9175_v46 = vld [vmem:[#allocation34_spill] sm:$0xff] }
 0xc35   :  { %3375 = vrot.lane.b32.xlu0 %v9168_v29, %s6810_s16 }
 0xc37   :  { %3445 = vrot.lane.b32.xlu1 %v8298_v57, %s6826_s22 }
 0xc39   :  { %3439 = vrot.lane.b32.xlu0 %v8288_v36, %s6826_s22  ;;  %v9172_v36 = vld [vmem:[#allocation30_spill] sm:$0xff] }
 0xc3b   :  { %3385 = vrot.lane.b32.xlu1 %v9169_v28, %s6810_s16 }
 0xc3d   :  { %3379 = vrot.lane.b32.xlu0 %v9170_v53, %s6810_s16 }
 0xc3f   :  { %3449 = vrot.lane.b32.xlu1 %v8302_v17, %s6826_s22 }
 0xc41   :  { %3443 = vrot.lane.b32.xlu0 %v8292_v42, %s6826_s22 }
 0xc45   :  { %3383 = vrot.lane.b32.xlu0 %v9171_v45, %s6810_s16 }
 0xc49   :  { %3447 = vrot.lane.b32.xlu0 %v8296_v20, %s6826_s22  ;;  %v3087_v9 = vpop.xlane.xlu0 %3086 }
 0xc4a   :  { %v3085_v56 = vpop.xlane.xlu1 %3084 }
 0xc4b   :  { %6609 = vrcp.f32 %v3085_v56 }
 0xc4c   :  { %6611 = vrcp.f32 %v3087_v9 }
 0xc4d   :  { %3387 = vrot.lane.b32.xlu0 %v9172_v36, %s6810_s16 }
 0xc4e   :  { %v3091_v57 = vpop.xlane.xlu1 %3090 }
 0xc4f   :  { %6613 = vrcp.f32 %v3091_v57 }
 0xc51   :  { %3451 = vrot.lane.b32.xlu0 %v8300_v18, %s6826_s22 }
 0xc52   :  { %v3089_v63 = vpop.xlane.xlu1 %3088 }
 0xc53   :  { %6615 = vrcp.f32 %v3089_v63 }
 0xc55   :  { %v6610_v17 = vpop.eup %6609 }
 0xc56   :  { %v3095_v2 = vpop.xlane.xlu1 %3094  ;;  %v3117_v42 = vmul.f32 %v6610_v17, %v8354_v54  ;;  %v3093_v52 = vpop.xlane.xlu0 %3092 }
 0xc57   :  { %v6612_v54 = vpop.eup %6611 }
 0xc58   :  { %5475 = vmatprep.mubr.f32.mxu0 %v3117_v42  ;;  %v3119_v24 = vmul.f32 %v6612_v54, %v8352_v43 }
 0xc59   :  { %v6614_v13 = vpop.eup %6613 }
 0xc5a   :  { %v3099_v33 = vpop.xlane.xlu1 %3098  ;;  %v3123_v43 = vmul.f32 %v6614_v13, %v8359_v47 }
 0xc5b   :  { %6617 = vrcp.f32 %v3099_v33 }
 0xc5d   :  { %v6616_v61 = vpop.eup %6615 }
 0xc5e   :  { %v3121_v11 = vmul.f32 %v6616_v61, %v8363_v50 }
 0xc5f   :  { %v3097_v20 = vpop.xlane.xlu1 %3096  ;;  %v3101_v60 = vpop.xlane.xlu0 %3100 }
 0xc60   :  { %6619 = vrcp.f32 %v3097_v20 }
 0xc61   :  { %6621 = vrcp.f32 %v3101_v60 }
 0xc62   :  { %6623 = vrcp.f32 %v3093_v52 }
 0xc63   :  { %v3103_v15 = vpop.xlane.xlu1 %3102  ;;  %v6350_v18 = vpop.permute.xlu0 %6349 }
 0xc64   :  { %6625 = vrcp.f32 %v3103_v15  ;;  %v6352_v58 = vunpack.i.h.bf16 %v6350_v18  ;;  %v6351_v16 = vunpack.i.l.bf16 %v6350_v18 }
 0xc65   :  { %6627 = vrcp.f32 %v3095_v2  ;;  %v6618_v25 = vpop.eup %6617 }
 0xc66   :  { %v5943_v49 = vpack.c.bf16 %v6352_v58, %v6351_v16  ;;  %v3131_v30 = vmul.f32 %v6618_v25, %v8376_v4  ;;  %v9176_v58 = vld [vmem:[#allocation44_spill] sm:$0xff] }
 0xc67   :  { %v3107_v14 = vpop.xlane.xlu1 %3106  ;;  %v3585_v25 = vld [vmem:[#allocation5 + $0x10] sm:$0xff] }
 0xc68   :  { %5944 = vmatprep.subr.bf16.mxu0 %v5943_v49  ;;  %6002 = vmatprep.subr.bf16.mxu1 %v5943_v49  ;;  %6629 = vrcp.f32 %v3107_v14  ;;  %v3584_v14 = vld [vmem:[#allocation5 + $0x8] sm:$0xff] }
 0xc69   :  { %5946 = vmatpush3.bf16.msra.mxu0 %v5943_v49  ;;  %6010 = vmatpush3.bf16.msra.mxu1 %v5943_v49  ;;  %v9177_v49 = vld [vmem:[#allocation46_spill] sm:$0xff] }
 0xc6a   :  { %v6620_v35 = vpop.eup %6619 }
 0xc6b   :  { %v6622_v7 = vpop.eup %6621  ;;  %v3105_v40 = vpop.xlane.xlu1 %3104  ;;  %v3129_v21 = vmul.f32 %v6620_v35, %v8382_v10  ;;  %v3586_v35 = vld [vmem:[#allocation5 + $0x18] sm:$0xff] }
 0xc6c   :  { %v6624_v3 = vpop.eup %6623  ;;  %6631 = vrcp.f32 %v3105_v40  ;;  %5476 = vmatmul.mubr.f32.vlgmr.msra.gmra.mrb[80].mxu0 %v3119_v24  ;;  %v3133_v22 = vmul.f32 %v6622_v7, %v8380_v27  ;;  %v5951_v24 = vpack.c.bf16 %v3586_v35, %v3585_v25 }
 0xc6d   :  { %5478 = vmatprep.mubr.f32.mxu0 %v3121_v11  ;;  %5484 = vmatprep.mubr.f32.mxu1 %v3129_v21  ;;  %v3125_v50 = vmul.f32 %v6624_v3, %v8371_v5 }
 0xc6e   :  { %v6626_v51 = vpop.eup %6625  ;;  %5485 = vmatmul.mubr.f32.vlgmr.msra.gmra.mrb[48].mxu1 %v3131_v30 }
 0xc6f   :  { %v6628_v26 = vpop.eup %6627  ;;  %v3109_v0 = vpop.xlane.xlu1 %3108  ;;  %5487 = vmatprep.mubr.f32.mxu1 %v3133_v22  ;;  %v3135_v10 = vmul.f32 %v6626_v51, %v8387_v12 }
 0xc70   :  { %6633 = vrcp.f32 %v3109_v0  ;;  %5479 = vmatmul.mubr.f32.gmra.mrb[82].mxu0 %v3123_v43  ;;  %v3127_v4 = vmul.f32 %v6628_v26, %v8368_v55 }
 0xc71   :  { %5481 = vmatprep.mubr.f32.mxu0 %v3125_v50 }
 0xc72   :  { %5488 = vmatmul.mubr.f32.gmra.mrb[50].mxu1 %v3135_v10  ;;  %v6630_v27 = vpop.eup %6629 }
 0xc73   :  { %v3113_v38 = vpop.xlane.xlu1 %3112  ;;  %v3139_v48 = vmul.f32 %v6630_v27, %v8391_v59 }
 0xc74   :  { %5482 = vmatmul.mubr.f32.gmra.mrb[84].mxu0 %v3127_v4  ;;  %6635 = vrcp.f32 %v3113_v38 }
 0xc76   :  { %v6632_v8 = vpop.eup %6631 }
 0xc77   :  { %v3115_v39 = vpop.xlane.xlu1 %3114  ;;  %v3137_v47 = vmul.f32 %v6632_v8, %v8394_v44 }
 0xc79   :  { %5490 = vmatprep.mubr.f32.mxu1 %v3137_v47 }
 0xc7a   :  { %v6634_v1 = vpop.eup %6633  ;;  %5491 = vmatmul.mubr.f32.gmra.mrb[52].mxu1 %v3139_v48 }
 0xc7b   :  { %v3358_v5 = vpop.permute.xlu1 %3357  ;;  %v3141_v12 = vmul.f32 %v6634_v1, %v8397_v19 }
 0xc7c   :  { %v8492_v23 = vsel %vm900_vm1, %v9173_v31, %v3358_v5 }
 0xc7d   :  { %5493 = vmatprep.mubr.f32.mxu1 %v3141_v12 }
 0xc7e   :  { %v6636_v57 = vpop.eup %6635 }
 0xc7f   :  { %v3360_v55 = vpop.permute.xlu1 %3359  ;;  %v3145_v9 = vmul.f32 %v6636_v57, %v8400_v62 }
 0xc80   :  { %v3534_v6 = vsel %vm900_vm1, %v9174_v37, %v3360_v55 }
 0xc83   :  { %v3424_v34 = vpop.permute.xlu1 %3423 }
 0xc84   :  { %v8497_v44 = vsel %vm3549_vm3, %v3534_v6, %v3424_v34 }
 0xc87   :  { %v3362_v59 = vpop.permute.xlu1 %3361 }
 0xc88   :  { %v8501_v29 = vsel %vm900_vm1, %v9175_v46, %v3362_v59 }
 0xc8b   :  { %v8503_v19 = vpop.permute.xlu1 %3363 }
 0xc8f   :  { %v8505_v28 = vpop.permute.xlu1 %3425 }
 0xc93   :  { %v8507_v53 = vpop.permute.xlu1 %3365 }
 0xc94   :  { %v3111_v45 = vpop.xlane.xlu0 %3110 }
 0xc95   :  { %6637 = vrcp.f32 %v3111_v45 }
 0xc96   :  { %6639 = vrcp.f32 %v3115_v39 }
 0xc97   :  { %v8509_v56 = vpop.permute.xlu1 %3429 }
 0xc98   :  { %v3422_v10 = vpop.permute.xlu0 %3421 }
 0xc9b   :  { %v8511_v36 = vpop.permute.xlu1 %3369 }
 0xc9c   :  { %v3428_v4 = vpop.permute.xlu0 %3427 }
 0xc9f   :  { %v6638_v63 = vpop.eup %6637  ;;  %v8513_v17 = vpop.permute.xlu1 %3433 }
 0xca0   :  { %v3143_v2 = vmul.f32 %v6638_v63, %v8416_v32  ;;  %v6640_v42 = vpop.eup %6639  ;;  %v3368_v38 = vpop.permute.xlu0 %3367  ;;  %v3550_v63 = vsel %vm3549_vm3, %v8492_v23, %v3422_v10 }
 0xca1   :  { %v3147_v52 = vmul.f32 %v6640_v42, %v8405_v41  ;;  %v3583_v41 = vld [vmem:[#allocation5] sm:$0xff] }
 0xca2   :  { %5494 = vmatmul.mubr.f32.gmra.mrb[54].mxu1 %v3143_v2  ;;  %v5947_v61 = vpack.c.bf16 %v3584_v14, %v3583_v41  ;;  %v9179_v41 = vld [vmem:[#allocation36_spill] sm:$0xff] }
 0xca3   :  { %v8517_v33 = vpop.permute.xlu1 %3373  ;;  %5496 = vmatprep.mubr.f32.mxu1 %v3145_v9  ;;  %v3537_v14 = vsel %vm900_vm1, %v9179_v41, %v8507_v53  ;;  %v9181_v53 = vld [vmem:[#allocation38_spill] sm:$0xff] }
 0xca4   :  { %5948 = vmatprep.subr.bf16.mxu1 %v5947_v61  ;;  %v3432_v8 = vpop.permute.xlu0 %3431 }
 0xca5   :  { %5950 = vmatpush3.bf16.msra.mxu1 %v5947_v61 }
 0xca6   :  { %5497 = vmatmul.mubr.f32.gmra.mrb[56].mxu1 %v3147_v52  ;;  %5952 = vmatprep.subr.bf16.mxu1 %v5951_v24 }
 0xca7   :  { %v8520_v20 = vpop.permute.xlu1 %3437 }
 0xca8   :  { %v3372_v1 = vpop.permute.xlu0 %3371 }
 0xca9   :  { %5954 = vmatpush3.bf16.msra.mxu1 %v5951_v24 }
 0xcab   :  { %v8522_v60 = vpop.permute.xlu1 %3377 }
 0xcac   :  { %v3436_v5 = vpop.permute.xlu0 %3435 }
 0xcaf   :  { %v8524_v15 = vpop.permute.xlu1 %3441 }
 0xcb0   :  { %v3376_v12 = vpop.permute.xlu0 %3375 }
 0xcb3   :  { %v3382_v18 = vpop.permute.xlu1 %3381 }
 0xcb4   :  { %v3545_v32 = vsel %vm900_vm1, %v9176_v58, %v3382_v18  ;;  %v3440_v31 = vpop.permute.xlu0 %3439  ;;  %v9178_v18 = vld [vmem:[#allocation33_spill] sm:$0xff] }
 0xcb5   :  { %v3536_v58 = vsel %vm900_vm1, %v9178_v18, %v8503_v19  ;;  %v3554_v19 = vsel %vm3549_vm3, %v3537_v14, %v8509_v56 }
 0xcb7   :  { %v3446_v16 = vpop.permute.xlu1 %3445 }
 0xcb8   :  { %v8529_v62 = vsel %vm3549_vm3, %v3545_v32, %v3446_v16  ;;  %v3380_v55 = vpop.permute.xlu0 %3379  ;;  %v3552_v32 = vsel %vm3549_vm3, %v8501_v29, %v8505_v28  ;;  %v9180_v29 = vld [vmem:[#allocation35_spill] sm:$0xff] }
 0xcb9   :  { %v3538_v28 = vsel %vm900_vm1, %v9180_v29, %v3368_v38 }
 0xcba   :  { %v3555_v35 = vsel %vm3549_vm3, %v3538_v28, %v3432_v8  ;;  %v9185_v8 = vld [vmem:[#allocation42_spill] sm:$0xff] }
 0xcbb   :  { %v3386_v54 = vpop.permute.xlu1 %3385 }
 0xcbc   :  { %v8533_v13 = vsel %vm900_vm1, %v9177_v49, %v3386_v54  ;;  %v3444_v37 = vpop.permute.xlu0 %3443  ;;  %v3553_v54 = vsel %vm3549_vm3, %v3536_v58, %v3428_v4 }
 0xcbf   :  { %v8557_v46 = vpop.permute.xlu1 %3449 }
 0xcc0   :  { %v8551_v6 = vpop.permute.xlu0 %3383 }
 0xcc4   :  { %v8553_v34 = vpop.permute.xlu0 %3447 }
 0xcc8   :  { %v8555_v59 = vpop.permute.xlu0 %3387 }
 0xccc   :  { %v8559_v45 = vpop.permute.xlu0 %3451 }
 0xd3f   :  { %v5477_v7 = vpop.f32.mrb[80].mxu0 }
 0xd40   :  { %3487 = vrot.lane.b32.xlu1 %v5477_v7, %s6827_s29  ;;  %v3262_v40 = vpop.f32.mrb[81].mxu0 }
 0xd41   :  { %v5486_v11 = vpop.f32.mrb[48].mxu1 }
 0xd42   :  { %v3292_v21 = vpop.f32.mrb[49].mxu1 }
 0xd43   :  { %v5480_v3 = vpop.f32.mrb[82].mxu0 }
 0xd44   :  { %3485 = vrot.lane.b32.xlu1 %v3262_v40, %s6827_s29  ;;  %3491 = vrot.lane.b32.xlu0 %v5480_v3, %s6827_s29  ;;  %v3272_v30 = vpop.f32.mrb[83].mxu0  ;;  %v3539_v40 = vsel %vm900_vm1, %v9181_v53, %v8511_v36  ;;  %v9183_v36 = vld [vmem:[#allocation40_spill] sm:$0xff]  ;;  %v6678_v53 = vld [vmem:[%s9029_s0 + $0x20] sm:$0xff] }
 0xd45   :  { %v5489_v22 = vpop.f32.mrb[50].mxu1  ;;  %v3556_v56 = vsel %vm3549_vm3, %v3539_v40, %v8513_v17 }
 0xd46   :  { %v3302_v51 = vpop.f32.mrb[51].mxu1 }
 0xd47   :  { %v5483_v43 = vpop.f32.mrb[84].mxu0 }
 0xd48   :  { %3489 = vrot.lane.b32.xlu1 %v3272_v30, %s6827_s29  ;;  %3495 = vrot.lane.b32.xlu0 %v5483_v43, %s6827_s29  ;;  %v3282_v26 = vpop.f32.mrb[85].mxu0 }
 0xd4c   :  { %3499 = vrot.lane.b32.xlu0 %v5486_v11, %s6827_s29  ;;  %3493 = vrot.lane.b32.xlu1 %v3282_v26, %s6827_s29  ;;  %v9182_v11 = vld [vmem:[#allocation37_spill] sm:$0xff]  ;;  %v3541_v26 = vsel %vm900_vm1, %v9183_v36, %v8517_v33  ;;  %v3543_v33 = vsel %vm900_vm1, %v9185_v8, %v8522_v60 }
 0xd4d   :  { %v5492_v0 = vpop.f32.mrb[52].mxu1  ;;  %v3558_v17 = vsel %vm3549_vm3, %v3541_v26, %v8520_v20  ;;  %v3560_v20 = vsel %vm3549_vm3, %v3543_v33, %v8524_v15 }
 0xd4e   :  { %v3312_v50 = vpop.f32.mrb[53].mxu1 }
 0xd50   :  { %3503 = vrot.lane.b32.xlu0 %v5489_v22, %s6827_s29  ;;  %3497 = vrot.lane.b32.xlu1 %v3292_v21, %s6827_s29  ;;  %v3540_v21 = vsel %vm900_vm1, %v9182_v11, %v3372_v1 }
 0xd51   :  { %v3557_v30 = vsel %vm3549_vm3, %v3540_v21, %v3436_v5 }
 0xd54   :  { %3507 = vrot.lane.b32.xlu0 %v5492_v0, %s6827_s29  ;;  %3501 = vrot.lane.b32.xlu1 %v3302_v51, %s6827_s29  ;;  %v9184_v0 = vld [vmem:[#allocation39_spill] sm:$0xff] }
 0xd58   :  { %3505 = vrot.lane.b32.xlu1 %v3312_v50, %s6827_s29  ;;  %v3542_v50 = vsel %vm900_vm1, %v9184_v0, %v3376_v12  ;;  %v6681_v0 = vld [vmem:[%s9029_s0 + $0x48] sm:$0xff] }
 0xd59   :  { %v3559_v4 = vsel %vm3549_vm3, %v3542_v50, %v3440_v31 }
 0xd75   :  { %v5495_v27 = vpop.f32.mrb[54].mxu1 }
 0xd76   :  { %v3322_v39 = vpop.f32.mrb[55].mxu1  ;;  %3511 = vrot.lane.b32.xlu0 %v5495_v27, %s6827_s29 }
 0xd77   :  { %3509 = vrot.lane.b32.xlu1 %v3322_v39, %s6827_s29 }
 0xd79   :  { %v5498_v47 = vpop.f32.mrb[56].mxu1 }
 0xd7a   :  { %v3332_v48 = vpop.f32.mrb[57].mxu1  ;;  %3515 = vrot.lane.b32.xlu0 %v5498_v47, %s6827_s29  ;;  %v9186_v47 = vld [vmem:[#allocation41_spill] sm:$0xff] }
 0xd7b   :  { %3513 = vrot.lane.b32.xlu1 %v3332_v48, %s6827_s29  ;;  %v3544_v48 = vsel %vm900_vm1, %v9186_v47, %v3380_v55 }
 0xd7c   :  { %v3561_v5 = vsel %vm3549_vm3, %v3544_v48, %v3444_v37  ;;  %v6684_v48 = vld [vmem:[%s9029_s0 + $0x50] sm:$0xff] }
 0xdb2   :  { %v3488_v57 = vpop.permute.xlu1 %3487 }
 0xdb3   :  { %v3568_v52 = vsel %vm3566_vm4, %v8497_v44, %v3488_v57  ;;  %v9187_v57 = vld [vmem:[#allocation43_spill] sm:$0xff] }
 0xdb6   :  { %v3486_v2 = vpop.permute.xlu1 %3485  ;;  %v3492_v42 = vpop.permute.xlu0 %3491 }
 0xdb7   :  { %v3567_v9 = vsel %vm3566_vm4, %v3550_v63, %v3486_v2  ;;  %v3570_v44 = vsel %vm3566_vm4, %v3553_v54, %v3492_v42  ;;  %v3546_v63 = vsel %vm900_vm1, %v9187_v57, %v8551_v6  ;;  %v9188_v6 = vld [vmem:[#allocation45_spill] sm:$0xff] }
 0xdb8   :  { %5507 = vmatprep.mubr.msk.f32.mxu1 %vm113_vm0, %v3567_v9  ;;  %v3563_v55 = vsel %vm3549_vm3, %v3546_v63, %v8553_v34  ;;  %v3564_v9 = vsel %vm3549_vm3, %v8533_v13, %v8557_v46  ;;  %v6673_v13 = vld [vmem:[%s9029_s0 + $0x8] sm:$0xff] }
 0xdb9   :  { %5508 = vmatmul.mubr.msk.f32.vlgmr.msra.gmra.mrb[58].mxu1 %vm113_vm0, %v3568_v52  ;;  %v3548_v52 = vsel %vm900_vm1, %v9188_v6, %v8555_v59 }
 0xdba   :  { %v3490_v23 = vpop.permute.xlu1 %3489  ;;  %v3496_v16 = vpop.permute.xlu0 %3495  ;;  %v3565_v34 = vsel %vm3549_vm3, %v3548_v52, %v8559_v45  ;;  %v6674_v45 = vld [vmem:[%s9029_s0] sm:$0xff] }
 0xdbb   :  { %v3569_v49 = vsel %vm3566_vm4, %v3552_v32, %v3490_v23  ;;  %v3572_v7 = vsel %vm3566_vm4, %v3555_v35, %v3496_v16  ;;  %v6677_v35 = vld [vmem:[%s9029_s0 + $0x28] sm:$0xff] }
 0xdbc   :  { %5510 = vmatprep.mubr.msk.f32.mxu1 %vm113_vm0, %v3569_v49 }
 0xdbd   :  { %5511 = vmatmul.mubr.msk.f32.gmra.mrb[60].mxu1 %vm113_vm0, %v3570_v44  ;;  %v6675_v44 = vld [vmem:[%s9029_s0 + $0x18] sm:$0xff] }
 0xdbe   :  { %v3500_v61 = vpop.permute.xlu0 %3499  ;;  %v3494_v25 = vpop.permute.xlu1 %3493 }
 0xdbf   :  { %v3571_v24 = vsel %vm3566_vm4, %v3554_v19, %v3494_v25  ;;  %v3574_v43 = vsel %vm3566_vm4, %v3557_v30, %v3500_v61  ;;  %v6676_v19 = vld [vmem:[%s9029_s0 + $0x10] sm:$0xff] }
 0xdc0   :  { %5513 = vmatprep.mubr.msk.f32.mxu1 %vm113_vm0, %v3571_v24 }
 0xdc1   :  { %5514 = vmatmul.mubr.msk.f32.gmra.mrb[62].mxu1 %vm113_vm0, %v3572_v7 }
 0xdc2   :  { %v3498_v3 = vpop.permute.xlu1 %3497  ;;  %v3504_v22 = vpop.permute.xlu0 %3503 }
 0xdc3   :  { %v3573_v51 = vsel %vm3566_vm4, %v3556_v56, %v3498_v3  ;;  %v3576_v27 = vsel %vm3566_vm4, %v3559_v4, %v3504_v22  ;;  %v6679_v3 = vld [vmem:[%s9029_s0 + $0x38] sm:$0xff]  ;;  %v6682_v4 = vld [vmem:[%s9029_s0 + $0x40] sm:$0xff] }
 0xdc4   :  { %5516 = vmatprep.mubr.msk.f32.mxu1 %vm113_vm0, %v3573_v51  ;;  %v6680_v51 = vld [vmem:[%s9029_s0 + $0x30] sm:$0xff] }
 0xdc5   :  { %5517 = vmatmul.mubr.msk.f32.gmra.mrb[64].mxu1 %vm113_vm0, %v3574_v43 }
 0xdc6   :  { %v3502_v10 = vpop.permute.xlu1 %3501  ;;  %v3508_v39 = vpop.permute.xlu0 %3507 }
 0xdc7   :  { %v3575_v38 = vsel %vm3566_vm4, %v3558_v17, %v3502_v10  ;;  %v3578_v31 = vsel %vm3566_vm4, %v3561_v5, %v3508_v39  ;;  %v6683_v39 = vld [vmem:[%s9029_s0 + $0x58] sm:$0xff] }
 0xdc8   :  { %5519 = vmatprep.mubr.msk.f32.mxu1 %vm113_vm0, %v3575_v38 }
 0xdc9   :  { %5520 = vmatmul.mubr.msk.f32.gmra.mrb[66].mxu1 %vm113_vm0, %v3576_v27 }
 0xdca   :  { %v3506_v1 = vpop.permute.xlu1 %3505 }
 0xdcb   :  { %v3577_v12 = vsel %vm3566_vm4, %v3560_v20, %v3506_v1 }
 0xdcc   :  { %5522 = vmatprep.mubr.msk.f32.mxu1 %vm113_vm0, %v3577_v12 }
 0xdcd   :  { %5523 = vmatmul.mubr.msk.f32.gmra.mrb[68].mxu1 %vm113_vm0, %v3578_v31 }
 0xde8   :  { %v3512_v60 = vpop.permute.xlu0 %3511 }
 0xde9   :  { %v3510_v15 = vpop.permute.xlu1 %3509  ;;  %v3580_v2 = vsel %vm3566_vm4, %v3563_v55, %v3512_v60  ;;  %v6685_v60 = vld [vmem:[%s9029_s0 + $0x68] sm:$0xff] }
 0xdea   :  { %v3579_v37 = vsel %vm3566_vm4, %v8529_v62, %v3510_v15  ;;  %v6686_v15 = vld [vmem:[%s9029_s0 + $0x60] sm:$0xff] }
 0xdeb   :  { %5525 = vmatprep.mubr.msk.f32.mxu1 %vm113_vm0, %v3579_v37 }
 0xdec   :  { %v3516_v42 = vpop.permute.xlu0 %3515  ;;  %5526 = vmatmul.mubr.msk.f32.gmra.mrb[70].mxu1 %vm113_vm0, %v3580_v2 }
 0xded   :  { %v3514_v18 = vpop.permute.xlu1 %3513  ;;  %v3582_v58 = vsel %vm3566_vm4, %v3565_v34, %v3516_v42 }
 0xdee   :  { %v3581_v62 = vsel %vm3566_vm4, %v3564_v9, %v3514_v18  ;;  %v6687_v9 = vld [vmem:[%s9029_s0 + $0x78] sm:$0xff]  ;;  %v6688_v18 = vld [vmem:[%s9029_s0 + $0x70] sm:$0xff] }
 0xdef   :  { %5528 = vmatprep.mubr.msk.f32.mxu1 %vm113_vm0, %v3581_v62 }
 0xdf0   :  { %5529 = vmatmul.mubr.msk.f32.gmra.mrb[72].mxu1 %vm113_vm0, %v3582_v58 }
 0xe8c   :  { %v5509_v32 = vpop.f32.mrb[58].mxu1 }
 0xe8d   :  { %v8652_v46 = vadd.f32 %v6673_v13, %v5509_v32  ;;  %v3701_v59 = vpop.f32.mrb[59].mxu1 }
 0xe8e   :  { %v8657_v23 = vadd.f32 %v6674_v45, %v3701_v59 }
 0xe8f   :  { %v3801_v16 = vsel %vm113_vm0, %v8652_v46, 0.0 }
 0xe90   :  { %v5512_v54 = vpop.f32.mrb[60].mxu1  ;;  %3802 = vadd.xlane.f32.xlu0 %v3801_v16  ;;  %v3798_v49 = vsel %vm113_vm0, %v8657_v23, 0.0 }
 0xe91   :  { %v8666_v41 = vadd.f32 %v6675_v44, %v5512_v54  ;;  %v3711_v14 = vpop.f32.mrb[61].mxu1  ;;  %3799 = vadd.xlane.f32.xlu1 %v3798_v49 }
 0xe92   :  { %v8671_v29 = vadd.f32 %v6676_v19, %v3711_v14 }
 0xe93   :  { %v3807_v28 = vsel %vm113_vm0, %v8666_v41, 0.0 }
 0xe94   :  { %v5515_v61 = vpop.f32.mrb[62].mxu1  ;;  %v3804_v25 = vsel %vm113_vm0, %v8671_v29, 0.0 }
 0xe95   :  { %v8680_v24 = vadd.f32 %v6677_v35, %v5515_v61  ;;  %3805 = vadd.xlane.f32.xlu0 %v3804_v25  ;;  %3808 = vadd.xlane.f32.xlu1 %v3807_v28  ;;  %v3721_v7 = vpop.f32.mrb[63].mxu1 }
 0xe96   :  { %v8685_v40 = vadd.f32 %v6678_v53, %v3721_v7 }
 0xe97   :  { %v3813_v56 = vsel %vm113_vm0, %v8680_v24, 0.0 }
 0xe98   :  { %v5518_v11 = vpop.f32.mrb[64].mxu1  ;;  %v3810_v21 = vsel %vm113_vm0, %v8685_v40, 0.0 }
 0xe99   :  { %v8694_v30 = vadd.f32 %v6679_v3, %v5518_v11  ;;  %3814 = vadd.xlane.f32.xlu1 %v3813_v56  ;;  %3811 = vadd.xlane.f32.xlu0 %v3810_v21  ;;  %v3731_v22 = vpop.f32.mrb[65].mxu1 }
 0xe9a   :  { %v8699_v43 = vadd.f32 %v6680_v51, %v3731_v22 }
 0xe9b   :  { %v3819_v36 = vsel %vm113_vm0, %v8694_v30, 0.0 }
 0xe9c   :  { %v5521_v26 = vpop.f32.mrb[66].mxu1  ;;  %v3816_v17 = vsel %vm113_vm0, %v8699_v43, 0.0 }
 0xe9d   :  { %v8708_v50 = vadd.f32 %v6681_v0, %v5521_v26  ;;  %3820 = vadd.xlane.f32.xlu1 %v3819_v36  ;;  %3817 = vadd.xlane.f32.xlu0 %v3816_v17  ;;  %v3741_v10 = vpop.f32.mrb[67].mxu1 }
 0xe9e   :  { %v8713_v38 = vadd.f32 %v6682_v4, %v3741_v10 }
 0xe9f   :  { %v3825_v27 = vsel %vm113_vm0, %v8708_v50, 0.0 }
 0xea0   :  { %v5524_v8 = vpop.f32.mrb[68].mxu1  ;;  %v3822_v33 = vsel %vm113_vm0, %v8713_v38, 0.0 }
 0xea1   :  { %v8722_v20 = vadd.f32 %v6683_v39, %v5524_v8  ;;  %3826 = vadd.xlane.f32.xlu1 %v3825_v27  ;;  %3823 = vadd.xlane.f32.xlu0 %v3822_v33  ;;  %v3751_v47 = vpop.f32.mrb[69].mxu1 }
 0xea2   :  { %v8727_v1 = vadd.f32 %v6684_v48, %v3751_v47 }
 0xea3   :  { %v3831_v5 = vsel %vm113_vm0, %v8722_v20, 0.0 }
 0xea4   :  { %v3828_v12 = vsel %vm113_vm0, %v8727_v1, 0.0 }
 0xea5   :  { %3832 = vadd.xlane.f32.xlu1 %v3831_v5  ;;  %3829 = vadd.xlane.f32.xlu0 %v3828_v12 }
 0xebf   :  { %v5527_v31 = vpop.f32.mrb[70].mxu1 }
 0xec0   :  { %v8736_v57 = vadd.f32 %v6685_v60, %v5527_v31  ;;  %v3761_v63 = vpop.f32.mrb[71].mxu1 }
 0xec1   :  { %v8741_v55 = vadd.f32 %v6686_v15, %v3761_v63 }
 0xec2   :  { %v3837_v37 = vsel %vm113_vm0, %v8736_v57, 0.0 }
 0xec3   :  { %3838 = vadd.xlane.f32.xlu1 %v3837_v37  ;;  %v5530_v2 = vpop.f32.mrb[72].mxu1  ;;  %v3834_v42 = vsel %vm113_vm0, %v8741_v55, 0.0 }
 0xec4   :  { %v8750_v6 = vadd.f32 %v6687_v9, %v5530_v2  ;;  %3835 = vadd.xlane.f32.xlu0 %v3834_v42  ;;  %v3771_v52 = vpop.f32.mrb[73].mxu1 }
 0xec5   :  { %v8755_v34 = vadd.f32 %v6688_v18, %v3771_v52 }
 0xec6   :  { %v3843_v62 = vsel %vm113_vm0, %v8750_v6, 0.0 }
 0xec7   :  { %3844 = vadd.xlane.f32.xlu1 %v3843_v62  ;;  %v3840_v58 = vsel %vm113_vm0, %v8755_v34, 0.0 }
 0xec8   :  { %3841 = vadd.xlane.f32.xlu0 %v3840_v58 }
 0xf1d   :  { %v3803_v32 = vpop.xlane.xlu0 %3802 }
 0xf1e   :  { %v3847_v13 = vmul.f32 0.03125, %v3803_v32  ;;  %v3800_v59 = vpop.xlane.xlu1 %3799 }
 0xf1f   :  { %v3846_v45 = vmul.f32 0.03125, %v3800_v59 }
 0xf20   :  { %v8762_v16 = vsub.f32 %v8652_v46, %v3847_v13 }
 0xf21   :  { %v8765_v54 = vsub.f32 %v8657_v23, %v3846_v45 }
 0xf22   :  { %v3806_v49 = vpop.xlane.xlu0 %3805  ;;  %v3809_v44 = vpop.xlane.xlu1 %3808  ;;  %v3879_v14 = vmul.f32 %v8762_v16, %v8762_v16 }
 0xf23   :  { %v3848_v19 = vmul.f32 0.03125, %v3806_v49  ;;  %v3849_v28 = vmul.f32 0.03125, %v3809_v44  ;;  %v3878_v61 = vmul.f32 %v8765_v54, %v8765_v54 }
 0xf24   :  { %v3897_v25 = vsel %vm113_vm0, %v3879_v14, 0.0 }
 0xf25   :  { %v8773_v35 = vsub.f32 %v8671_v29, %v3848_v19  ;;  %v8776_v7 = vsub.f32 %v8666_v41, %v3849_v28  ;;  %3898 = vadd.xlane.f32.xlu1 %v3897_v25  ;;  %v3894_v53 = vsel %vm113_vm0, %v3878_v61, 0.0 }
 0xf26   :  { %v3812_v56 = vpop.xlane.xlu0 %3811  ;;  %3895 = vadd.xlane.f32.xlu0 %v3894_v53  ;;  %v3815_v11 = vpop.xlane.xlu1 %3814 }
 0xf27   :  { %v3850_v21 = vmul.f32 0.03125, %v3812_v56  ;;  %v3851_v3 = vmul.f32 0.03125, %v3815_v11  ;;  %v3880_v22 = vmul.f32 %v8773_v35, %v8773_v35  ;;  %v3881_v51 = vmul.f32 %v8776_v7, %v8776_v7  ;;  %v4050_v56 = vld [vmem:[#allocation7] sm:$0xff]  ;;  %v4051_v11 = vld [vmem:[#allocation7 + $0x8] sm:$0xff] }
 0xf29   :  { %v8784_v36 = vsub.f32 %v8685_v40, %v3850_v21  ;;  %v8787_v26 = vsub.f32 %v8680_v24, %v3851_v3  ;;  %v3900_v17 = vsel %vm113_vm0, %v3880_v22, 0.0  ;;  %v3903_v0 = vsel %vm113_vm0, %v3881_v51, 0.0  ;;  %v4052_v3 = vld [vmem:[#allocation7 + $0x10] sm:$0xff]  ;;  %v4053_v22 = vld [vmem:[#allocation7 + $0x18] sm:$0xff] }
 0xf2a   :  { %v3818_v10 = vpop.xlane.xlu0 %3817  ;;  %3901 = vadd.xlane.f32.xlu0 %v3900_v17  ;;  %3904 = vadd.xlane.f32.xlu1 %v3903_v0  ;;  %v3821_v4 = vpop.xlane.xlu1 %3820  ;;  %v5955_v21 = vpack.c.bf16 %v4051_v11, %v4050_v56  ;;  %v5959_v51 = vpack.c.bf16 %v4053_v22, %v4052_v3  ;;  %v4277_v56 = vld [vmem:[%s9039_s10 + $0x38] sm:$0xff]  ;;  %v4279_v3 = vld [vmem:[%s9039_s10 + $0x48] sm:$0xff] }
 0xf2b   :  { %v3852_v27 = vmul.f32 0.03125, %v3818_v10  ;;  %v3853_v8 = vmul.f32 0.03125, %v3821_v4  ;;  %v3882_v33 = vmul.f32 %v8784_v36, %v8784_v36  ;;  %v3883_v39 = vmul.f32 %v8787_v26, %v8787_v26 }
 0xf2c   :  { %5956 = vmatprep.subr.bf16.mxu0 %v5955_v21 }
 0xf2d   :  { %v8796_v47 = vsub.f32 %v8699_v43, %v3852_v27  ;;  %v8799_v48 = vsub.f32 %v8694_v30, %v3853_v8  ;;  %v3906_v5 = vsel %vm113_vm0, %v3882_v33, 0.0  ;;  %v3909_v12 = vsel %vm113_vm0, %v3883_v39, 0.0  ;;  %5958 = vmatpush3.bf16.msra.mxu0 %v5955_v21  ;;  %v4278_v21 = vld [vmem:[%s9039_s10 + $0x40] sm:$0xff] }
 0xf2e   :  { %v3824_v31 = vpop.xlane.xlu0 %3823  ;;  %3907 = vadd.xlane.f32.xlu0 %v3906_v5  ;;  %3910 = vadd.xlane.f32.xlu1 %v3909_v12  ;;  %v3827_v60 = vpop.xlane.xlu1 %3826  ;;  %v5979_v22 = vpack.c.bf16 %v4279_v3, %v4278_v21  ;;  %v8902_v21 = vld [vmem:[%s9035_s6] ss:$0 sm:$0xff] }
 0xf2f   :  { %v3854_v63 = vmul.f32 0.03125, %v3824_v31  ;;  %v3855_v15 = vmul.f32 0.03125, %v3827_v60  ;;  %v3884_v37 = vmul.f32 %v8796_v47, %v8796_v47  ;;  %v3885_v2 = vmul.f32 %v8799_v48, %v8799_v48  ;;  %5960 = vmatprep.subr.bf16.mxu0 %v5959_v51 }
 0xf31   :  { %v8808_v42 = vsub.f32 %v8713_v38, %v3854_v63  ;;  %v8811_v9 = vsub.f32 %v8708_v50, %v3855_v15  ;;  %v3912_v52 = vsel %vm113_vm0, %v3884_v37, 0.0  ;;  %v3915_v18 = vsel %vm113_vm0, %v3885_v2, 0.0  ;;  %5962 = vmatpush3.bf16.msra.mxu0 %v5959_v51  ;;  %v4280_v51 = vld [vmem:[%s9039_s10 + $0x50] sm:$0xff] }
 0xf32   :  { %v3830_v62 = vpop.xlane.xlu0 %3829  ;;  %3913 = vadd.xlane.f32.xlu0 %v3912_v52  ;;  %3916 = vadd.xlane.f32.xlu1 %v3915_v18  ;;  %v3833_v58 = vpop.xlane.xlu1 %3832 }
 0xf33   :  { %v3856_v32 = vmul.f32 0.03125, %v3830_v62  ;;  %v3857_v13 = vmul.f32 0.03125, %v3833_v58  ;;  %v3886_v59 = vmul.f32 %v8808_v42, %v8808_v42  ;;  %v3887_v45 = vmul.f32 %v8811_v9, %v8811_v9 }
 0xf35   :  { %v8820_v49 = vsub.f32 %v8727_v1, %v3856_v32  ;;  %v8823_v44 = vsub.f32 %v8722_v20, %v3857_v13  ;;  %v3918_v14 = vsel %vm113_vm0, %v3886_v59, 0.0  ;;  %v3921_v19 = vsel %vm113_vm0, %v3887_v45, 0.0  ;;  %v4270_v32 = vld [vmem:[%s9039_s10] sm:$0xff]  ;;  %v4271_v13 = vld [vmem:[%s9039_s10 + $0x8] sm:$0xff]  ;;  %v4272_v59 = vld [vmem:[%s9039_s10 + $0x10] sm:$0xff] }
 0xf36   :  { %3919 = vadd.xlane.f32.xlu0 %v3918_v14  ;;  %3922 = vadd.xlane.f32.xlu1 %v3921_v19  ;;  %v5963_v45 = vpack.c.bf16 %v4271_v13, %v4270_v32  ;;  %v4273_v14 = vld [vmem:[%s9039_s10 + $0x18] sm:$0xff] }
 0xf37   :  { %v3888_v28 = vmul.f32 %v8820_v49, %v8820_v49  ;;  %v3889_v61 = vmul.f32 %v8823_v44, %v8823_v44  ;;  %v5967_v19 = vpack.c.bf16 %v4273_v14, %v4272_v59 }
 0xf38   :  { %5964 = vmatprep.subr.bf16.mxu1 %v5963_v45 }
 0xf39   :  { %v3924_v25 = vsel %vm113_vm0, %v3888_v28, 0.0  ;;  %v3927_v53 = vsel %vm113_vm0, %v3889_v61, 0.0  ;;  %v4274_v28 = vld [vmem:[%s9039_s10 + $0x20] sm:$0xff]  ;;  %v4275_v61 = vld [vmem:[%s9039_s10 + $0x28] sm:$0xff]  ;;  %5966 = vmatpush3.bf16.msra.mxu1 %v5963_v45 }
 0xf3a   :  { %3925 = vadd.xlane.f32.xlu0 %v3924_v25  ;;  %3928 = vadd.xlane.f32.xlu1 %v3927_v53  ;;  %v5971_v25 = vpack.c.bf16 %v4275_v61, %v4274_v28  ;;  %v4276_v53 = vld [vmem:[%s9039_s10 + $0x30] sm:$0xff] }
 0xf3b   :  { %5968 = vmatprep.subr.bf16.mxu1 %v5967_v19  ;;  %v5975_v11 = vpack.c.bf16 %v4277_v56, %v4276_v53 }
 0xf3d   :  { %5970 = vmatpush3.bf16.msra.mxu1 %v5967_v19 }
 0xf3e   :  { %5972 = vmatprep.subr.bf16.mxu1 %v5971_v25 }
 0xf41   :  { %5974 = vmatpush3.bf16.msra.mxu1 %v5971_v25 }
 0xf42   :  { %5976 = vmatprep.subr.bf16.mxu1 %v5975_v11 }
 0xf45   :  { %5978 = vmatpush3.bf16.msra.mxu1 %v5975_v11 }
 0xf46   :  { %5980 = vmatprep.subr.bf16.mxu1 %v5979_v22 }
 0xf49   :  { %5982 = vmatpush3.bf16.msra.mxu1 %v5979_v22 }
 0xf50   :  { %v3839_v17 = vpop.xlane.xlu1 %3838 }
 0xf51   :  { %v3859_v0 = vmul.f32 0.03125, %v3839_v17  ;;  %v3836_v10 = vpop.xlane.xlu0 %3835  ;;  %v4281_v17 = vld [vmem:[%s9039_s10 + $0x58] sm:$0xff] }
 0xf52   :  { %v3858_v4 = vmul.f32 0.03125, %v3836_v10  ;;  %v4282_v10 = vld [vmem:[%s9039_s10 + $0x60] sm:$0xff] }
 0xf53   :  { %v8834_v27 = vsub.f32 %v8736_v57, %v3859_v0  ;;  %v5983_v0 = vpack.c.bf16 %v4281_v17, %v4280_v51 }
 0xf54   :  { %v8837_v8 = vsub.f32 %v8741_v55, %v3858_v4  ;;  %v3845_v33 = vpop.xlane.xlu1 %3844  ;;  %v4283_v4 = vld [vmem:[%s9039_s10 + $0x68] sm:$0xff] }
 0xf55   :  { %v3861_v39 = vmul.f32 0.03125, %v3845_v33  ;;  %v3842_v5 = vpop.xlane.xlu0 %3841  ;;  %v3891_v12 = vmul.f32 %v8834_v27, %v8834_v27  ;;  %5984 = vmatprep.subr.bf16.mxu1 %v5983_v0  ;;  %v5987_v33 = vpack.c.bf16 %v4283_v4, %v4282_v10 }
 0xf56   :  { %v3860_v31 = vmul.f32 0.03125, %v3842_v5  ;;  %v3890_v60 = vmul.f32 %v8837_v8, %v8837_v8  ;;  %5986 = vmatpush3.bf16.msra.mxu1 %v5983_v0 }
 0xf57   :  { %v8844_v63 = vsub.f32 %v8750_v6, %v3861_v39  ;;  %v3933_v15 = vsel %vm113_vm0, %v3891_v12, 0.0  ;;  %5988 = vmatprep.subr.bf16.mxu1 %v5987_v33 }
 0xf58   :  { %v8848_v37 = vsub.f32 %v8755_v34, %v3860_v31  ;;  %3934 = vadd.xlane.f32.xlu1 %v3933_v15  ;;  %v3930_v2 = vsel %vm113_vm0, %v3890_v60, 0.0 }
 0xf59   :  { %3931 = vadd.xlane.f32.xlu0 %v3930_v2  ;;  %v3893_v52 = vmul.f32 %v8844_v63, %v8844_v63 }
 0xf5a   :  { %v3892_v18 = vmul.f32 %v8848_v37, %v8848_v37  ;;  %5990 = vmatpush3.bf16.msra.mxu1 %v5987_v33  ;;  %v8909_v33 = vld [vmem:[%s9036_s7] ss:$0 sm:$0xff] }
 0xf5b   :  { %v3939_v62 = vsel %vm113_vm0, %v3893_v52, 0.0 }
 0xf5c   :  { %3940 = vadd.xlane.f32.xlu1 %v3939_v62  ;;  %v3936_v58 = vsel %vm113_vm0, %v3892_v18, 0.0 }
 0xf5d   :  { %3937 = vadd.xlane.f32.xlu0 %v3936_v58 }
 0xfb2   :  { %v3899_v39 = vpop.xlane.xlu1 %3898 }
 0xfb3   :  { %v3943_v5 = vmul.f32 0.03125, %v3899_v39  ;;  %v3896_v12 = vpop.xlane.xlu0 %3895 }
 0xfb4   :  { %v3942_v31 = vmul.f32 0.03125, %v3896_v12 }
 0xfb5   :  { %v3959_v60 = vadd.f32 1e-05, %v3943_v5 }
 0xfb6   :  { %v3958_v15 = vadd.f32 1e-05, %v3942_v31 }
 0xfb7   :  { %6641 = vrsqrt.f32 %v3959_v60  ;;  %v3902_v2 = vpop.xlane.xlu0 %3901  ;;  %v3905_v52 = vpop.xlane.xlu1 %3904 }
 0xfb8   :  { %6643 = vrsqrt.f32 %v3958_v15  ;;  %v3944_v18 = vmul.f32 0.03125, %v3902_v2  ;;  %v3945_v62 = vmul.f32 0.03125, %v3905_v52 }
 0xfba   :  { %v3960_v58 = vadd.f32 1e-05, %v3944_v18  ;;  %v3961_v32 = vadd.f32 1e-05, %v3945_v62 }
 0xfbb   :  { %v3908_v13 = vpop.xlane.xlu0 %3907  ;;  %v3911_v59 = vpop.xlane.xlu1 %3910 }
 0xfbc   :  { %6645 = vrsqrt.f32 %v3960_v58  ;;  %v3946_v45 = vmul.f32 0.03125, %v3908_v13  ;;  %v3947_v14 = vmul.f32 0.03125, %v3911_v59 }
 0xfbd   :  { %6647 = vrsqrt.f32 %v3961_v32 }
 0xfbe   :  { %v3962_v19 = vadd.f32 1e-05, %v3946_v45  ;;  %v3963_v28 = vadd.f32 1e-05, %v3947_v14 }
 0xfbf   :  { %v3914_v61 = vpop.xlane.xlu0 %3913  ;;  %v3917_v25 = vpop.xlane.xlu1 %3916 }
 0xfc0   :  { %6649 = vrsqrt.f32 %v3962_v19  ;;  %v3948_v53 = vmul.f32 0.03125, %v3914_v61  ;;  %v3949_v56 = vmul.f32 0.03125, %v3917_v25 }
 0xfc1   :  { %v6642_v11 = vpop.eup %6641  ;;  %6651 = vrsqrt.f32 %v3963_v28 }
 0xfc2   :  { %v6644_v3 = vpop.eup %6643  ;;  %v3991_v22 = vmul.f32 %v6642_v11, %v8762_v16  ;;  %v3964_v51 = vadd.f32 1e-05, %v3948_v53  ;;  %v3965_v17 = vadd.f32 1e-05, %v3949_v56 }
 0xfc3   :  { %v3920_v0 = vpop.xlane.xlu0 %3919  ;;  %v3923_v10 = vpop.xlane.xlu1 %3922  ;;  %v3990_v4 = vmul.f32 %v6644_v3, %v8765_v54 }
 0xfc4   :  { %v4013_v39 = vmul.f32 %v8902_v21, %v3991_v22  ;;  %6653 = vrsqrt.f32 %v3964_v51  ;;  %v3950_v5 = vmul.f32 0.03125, %v3920_v0  ;;  %v3951_v12 = vmul.f32 0.03125, %v3923_v10 }
 0xfc5   :  { %6655 = vrsqrt.f32 %v3965_v17  ;;  %v4012_v31 = vmul.f32 %v8902_v21, %v3990_v4 }
 0xfc6   :  { %v6646_v16 = vpop.eup %6645  ;;  %v3966_v60 = vadd.f32 1e-05, %v3950_v5  ;;  %v3967_v15 = vadd.f32 1e-05, %v3951_v12  ;;  %v4035_v52 = vadd.f32 %v8909_v33, %v4013_v39 }
 0xfc7   :  { %v6648_v2 = vpop.eup %6647  ;;  %v3926_v54 = vpop.xlane.xlu0 %3925  ;;  %v4034_v62 = vadd.f32 %v8909_v33, %v4012_v31  ;;  %v3992_v58 = vmul.f32 %v6646_v16, %v8773_v35 }
 0xfc8   :  { %v3929_v18 = vpop.xlane.xlu1 %3928  ;;  %6657 = vrsqrt.f32 %v3966_v60  ;;  %v3952_v32 = vmul.f32 0.03125, %v3926_v54  ;;  %v3993_v59 = vmul.f32 %v6648_v2, %v8776_v7 }
 0xfc9   :  { %v3953_v13 = vmul.f32 0.03125, %v3929_v18  ;;  %6659 = vrsqrt.f32 %v3967_v15  ;;  %5539 = vmatprep.mubr.msk.f32.mxu0 %vm113_vm0, %v4034_v62  ;;  %v4014_v45 = vmul.f32 %v8902_v21, %v3992_v58 }
 0xfca   :  { %v6650_v14 = vpop.eup %6649  ;;  %v3968_v19 = vadd.f32 1e-05, %v3952_v32  ;;  %5540 = vmatmul.mubr.msk.f32.vlgmr.msra.gmra.mrb[86].mxu0 %vm113_vm0, %v4035_v52  ;;  %v4015_v61 = vmul.f32 %v8902_v21, %v3993_v59 }
 0xfcb   :  { %v3969_v28 = vadd.f32 1e-05, %v3953_v13  ;;  %v6652_v25 = vpop.eup %6651  ;;  %v4036_v35 = vadd.f32 %v8909_v33, %v4014_v45  ;;  %v3994_v53 = vmul.f32 %v6650_v14, %v8784_v36 }
 0xfcc   :  { %6661 = vrsqrt.f32 %v3968_v19  ;;  %v4037_v7 = vadd.f32 %v8909_v33, %v4015_v61  ;;  %v3995_v56 = vmul.f32 %v6652_v25, %v8787_v26 }
 0xfcd   :  { %6663 = vrsqrt.f32 %v3969_v28  ;;  %5542 = vmatprep.mubr.msk.f32.mxu0 %vm113_vm0, %v4036_v35  ;;  %v4016_v11 = vmul.f32 %v8902_v21, %v3994_v53 }
 0xfce   :  { %v6654_v3 = vpop.eup %6653  ;;  %5543 = vmatmul.mubr.msk.f32.gmra.mrb[88].mxu0 %vm113_vm0, %v4037_v7  ;;  %v4017_v22 = vmul.f32 %v8902_v21, %v3995_v56 }
 0xfcf   :  { %v6656_v51 = vpop.eup %6655  ;;  %v4038_v17 = vadd.f32 %v8909_v33, %v4016_v11  ;;  %v3996_v36 = vmul.f32 %v6654_v3, %v8796_v47 }
 0xfd0   :  { %v4039_v0 = vadd.f32 %v8909_v33, %v4017_v22  ;;  %v3997_v10 = vmul.f32 %v6656_v51, %v8799_v48 }
 0xfd1   :  { %5545 = vmatprep.mubr.msk.f32.mxu0 %vm113_vm0, %v4038_v17  ;;  %v4018_v26 = vmul.f32 %v8902_v21, %v3996_v36 }
 0xfd2   :  { %v6658_v4 = vpop.eup %6657  ;;  %5546 = vmatmul.mubr.msk.f32.gmra.mrb[90].mxu0 %vm113_vm0, %v4039_v0  ;;  %v4019_v39 = vmul.f32 %v8902_v21, %v3997_v10 }
 0xfd3   :  { %v6660_v5 = vpop.eup %6659  ;;  %v4040_v12 = vadd.f32 %v8909_v33, %v4018_v26  ;;  %v3998_v31 = vmul.f32 %v6658_v4, %v8808_v42 }
 0xfd4   :  { %v4041_v47 = vadd.f32 %v8909_v33, %v4019_v39  ;;  %v3999_v16 = vmul.f32 %v6660_v5, %v8811_v9 }
 0xfd5   :  { %5548 = vmatprep.mubr.msk.f32.mxu0 %vm113_vm0, %v4040_v12  ;;  %v4020_v48 = vmul.f32 %v8902_v21, %v3998_v31 }
 0xfd6   :  { %v6662_v60 = vpop.eup %6661  ;;  %5549 = vmatmul.mubr.msk.f32.gmra.mrb[92].mxu0 %vm113_vm0, %v4041_v47  ;;  %v4021_v15 = vmul.f32 %v8902_v21, %v3999_v16 }
 0xfd7   :  { %v6664_v2 = vpop.eup %6663  ;;  %v4042_v52 = vadd.f32 %v8909_v33, %v4020_v48  ;;  %v4000_v54 = vmul.f32 %v6662_v60, %v8820_v49 }
 0xfd8   :  { %v4043_v42 = vadd.f32 %v8909_v33, %v4021_v15  ;;  %v4001_v18 = vmul.f32 %v6664_v2, %v8823_v44 }
 0xfd9   :  { %5551 = vmatprep.mubr.msk.f32.mxu0 %vm113_vm0, %v4042_v52  ;;  %v4022_v9 = vmul.f32 %v8902_v21, %v4000_v54 }
 0xfda   :  { %5552 = vmatmul.mubr.msk.f32.gmra.mrb[94].mxu0 %vm113_vm0, %v4043_v42  ;;  %v4023_v62 = vmul.f32 %v8902_v21, %v4001_v18 }
 0xfdb   :  { %v4044_v58 = vadd.f32 %v8909_v33, %v4022_v9 }
 0xfdc   :  { %v4045_v32 = vadd.f32 %v8909_v33, %v4023_v62 }
 0xfdd   :  { %5554 = vmatprep.mubr.msk.f32.mxu0 %vm113_vm0, %v4044_v58 }
 0xfde   :  { %5555 = vmatmul.mubr.msk.f32.gmra.mrb[96].mxu0 %vm113_vm0, %v4045_v32 }
 0xfe5   :  { %v3935_v49 = vpop.xlane.xlu1 %3934 }
 0xfe6   :  { %v3955_v13 = vmul.f32 0.03125, %v3935_v49  ;;  %v3932_v59 = vpop.xlane.xlu0 %3931 }
 0xfe7   :  { %v3954_v44 = vmul.f32 0.03125, %v3932_v59 }
 0xfe8   :  { %v3971_v45 = vadd.f32 1e-05, %v3955_v13 }
 0xfe9   :  { %v3970_v14 = vadd.f32 1e-05, %v3954_v44  ;;  %v3941_v19 = vpop.xlane.xlu1 %3940 }
 0xfea   :  { %6665 = vrsqrt.f32 %v3971_v45  ;;  %v3957_v28 = vmul.f32 0.03125, %v3941_v19  ;;  %v3938_v61 = vpop.xlane.xlu0 %3937 }
 0xfeb   :  { %6667 = vrsqrt.f32 %v3970_v14  ;;  %v3956_v25 = vmul.f32 0.03125, %v3938_v61 }
 0xfec   :  { %v3973_v35 = vadd.f32 1e-05, %v3957_v28 }
 0xfed   :  { %v3972_v53 = vadd.f32 1e-05, %v3956_v25 }
 0xfee   :  { %6669 = vrsqrt.f32 %v3973_v35 }
 0xfef   :  { %6671 = vrsqrt.f32 %v3972_v53 }
 0xff4   :  { %v6666_v7 = vpop.eup %6665 }
 0xff5   :  { %v6668_v56 = vpop.eup %6667  ;;  %v4003_v11 = vmul.f32 %v6666_v7, %v8834_v27 }
 0xff6   :  { %v4002_v3 = vmul.f32 %v6668_v56, %v8837_v8 }
 0xff7   :  { %v4025_v22 = vmul.f32 %v8902_v21, %v4003_v11 }
 0xff8   :  { %v6670_v51 = vpop.eup %6669  ;;  %v4024_v17 = vmul.f32 %v8902_v21, %v4002_v3 }
 0xff9   :  { %v6672_v36 = vpop.eup %6671  ;;  %v4005_v0 = vmul.f32 %v6670_v51, %v8844_v63  ;;  %v4047_v4 = vadd.f32 %v8909_v33, %v4025_v22  ;;  %v4284_v63 = vld [vmem:[%s9039_s10 + $0x70] sm:$0xff] }
 0xffa   :  { %v4046_v10 = vadd.f32 %v8909_v33, %v4024_v17  ;;  %v4004_v26 = vmul.f32 %v6672_v36, %v8848_v37  ;;  %v4285_v37 = vld [vmem:[%s9039_s10 + $0x78] sm:$0xff] }
 0xffb   :  { %v4027_v39 = vmul.f32 %v8902_v21, %v4005_v0  ;;  %v5991_v12 = vpack.c.bf16 %v4285_v37, %v4284_v63 }
 0xffc   :  { %5557 = vmatprep.mubr.msk.f32.mxu0 %vm113_vm0, %v4046_v10  ;;  %v4026_v27 = vmul.f32 %v8902_v21, %v4004_v26  ;;  %v4653_v21 = vld [vmem:[%s9038_s9] ss:$0 sm:$0xff]  ;;  %s6828_s9 = smov [#allocation10]  }
 0xffd   :  { %5558 = vmatmul.mubr.msk.f32.gmra.mrb[98].mxu0 %vm113_vm0, %v4047_v4  ;;  %v4049_v5 = vadd.f32 %v8909_v33, %v4027_v39  ;;  %5992 = vmatprep.subr.bf16.mxu1 %v5991_v12  ;;  %s4475_s10 = sshll.u32 %s6828_s9, 4  ;;  %s4476_s10 = int_to_ptr.vmem [resolvable:$true] %s4475_s10 }
 0xffe   :  { %v4048_v8 = vadd.f32 %v8909_v33, %v4026_v27  ;;  %5994 = vmatpush3.bf16.msra.mxu1 %v5991_v12  ;;  %s6777_s5 = scalar_lea.vmem %s4476_s10, 2048  ;;  %p6782_p5 = scmp.lt.s32.totalorder %s4476_s10, %s4476_s10 }
 0xfff   :  { %p6778_p4 = scmp.ne.s32.totalorder %s4476_s10, %s6777_s5  ;;  %p6783_p6 = scmp.lt.s32.totalorder %s6777_s5, %s6777_s5 }
0x1000   :  { %5560 = vmatprep.mubr.msk.f32.mxu0 %vm113_vm0, %v4048_v8 }
0x1001   :  { %5561 = vmatmul.mubr.msk.f32.gmra.mrb[100].mxu0 %vm113_vm0, %v4049_v5  ;;  %p6784_p7 = por %p6783_p6, %p6782_p5 }
0x1003   :  { %p6785_p8 = pnand %p6784_p7, %p6778_p4 }
0x109d   :  { %v5541_v33 = vpop.f32.mrb[86].mxu0 }
0x109e   :  { %v4181_v31 = vadd.f32 %v5541_v33, %v4653_v21  ;;  %v4175_v47 = vpop.f32.mrb[87].mxu0 }
0x109f   :  { %v4176_v16 = vadd.f32 %v4653_v21, %v4175_v47 }
0x10a0   :  { %v4255_v15 = vmax.f32 %v4181_v31, 0.0  ;;  %v4670_v31 = vld [vmem:[#allocation8] ss:$0 sm:$0xff] }
0x10a1   :  { %v4254_v48 = vmax.f32 %v4176_v16, 0.0  ;;  %v5544_v60 = vpop.f32.mrb[88].mxu0 }
0x10a2   :  { %v4191_v2 = vadd.f32 %v5544_v60, %v4653_v21  ;;  %v4185_v52 = vpop.f32.mrb[89].mxu0 }
0x10a3   :  { %v4186_v54 = vadd.f32 %v4653_v21, %v4185_v52  ;;  %5595 = vmatprep.mubr.f32.mxu1 %v4254_v48 }
0x10a4   :  { %5596 = vmatmul.mubr.f32.vlgmr.msra.gmra.mrb[74].mxu1 %v4255_v15  ;;  %v4257_v9 = vmax.f32 %v4191_v2, 0.0 }
0x10a5   :  { %v4256_v42 = vmax.f32 %v4186_v54, 0.0  ;;  %v5547_v18 = vpop.f32.mrb[90].mxu0 }
0x10a6   :  { %v4201_v62 = vadd.f32 %v5547_v18, %v4653_v21  ;;  %v4195_v58 = vpop.f32.mrb[91].mxu0 }
0x10a7   :  { %v4196_v32 = vadd.f32 %v4653_v21, %v4195_v58  ;;  %5598 = vmatprep.mubr.f32.mxu1 %v4256_v42 }
0x10a8   :  { %5599 = vmatmul.mubr.f32.gmra.mrb[76].mxu1 %v4257_v9  ;;  %v4259_v59 = vmax.f32 %v4201_v62, 0.0 }
0x10a9   :  { %v4258_v49 = vmax.f32 %v4196_v32, 0.0  ;;  %v5550_v13 = vpop.f32.mrb[92].mxu0 }
0x10aa   :  { %v4211_v44 = vadd.f32 %v5550_v13, %v4653_v21  ;;  %v4205_v45 = vpop.f32.mrb[93].mxu0 }
0x10ab   :  { %v4206_v14 = vadd.f32 %v4653_v21, %v4205_v45  ;;  %5601 = vmatprep.mubr.f32.mxu1 %v4258_v49 }
0x10ac   :  { %5602 = vmatmul.mubr.f32.gmra.mrb[78].mxu1 %v4259_v59  ;;  %v4261_v61 = vmax.f32 %v4211_v44, 0.0 }
0x10ad   :  { %v4260_v19 = vmax.f32 %v4206_v14, 0.0  ;;  %v5553_v28 = vpop.f32.mrb[94].mxu0 }
0x10ae   :  { %v4221_v25 = vadd.f32 %v5553_v28, %v4653_v21  ;;  %v4215_v35 = vpop.f32.mrb[95].mxu0 }
0x10af   :  { %v4216_v53 = vadd.f32 %v4653_v21, %v4215_v35  ;;  %5604 = vmatprep.mubr.f32.mxu1 %v4260_v19 }
0x10b0   :  { %5605 = vmatmul.mubr.f32.gmra.mrb[80].mxu1 %v4261_v61  ;;  %v4263_v11 = vmax.f32 %v4221_v25, 0.0 }
0x10b1   :  { %v4262_v7 = vmax.f32 %v4216_v53, 0.0  ;;  %v5556_v56 = vpop.f32.mrb[96].mxu0 }
0x10b2   :  { %v4231_v3 = vadd.f32 %v5556_v56, %v4653_v21  ;;  %v4225_v22 = vpop.f32.mrb[97].mxu0 }
0x10b3   :  { %v4226_v51 = vadd.f32 %v4653_v21, %v4225_v22  ;;  %5607 = vmatprep.mubr.f32.mxu1 %v4262_v7 }
0x10b4   :  { %5608 = vmatmul.mubr.f32.gmra.mrb[82].mxu1 %v4263_v11  ;;  %v4265_v36 = vmax.f32 %v4231_v3, 0.0 }
0x10b5   :  { %v4264_v17 = vmax.f32 %v4226_v51, 0.0 }
0x10b7   :  { %5610 = vmatprep.mubr.f32.mxu1 %v4264_v17 }
0x10b8   :  { %5611 = vmatmul.mubr.f32.gmra.mrb[84].mxu1 %v4265_v36 }
0x10d0   :  { %v5559_v0 = vpop.f32.mrb[98].mxu0 }
0x10d1   :  { %v4241_v10 = vadd.f32 %v5559_v0, %v4653_v21  ;;  %v4235_v26 = vpop.f32.mrb[99].mxu0 }
0x10d2   :  { %v4236_v4 = vadd.f32 %v4653_v21, %v4235_v26 }
0x10d3   :  { %v4267_v8 = vmax.f32 %v4241_v10, 0.0 }
0x10d4   :  { %v4266_v39 = vmax.f32 %v4236_v4, 0.0  ;;  %v5562_v27 = vpop.f32.mrb[100].mxu0 }
0x10d5   :  { %v4251_v5 = vadd.f32 %v5562_v27, %v4653_v21  ;;  %v4245_v63 = vpop.f32.mrb[101].mxu0 }
0x10d6   :  { %v4246_v37 = vadd.f32 %v4653_v21, %v4245_v63  ;;  %5613 = vmatprep.mubr.f32.mxu1 %v4266_v39 }
0x10d7   :  { %5614 = vmatmul.mubr.f32.gmra.mrb[86].mxu1 %v4267_v8  ;;  %v4269_v33 = vmax.f32 %v4251_v5, 0.0 }
0x10d8   :  { %v4268_v12 = vmax.f32 %v4246_v37, 0.0 }
0x10da   :  { %5616 = vmatprep.mubr.f32.mxu1 %v4268_v12 }
0x10db   :  { %5617 = vmatmul.mubr.f32.gmra.mrb[88].mxu1 %v4269_v33 }
0x1177   :  { %v5597_v47 = vpop.f32.mrb[74].mxu1 }
0x1178   :  { %v4365_v16 = vadd.f32 %v5597_v47, %v4670_v31  ;;  %v4359_v48 = vpop.f32.mrb[75].mxu1 }
0x1179   :  { %v4360_v60 = vadd.f32 %v4670_v31, %v4359_v48 }
0x117a   :  { %v4439_v15 = vadd.f32 %v4365_v16, %v8652_v46 }
0x117b   :  { %v4438_v2 = vadd.f32 %v4360_v60, %v8657_v23  ;;  %v5600_v52 = vpop.f32.mrb[76].mxu1 }
0x117c   :  { %4455 = vst.msk [vmem:[#allocation10 + $0x8] sm:$0xff] %vm113_vm0, %v4439_v15  ;;  %v4375_v54 = vadd.f32 %v5600_v52, %v4670_v31  ;;  %v4369_v21 = vpop.f32.mrb[77].mxu1 }
0x117d   :  { %4454 = vst.msk [vmem:[#allocation10] sm:$0xff] %vm113_vm0, %v4438_v2  ;;  %v4370_v42 = vadd.f32 %v4670_v31, %v4369_v21 }
0x117e   :  { %v4441_v18 = vadd.f32 %v4375_v54, %v8666_v41 }
0x117f   :  { %v4440_v9 = vadd.f32 %v4370_v42, %v8671_v29  ;;  %v5603_v62 = vpop.f32.mrb[78].mxu1 }
0x1180   :  { %4457 = vst.msk [vmem:[#allocation10 + $0x18] sm:$0xff] %vm113_vm0, %v4441_v18  ;;  %v4385_v58 = vadd.f32 %v5603_v62, %v4670_v31  ;;  %v4379_v32 = vpop.f32.mrb[79].mxu1 }
0x1181   :  { %4456 = vst.msk [vmem:[#allocation10 + $0x10] sm:$0xff] %vm113_vm0, %v4440_v9  ;;  %v4380_v46 = vadd.f32 %v4670_v31, %v4379_v32 }
0x1182   :  { %v4443_v23 = vadd.f32 %v4385_v58, %v8680_v24 }
0x1183   :  { %v4442_v49 = vadd.f32 %v4380_v46, %v8685_v40  ;;  %v5606_v13 = vpop.f32.mrb[80].mxu1 }
0x1184   :  { %4459 = vst.msk [vmem:[#allocation10 + $0x28] sm:$0xff] %vm113_vm0, %v4443_v23  ;;  %v4395_v59 = vadd.f32 %v5606_v13, %v4670_v31  ;;  %v4389_v44 = vpop.f32.mrb[81].mxu1 }
0x1185   :  { %4458 = vst.msk [vmem:[#allocation10 + $0x20] sm:$0xff] %vm113_vm0, %v4442_v49  ;;  %v4390_v41 = vadd.f32 %v4670_v31, %v4389_v44 }
0x1186   :  { %v4445_v29 = vadd.f32 %v4395_v59, %v8694_v30 }
0x1187   :  { %v4444_v45 = vadd.f32 %v4390_v41, %v8699_v43  ;;  %v5609_v14 = vpop.f32.mrb[82].mxu1 }
0x1188   :  { %4461 = vst.msk [vmem:[#allocation10 + $0x38] sm:$0xff] %vm113_vm0, %v4445_v29  ;;  %v4405_v19 = vadd.f32 %v5609_v14, %v4670_v31  ;;  %v4399_v28 = vpop.f32.mrb[83].mxu1 }
0x1189   :  { %4460 = vst.msk [vmem:[#allocation10 + $0x30] sm:$0xff] %vm113_vm0, %v4444_v45  ;;  %v4400_v24 = vadd.f32 %v4670_v31, %v4399_v28 }
0x118a   :  { %v4447_v40 = vadd.f32 %v4405_v19, %v8708_v50 }
0x118b   :  { %v4446_v61 = vadd.f32 %v4400_v24, %v8713_v38  ;;  %v5612_v25 = vpop.f32.mrb[84].mxu1 }
0x118c   :  { %4463 = vst.msk [vmem:[#allocation10 + $0x48] sm:$0xff] %vm113_vm0, %v4447_v40  ;;  %v4415_v35 = vadd.f32 %v5612_v25, %v4670_v31  ;;  %v4409_v53 = vpop.f32.mrb[85].mxu1 }
0x118d   :  { %4462 = vst.msk [vmem:[#allocation10 + $0x40] sm:$0xff] %vm113_vm0, %v4446_v61  ;;  %v4410_v30 = vadd.f32 %v4670_v31, %v4409_v53 }
0x118e   :  { %v4449_v43 = vadd.f32 %v4415_v35, %v8722_v20 }
0x118f   :  { %v4448_v7 = vadd.f32 %v4410_v30, %v8727_v1 }
0x1190   :  { %4465 = vst.msk [vmem:[#allocation10 + $0x58] sm:$0xff] %vm113_vm0, %v4449_v43 }
0x1191   :  { %4464 = vst.msk [vmem:[#allocation10 + $0x50] sm:$0xff] %vm113_vm0, %v4448_v7 }
0x11aa   :  { %v5615_v56 = vpop.f32.mrb[86].mxu1 }
0x11ab   :  { %v4425_v50 = vadd.f32 %v5615_v56, %v4670_v31  ;;  %v4419_v11 = vpop.f32.mrb[87].mxu1 }
0x11ac   :  { %v4420_v38 = vadd.f32 %v4670_v31, %v4419_v11 }
0x11ad   :  { %v4451_v3 = vadd.f32 %v4425_v50, %v8736_v57 }
0x11ae   :  { %v4450_v22 = vadd.f32 %v4420_v38, %v8741_v55  ;;  %v5618_v51 = vpop.f32.mrb[88].mxu1 }
0x11af   :  { %4467 = vst.msk [vmem:[#allocation10 + $0x68] sm:$0xff] %vm113_vm0, %v4451_v3  ;;  %v4435_v17 = vadd.f32 %v5618_v51, %v4670_v31  ;;  %v4429_v36 = vpop.f32.mrb[89].mxu1 }
0x11b0   :  { %4466 = vst.msk [vmem:[#allocation10 + $0x60] sm:$0xff] %vm113_vm0, %v4450_v22  ;;  %v4430_v20 = vadd.f32 %v4670_v31, %v4429_v36 }
0x11b1   :  { %v4453_v1 = vadd.f32 %v4435_v17, %v8750_v6 }
0x11b2   :  { %v4452_v0 = vadd.f32 %v4430_v20, %v8755_v34 }
0x11b3   :  { %4469 = vst.msk [vmem:[#allocation10 + $0x78] sm:$0xff] %vm113_vm0, %v4453_v1 }
0x11b4   :  { %4468 = vst.msk [vmem:[#allocation10 + $0x70] sm:$0xff] %vm113_vm0, %v4452_v0 }
0x11b5   :  { %6788 = shalt.err (!%p6785_p8)
}
0x11b6   :  { %s6789_s13 = scalar_lea.hbm %s9041_s12, 2048 }
0x11b7   :  { %p6790_p9 = scmp.ne.s32.totalorder %s9041_s12, %s6789_s13  ;;  %p6793_p10 = scmp.lt.u32.totalorder %s6789_s13, %s9041_s12 }
0x11b9   :  { %p6795_p11 = pnand %p6793_p10, %p6790_p9 }
0x11bb   :  { %6798 = shalt.err (!%p6795_p11)
}
0x11bc   :  { %4481 = dma.vmem_to_hbm [thread:$0]  %s4476_s10, 2048, %s9041_s12, [#allocation4], %s6809_s15, %s6809_s15, %s6810_s16  }
0x11bd   :  { %6805 = dma.done.wait [#allocation4], 2048  }
0x11be   :  { %6806 = vsyncadd [#allocation4], 4294965248 }
0x11bf   :  { %4485 = vsyncpa [#allocation3], 1 }
0x11c0   :  { %4486 = vsyncpa [#allocation6], 1 }
0x11c1   :  { %4487 = vsyncpa [#allocation9], 1 }
0x11c2   :  { %4488 = vsyncpa [#allocation4], 1 }

</bundles_post_ra>
